<compile_context>
chip_gen: v7x
topology: tpu7x:2x2x1
jax: 0.10.0
libtpu: 0.0.40
codegen_flags: <defaults>
</compile_context>

<pallas_src>
import jax
import jax.numpy as jnp
import numpy as np
from jax import lax
from jax.experimental import pallas as pl
from jax.experimental.pallas import tpu as pltpu

EPS = 1e-5
STRIDE = 5          # AvgPool2d stride along time
KEFF = 25 + 51 - 1  # effective receptive field of conv(1x25) + avgpool(1x51) = 75


def _elu(z):
    # exp(min(z,0)) - 1: clamping avoids exp on large positive z; in f32 this matches
    # the reference ELU well within the test tolerance.
    return jnp.where(z > 0, z, jnp.exp(jnp.minimum(z, 0.0)) - 1.0)


# ---------------- fused Pallas kernel (one batch element per grid step) ----------------

def patch_embed_kernel(x_ref, wb_ref, s1_ref, t1_ref, w2_ref, s2_ref, t2_ref,
                       w3_ref, b3_ref, o_ref):
    """x_ref  : (1, T, C)  f32  time-major EEG block
       wb_ref : (F*P, T)   f32  banded conv1+avgpool filter bank, row = (filter i, window p)
       s1/t1  : (F*P, 1)   f32  folded BN1 scale / (conv bias + BN) shift per stage-1 row
       w2_ref : (F, C, F)  f32  conv2 weights as (in_filter, electrode, out_channel)
       s2/t2  : (1, F)     f32  folded BN2 scale / shift
       w3_ref : (F, E)     f32  1x1 projection weights
       b3_ref : (1, E)     f32  projection bias
       o_ref  : (1, P, E)  f32  output tokens
    """
    F = w2_ref.shape[0]          # 40 stage-1 filters
    P = o_ref.shape[1]           # number of output tokens (time windows)
    C = x_ref.shape[2]           # 63 electrodes

    # ---- stage 1: conv(1x25) + avgpool(1x51, s5) + BN1 + ELU as ONE matmul ----
    z = jnp.dot(wb_ref[...], x_ref[0],
                preferred_element_type=jnp.float32)          # (F*P, C)
    z = _elu(z * s1_ref[...] + t1_ref[...])                  # scale/shift hoisted, once

    # ---- stage 2: Conv2d(40,40,(63,1)) + BN2 + ELU ----
    # Single batched contraction over the F stage-1 filters (leading batch dim,
    # contiguous (P, C) tiles) + one reduce — no per-electrode unrolled dot+add.
    zr = z.reshape(F, P, C)                                  # layout-preserving split
    partial = lax.dot_general(
        zr, w2_ref[...],
        dimension_numbers=(((2,), (1,)), ((0,), (0,))),      # contract C, batch F
        preferred_element_type=jnp.float32)                  # (F, P, F_out)
    y2 = _elu(jnp.sum(partial, axis=0) * s2_ref[...] + t2_ref[...])   # (P, F)

    # ---- projection: Conv2d(40,E,(1,1)) + Rearrange -> (P, E) ----
    out = jnp.dot(y2, w3_ref[...],
                  preferred_element_type=jnp.float32) + b3_ref[...]
    o_ref[0] = out.astype(o_ref.dtype)


# ---------------- wrapper ----------------

def patch_embedding_pallas(x, p, emb_size=40):
    B, C, T = x.shape                       # (B, 63, T)
    Wc = T - 25 + 1                         # width after 1x25 conv
    P = (Wc - 51) // STRIDE + 1             # width after 1x51 avgpool, stride 5
    K = KEFF                                # 75
    F = 40                                  # stage-1 / stage-2 channel count

    # fold conv1 + avgpool into one 75-tap, stride-5 filter bank (mask matmul).
    w1_2d = p["w1"][:, 0, 0, :]                                # (40, 25)
    d = jnp.arange(K)[None, :] - jnp.arange(25)[:, None]       # (25, 75)
    mker = ((d >= 0) & (d <= 50)).astype(jnp.float32)          # avgpool footprint
    weff = ((w1_2d @ mker) / 51.0).T                           # (75, 40)

    # banded stage-1 weights: row (i*P + p) holds weff[:, i] shifted to taps [5p, 5p+75).
    pidx = jnp.arange(P)[:, None]                              # (P, 1)
    tidx = jnp.arange(T)[None, :]                              # (1, T)
    k = tidx - STRIDE * pidx                                   # (P, T)
    valid = (k >= 0) & (k < K)
    band = jnp.where(valid[..., None], weff[jnp.clip(k, 0, K - 1)], 0.0)  # (P, T, F)
    wband = jnp.transpose(band, (2, 0, 1)).reshape(F * P, T)   # rows = i*P + p

    # fold eval-mode BatchNorm + conv bias into scale/shift.
    s1 = p["g1"] / jnp.sqrt(p["v1"] + EPS)
    t1 = p["be1"] + (p["b1"] - p["m1"]) * s1
    s2 = p["g2"] / jnp.sqrt(p["v2"] + EPS)
    t2 = p["be2"] + (p["b2"] - p["m2"]) * s2

    f32 = jnp.float32
    xt = jnp.transpose(x, (0, 2, 1)).astype(f32)                          # (B, T, C)
    wbk = wband.astype(f32)                                               # (F*P, T)
    s1c = jnp.repeat(s1, P).reshape(F * P, 1).astype(f32)                 # per-row scale
    t1c = jnp.repeat(t1, P).reshape(F * P, 1).astype(f32)                 # per-row shift
    w2k = jnp.transpose(p["w2"][:, :, :, 0], (1, 2, 0)).astype(f32)       # (i, c, o)
    s2r = s2.reshape(1, F).astype(f32)
    t2r = t2.reshape(1, F).astype(f32)
    w3k = p["w3"][:, :, 0, 0].T.astype(f32)                               # (40, E)
    b3r = p["b3"].reshape(1, emb_size).astype(f32)

    return pl.pallas_call(
        patch_embed_kernel,
        out_shape=jax.ShapeDtypeStruct((B, P, emb_size), jnp.float32),
        grid=(B,),
        in_specs=[
            pl.BlockSpec((1, T, C), lambda b: (b, 0, 0)),        # x (time-major)
            pl.BlockSpec((F * P, T), lambda b: (0, 0)),          # banded stage-1 weights
            pl.BlockSpec((F * P, 1), lambda b: (0, 0)),          # s1
            pl.BlockSpec((F * P, 1), lambda b: (0, 0)),          # t1
            pl.BlockSpec((F, C, F), lambda b: (0, 0, 0)),        # w2 (i, c, o)
            pl.BlockSpec((1, F), lambda b: (0, 0)),              # s2
            pl.BlockSpec((1, F), lambda b: (0, 0)),              # t2
            pl.BlockSpec((F, emb_size), lambda b: (0, 0)),       # w3
            pl.BlockSpec((1, emb_size), lambda b: (0, 0)),       # b3
        ],
        out_specs=pl.BlockSpec((1, P, emb_size), lambda b: (b, 0, 0)),
        compiler_params=pltpu.CompilerParams(
            dimension_semantics=("parallel",)),   # batch axis -> both v7x TCs
    )(xt, wbk, s1c, t1c, w2k, s2r, t2r, w3k, b3r)


# ---------------- pure-JAX reference (for verification) ----------------

def patch_embedding_ref(x, p, emb_size=40):
    B = x.shape[0]
    x4 = x[:, None, :, :]                                   # (B,1,63,T) NCHW
    dn = ("NCHW", "OIHW", "NCHW")
    hi = lax.Precision.HIGHEST

    def bn(z, g, be, m, v):
        return ((z - m[None, :, None, None])
                / jnp.sqrt(v + EPS)[None, :, None, None]
                * g[None, :, None, None] + be[None, :, None, None])

    c1 = lax.conv_general_dilated(x4, p["w1"], (1, 1), "VALID",
                                  dimension_numbers=dn, precision=hi)
    c1 = c1 + p["b1"][None, :, None, None]
    pooled = lax.reduce_window(c1, 0.0, lax.add,
                               (1, 1, 1, 51), (1, 1, 1, 5), "VALID") / 51.0
    y = _elu(bn(pooled, p["g1"], p["be1"], p["m1"], p["v1"]))
    c2 = lax.conv_general_dilated(y, p["w2"], (1, 1), "VALID",
                                  dimension_numbers=dn, precision=hi)
    c2 = c2 + p["b2"][None, :, None, None]
    y2 = _elu(bn(c2, p["g2"], p["be2"], p["m2"], p["v2"]))
    c3 = lax.conv_general_dilated(y2, p["w3"], (1, 1), "VALID",
                                  dimension_numbers=dn, precision=hi)
    c3 = c3 + p["b3"][None, :, None, None]
    # Rearrange 'b e (h) (w) -> b (h w) e'
    return jnp.transpose(c3, (0, 2, 3, 1)).reshape(B, -1, emb_size)


# ---------------- deterministic parameter init ----------------

def init_params(key, emb_size=40, n_chan=63):
    ks = jax.random.split(key, 14)
    p = {}
    p["w1"] = 0.1 * jax.random.normal(ks[0], (40, 1, 1, 25), jnp.float32)
    p["b1"] = 0.1 * jax.random.normal(ks[1], (40,), jnp.float32)
    p["g1"] = 1.0 + 0.1 * jax.random.normal(ks[2], (40,), jnp.float32)
    p["be1"] = 0.1 * jax.random.normal(ks[3], (40,), jnp.float32)
    p["m1"] = 0.1 * jax.random.normal(ks[4], (40,), jnp.float32)
    p["v1"] = jax.random.uniform(ks[5], (40,), jnp.float32, 0.5, 1.5)
    p["w2"] = 0.05 * jax.random.normal(ks[6], (40, 40, n_chan, 1), jnp.float32)
    p["b2"] = 0.1 * jax.random.normal(ks[7], (40,), jnp.float32)
    p["g2"] = 1.0 + 0.1 * jax.random.normal(ks[8], (40,), jnp.float32)
    p["be2"] = 0.1 * jax.random.normal(ks[9], (40,), jnp.float32)
    p["m2"] = 0.1 * jax.random.normal(ks[10], (40,), jnp.float32)
    p["v2"] = jax.random.uniform(ks[11], (40,), jnp.float32, 0.5, 1.5)
    p["w3"] = 0.1 * jax.random.normal(ks[12], (emb_size, 40, 1, 1), jnp.float32)
    p["b3"] = 0.1 * jax.random.normal(ks[13], (emb_size,), jnp.float32)
    return p


if __name__ == "__main__":
    key = jax.random.PRNGKey(0)
    kx, kp = jax.random.split(key)

    # 63 EEG channels (fixed by the (63,1) conv), T=114 time samples ->
    # 8 output tokens of size 40.
    B, C, T, E = 2, 63, 114, 40
    x = jax.random.normal(kx, (B, C, T), jnp.float32)
    params = init_params(kp, emb_size=E, n_chan=C)

    out = patch_embedding_pallas(x, params, emb_size=E)
    out = jax.block_until_ready(out)

    ref = patch_embedding_ref(x, params, emb_size=E)
    assert out.shape == ref.shape == (B, 8, E)
    np.testing.assert_allclose(np.asarray(out), np.asarray(ref),
                               rtol=1e-3, atol=1e-3)
    print("KERNEL_OK")
</pallas_src>

<mosaic_0001>
module attributes {stable_mosaic.version = 11 : i64} {
  func.func @patch_embed_kernel(%arg0: i32, %arg1: memref<1x114x63xf32, #tpu.memory_space<vmem>>, %arg2: memref<320x114xf32, #tpu.memory_space<vmem>>, %arg3: memref<320x1xf32, #tpu.memory_space<vmem>>, %arg4: memref<320x1xf32, #tpu.memory_space<vmem>>, %arg5: memref<40x63x40xf32, #tpu.memory_space<vmem>>, %arg6: memref<1x40xf32, #tpu.memory_space<vmem>>, %arg7: memref<1x40xf32, #tpu.memory_space<vmem>>, %arg8: memref<40x40xf32, #tpu.memory_space<vmem>>, %arg9: memref<1x40xf32, #tpu.memory_space<vmem>>, %arg10: memref<1x8x40xf32, #tpu.memory_space<vmem>>) attributes {dimension_semantics = [#tpu.dimension_semantics<parallel>], iteration_bounds = array<i64: 2>, scalar_prefetch = 0 : i64, scratch_operands = 0 : i64, tpu.core_type = #tpu.core_type<tc>, window_params = [{transform_indices = @transform_0, window_bounds = array<i64: 1, 114, 63>}, {pipeline_mode = #tpu.pipeline_mode<synchronous>, transform_indices = @transform_1, window_bounds = array<i64: 320, 114>}, {pipeline_mode = #tpu.pipeline_mode<synchronous>, transform_indices = @transform_2, window_bounds = array<i64: 320, 1>}, {pipeline_mode = #tpu.pipeline_mode<synchronous>, transform_indices = @transform_3, window_bounds = array<i64: 320, 1>}, {pipeline_mode = #tpu.pipeline_mode<synchronous>, transform_indices = @transform_4, window_bounds = array<i64: 40, 63, 40>}, {pipeline_mode = #tpu.pipeline_mode<synchronous>, transform_indices = @transform_5, window_bounds = array<i64: 1, 40>}, {pipeline_mode = #tpu.pipeline_mode<synchronous>, transform_indices = @transform_6, window_bounds = array<i64: 1, 40>}, {pipeline_mode = #tpu.pipeline_mode<synchronous>, transform_indices = @transform_7, window_bounds = array<i64: 40, 40>}, {pipeline_mode = #tpu.pipeline_mode<synchronous>, transform_indices = @transform_8, window_bounds = array<i64: 1, 40>}, {transform_indices = @transform_9, window_bounds = array<i64: 1, 8, 40>}]} {
    %c0 = arith.constant 0 : index
    %c0_0 = arith.constant 0 : index
    %0 = vector.load %arg2[%c0, %c0_0] : memref<320x114xf32, #tpu.memory_space<vmem>>, vector<320x114xf32>
    %c0_1 = arith.constant 0 : index
    %c0_2 = arith.constant 0 : index
    %c0_3 = arith.constant 0 : index
    %1 = vector.load %arg1[%c0_1, %c0_2, %c0_3] : memref<1x114x63xf32, #tpu.memory_space<vmem>>, vector<1x114x63xf32>
    %2 = vector.shape_cast %1 : vector<1x114x63xf32> to vector<114x63xf32>
    %cst = arith.constant dense<0.000000e+00> : vector<320x63xf32>
    %3 = tpu.matmul %0, %2, %cst {dimension_numbers = #tpu.dot_dimension_numbers<[1], [0], [0], [1], [0, 0, 1, 1], [], []>} : vector<320x114xf32>, vector<114x63xf32>, vector<320x63xf32> -> vector<320x63xf32>
    %c0_4 = arith.constant 0 : index
    %c0_5 = arith.constant 0 : index
    %4 = vector.load %arg3[%c0_4, %c0_5] : memref<320x1xf32, #tpu.memory_space<vmem>>, vector<320x1xf32>
    %5 = vector.broadcast %4 : vector<320x1xf32> to vector<320x63xf32>
    %6 = arith.mulf %3, %5 : vector<320x63xf32>
    %c0_6 = arith.constant 0 : index
    %c0_7 = arith.constant 0 : index
    %7 = vector.load %arg4[%c0_6, %c0_7] : memref<320x1xf32, #tpu.memory_space<vmem>>, vector<320x1xf32>
    %8 = vector.broadcast %7 : vector<320x1xf32> to vector<320x63xf32>
    %9 = arith.addf %6, %8 : vector<320x63xf32>
    %cst_8 = arith.constant 0.000000e+00 : f32
    %10 = vector.broadcast %cst_8 : f32 to vector<320x63xf32>
    %11 = arith.cmpf ogt, %9, %10 : vector<320x63xf32>
    %cst_9 = arith.constant 0.000000e+00 : f32
    %12 = vector.broadcast %cst_9 : f32 to vector<320x63xf32>
    %13 = arith.minimumf %9, %12 : vector<320x63xf32>
    %14 = math.exp %13 : vector<320x63xf32>
    %cst_10 = arith.constant 1.000000e+00 : f32
    %15 = vector.broadcast %cst_10 : f32 to vector<320x63xf32>
    %16 = arith.subf %14, %15 : vector<320x63xf32>
    %17 = arith.select %11, %9, %16 : vector<320x63xi1>, vector<320x63xf32>
    %18 = vector.shape_cast %17 : vector<320x63xf32> to vector<40x8x63xf32>
    %c0_11 = arith.constant 0 : index
    %c0_12 = arith.constant 0 : index
    %c0_13 = arith.constant 0 : index
    %19 = vector.load %arg5[%c0_11, %c0_12, %c0_13] : memref<40x63x40xf32, #tpu.memory_space<vmem>>, vector<40x63x40xf32>
    %cst_14 = arith.constant dense<0.000000e+00> : vector<40x8x40xf32>
    %20 = tpu.matmul %18, %19, %cst_14 {dimension_numbers = #tpu.dot_dimension_numbers<[2], [1], [1], [2], [0, 0, 0, 1, 1, 2], [0], [0]>} : vector<40x8x63xf32>, vector<40x63x40xf32>, vector<40x8x40xf32> -> vector<40x8x40xf32>
    %cst_15 = arith.constant dense<0.000000e+00> : vector<8x40xf32>
    %21 = vector.multi_reduction <add>, %20, %cst_15 [0] : vector<40x8x40xf32> to vector<8x40xf32>
    %c0_16 = arith.constant 0 : index
    %c0_17 = arith.constant 0 : index
    %22 = vector.load %arg6[%c0_16, %c0_17] : memref<1x40xf32, #tpu.memory_space<vmem>>, vector<1x40xf32>
    %23 = vector.broadcast %22 : vector<1x40xf32> to vector<8x40xf32>
    %24 = arith.mulf %21, %23 : vector<8x40xf32>
    %c0_18 = arith.constant 0 : index
    %c0_19 = arith.constant 0 : index
    %25 = vector.load %arg7[%c0_18, %c0_19] : memref<1x40xf32, #tpu.memory_space<vmem>>, vector<1x40xf32>
    %26 = vector.broadcast %25 : vector<1x40xf32> to vector<8x40xf32>
    %27 = arith.addf %24, %26 : vector<8x40xf32>
    %cst_20 = arith.constant 0.000000e+00 : f32
    %28 = vector.broadcast %cst_20 : f32 to vector<8x40xf32>
    %29 = arith.cmpf ogt, %27, %28 : vector<8x40xf32>
    %cst_21 = arith.constant 0.000000e+00 : f32
    %30 = vector.broadcast %cst_21 : f32 to vector<8x40xf32>
    %31 = arith.minimumf %27, %30 : vector<8x40xf32>
    %32 = math.exp %31 : vector<8x40xf32>
    %cst_22 = arith.constant 1.000000e+00 : f32
    %33 = vector.broadcast %cst_22 : f32 to vector<8x40xf32>
    %34 = arith.subf %32, %33 : vector<8x40xf32>
    %35 = arith.select %29, %27, %34 : vector<8x40xi1>, vector<8x40xf32>
    %c0_23 = arith.constant 0 : index
    %c0_24 = arith.constant 0 : index
    %36 = vector.load %arg8[%c0_23, %c0_24] : memref<40x40xf32, #tpu.memory_space<vmem>>, vector<40x40xf32>
    %cst_25 = arith.constant dense<0.000000e+00> : vector<8x40xf32>
    %37 = tpu.matmul %35, %36, %cst_25 {dimension_numbers = #tpu.dot_dimension_numbers<[1], [0], [0], [1], [0, 0, 1, 1], [], []>} : vector<8x40xf32>, vector<40x40xf32>, vector<8x40xf32> -> vector<8x40xf32>
    %c0_26 = arith.constant 0 : index
    %c0_27 = arith.constant 0 : index
    %38 = vector.load %arg9[%c0_26, %c0_27] : memref<1x40xf32, #tpu.memory_space<vmem>>, vector<1x40xf32>
    %39 = vector.broadcast %38 : vector<1x40xf32> to vector<8x40xf32>
    %40 = arith.addf %37, %39 : vector<8x40xf32>
    %c0_28 = arith.constant 0 : index
    %c0_29 = arith.constant 0 : index
    %c0_30 = arith.constant 0 : index
    %41 = vector.load %arg10[%c0_28, %c0_29, %c0_30] : memref<1x8x40xf32, #tpu.memory_space<vmem>>, vector<1x8x40xf32>
    %42 = vector.shape_cast %41 : vector<1x8x40xf32> to vector<8x40xf32>
    %43 = vector.shape_cast %40 : vector<8x40xf32> to vector<1x8x40xf32>
    tpu.vector_store %arg10[%c0_28, %c0_29, %c0_30], %43 {strides = array<i32>} : memref<1x8x40xf32, #tpu.memory_space<vmem>>, vector<1x8x40xf32>,
    return
  }
  func.func @transform_0(%arg0: i32) -> (i32, i32, i32) {
    %c0_i32 = arith.constant 0 : i32
    %c0_i32_0 = arith.constant 0 : i32
    %c0_i32_1 = arith.constant 0 : i32
    return %arg0, %c0_i32, %c0_i32_0 : i32, i32, i32
  }
  func.func @transform_1(%arg0: i32) -> (i32, i32) {
    %c0_i32 = arith.constant 0 : i32
    %c0_i32_0 = arith.constant 0 : i32
    %c0_i32_1 = arith.constant 0 : i32
    return %c0_i32, %c0_i32_0 : i32, i32
  }
  func.func @transform_2(%arg0: i32) -> (i32, i32) {
    %c0_i32 = arith.constant 0 : i32
    %c0_i32_0 = arith.constant 0 : i32
    %c0_i32_1 = arith.constant 0 : i32
    return %c0_i32, %c0_i32_0 : i32, i32
  }
  func.func @transform_3(%arg0: i32) -> (i32, i32) {
    %c0_i32 = arith.constant 0 : i32
    %c0_i32_0 = arith.constant 0 : i32
    %c0_i32_1 = arith.constant 0 : i32
    return %c0_i32, %c0_i32_0 : i32, i32
  }
  func.func @transform_4(%arg0: i32) -> (i32, i32, i32) {
    %c0_i32 = arith.constant 0 : i32
    %c0_i32_0 = arith.constant 0 : i32
    %c0_i32_1 = arith.constant 0 : i32
    %c0_i32_2 = arith.constant 0 : i32
    return %c0_i32, %c0_i32_0, %c0_i32_1 : i32, i32, i32
  }
  func.func @transform_5(%arg0: i32) -> (i32, i32) {
    %c0_i32 = arith.constant 0 : i32
    %c0_i32_0 = arith.constant 0 : i32
    %c0_i32_1 = arith.constant 0 : i32
    return %c0_i32, %c0_i32_0 : i32, i32
  }
  func.func @transform_6(%arg0: i32) -> (i32, i32) {
    %c0_i32 = arith.constant 0 : i32
    %c0_i32_0 = arith.constant 0 : i32
    %c0_i32_1 = arith.constant 0 : i32
    return %c0_i32, %c0_i32_0 : i32, i32
  }
  func.func @transform_7(%arg0: i32) -> (i32, i32) {
    %c0_i32 = arith.constant 0 : i32
    %c0_i32_0 = arith.constant 0 : i32
    %c0_i32_1 = arith.constant 0 : i32
    return %c0_i32, %c0_i32_0 : i32, i32
  }
  func.func @transform_8(%arg0: i32) -> (i32, i32) {
    %c0_i32 = arith.constant 0 : i32
    %c0_i32_0 = arith.constant 0 : i32
    %c0_i32_1 = arith.constant 0 : i32
    return %c0_i32, %c0_i32_0 : i32, i32
  }
  func.func @transform_9(%arg0: i32) -> (i32, i32, i32) {
    %c0_i32 = arith.constant 0 : i32
    %c0_i32_0 = arith.constant 0 : i32
    %c0_i32_1 = arith.constant 0 : i32
    return %arg0, %c0_i32, %c0_i32_0 : i32, i32, i32
  }
}

</mosaic_0001>

<bundles_post_ra>
// kernel: tpu_custom_call.1
= control target key start
LH: loop header
LB: loop body
LE: loop exit
PB: predicated region body
PF: predicated region fallthrough
CT: control target
= control target key end

     0   :  { %14 = vsyncpa [#allocation3], 0  ;;  %s9700_s0 = inlined_call_operand.vmem [shape: f32[2,114,63], index: 0, kind: input, shape index: {}]   ;;  %s9701_s1 = inlined_call_operand.vmem [shape: f32[320,114], index: 1, kind: input, shape index: {}]   ;;  %s9702_s2 = inlined_call_operand.vmem [shape: f32[320,1], index: 2, kind: input, shape index: {}]   ;;  %s9703_s3 = inlined_call_operand.vmem [shape: f32[320,1], index: 3, kind: input, shape index: {}]   ;;  %s9704_s4 = inlined_call_operand.vmem [shape: f32[40,63,40], index: 4, kind: input, shape index: {}]   ;;  %s9705_s5 = inlined_call_operand.vmem [shape: f32[1,40], index: 5, kind: input, shape index: {}]   ;;  %s9706_s6 = inlined_call_operand.vmem [shape: f32[1,40], index: 6, kind: input, shape index: {}]   ;;  %s9707_s7 = inlined_call_operand.vmem [shape: f32[40,40], index: 7, kind: input, shape index: {}]   ;;  %s9708_s8 = inlined_call_operand.vmem [shape: f32[1,40], index: 8, kind: input, shape index: {}]   ;;  %s9709_s9 = inlined_call_operand.hbm [shape: f32[2,8,40], index: 9, kind: output, shape index: {}]  }
   0x1   :  { %16 = vsyncpa [#allocation3 + $0x1], 0  ;;  %s7462_s30 = smov 0   ;;  %s7464_s10 = smov 0  }
   0x2   :  { %s7466_s11 = smov 0   ;;  %s7468_s12 = smov 0  }
   0x3 LB: > { %s7483_s13 = sadd.s32 4294967295, %s7404_s12   ;;  %s5199_s14 = sadd.s32 4294967294, %s7404_s12   ;;  %s7404_s12 = sphi %s7468_s12, %s9717_s12   ;;  %s7400_s11 = sphi %s7466_s11, %s9716_s11   ;;  %s7396_s10 = sphi %s7464_s10, %s9715_s10   ;;  %s7392_s30 = sphi %s7462_s30, %s9714_s30  }
   0x4   : > { %s7487_s15 = sadd.s32 1, %s7404_s12   ;;  %s223_s16 = sadd.s32 1, %s7400_s11 }
   0x5   : > { %s220_s17 = ssub.s32 %s7404_s12, %s7487_s15  ;;  %p233_p0 = scmp.ne.s32.totalorder %s7400_s11, %s7396_s10 }
   0x6   : > { %p221_p1 = scmp.eq.s32.totalorder %s220_s17, 0  ;;  %p234_p2 = scmp.eq.s32.totalorder %s7483_s13, 1 }
   0x7   : > { %p239_p3 = scmp.ne.s32.totalorder %s7396_s10, %s7392_s30  ;;  %p240_p4 = scmp.eq.s32.totalorder %s5199_s14, 1 }
   0x8   : > { %s7498_s18 = scalar_select %p221_p1, %s7400_s11, %s223_s16  }
   0x9   : > { %p7500_p5 = por %p234_p2, %p233_p0  ;;  %p7504_p6 = por %p240_p4, %p239_p3 }
   0xa   : > { %p5202_p7 = scmp.ge.s32.totalorder %s7404_s12, 1  ;;  %p290_p8 = scmp.lt.s32.totalorder %s7404_s12, 3 }
   0xc   : > { %p291_p9 = pnand %p5202_p7, %p290_p8 }
   0xd   : > { %v777_v0 = vld [vmem:[%s9702_s2 + $0x8] sm:$0xff] (!%p291_p9)  ;;  %v776_v1 = vld [vmem:[%s9702_s2] sm:$0xff] (!%p291_p9)  ;;  %p326_p10 = scmp.lt.s32.totalorder (!%p291_p9), %s7483_s13, 1  ;;  %v7406_v2 = vmov (!%p291_p9), 0   ;;  %vm386_vm0 = vcmask (!%p291_p9), 932864   ;;  %v1058_v5 = vld [vmem:[%s9703_s3 + $0x10] sm:$0xff] (!%p291_p9) }
   0xe   : > { %294 = sbr.rel (%p291_p9) target bundleno = 1112 (0x458), region = 56  ;;  %7259 = vset.pattern.permute.xlu1 (!%p291_p9), %v7406_v2  ;;  %7258 = vset.pattern.permute.xlu0 (!%p291_p9), %v7406_v2  ;;  %v1057_v3 = vld [vmem:[%s9703_s3 + $0x8] sm:$0xff] (!%p291_p9)  ;;  %v1056_v4 = vld [vmem:[%s9703_s3] sm:$0xff] (!%p291_p9)  ;;  %v778_v6 = vld [vmem:[%s9702_s2 + $0x10] sm:$0xff] (!%p291_p9)  ;;  %vm507_vm1 = vcmask (!%p291_p9), 1041408   ;;  %vm1900_vm2 = vcmask (!%p291_p9), 1046528  }
   0xf   : > { %823 = vperm.xlu1 (!%p291_p9), %7259, %v777_v0   ;;  %818 = vperm.xlu0 (!%p291_p9), %7258, %v776_v1   ;;  %v331_v7 = vld [vmem:[%s9701_s1] sm:$0xff] (!%p291_p9)  ;;  %v1059_v16 = vld [vmem:[%s9703_s3 + $0x18] sm:$0xff] (!%p291_p9)  ;;  %v1061_v26 = vld [vmem:[%s9703_s3 + $0x28] sm:$0xff] (!%p291_p9)  ;;  %vm7408_vm3 = vmmov (!%p291_p9), 1   ;;  %vm7409_vm5 = vmmov (!%p291_p9), 0   ;;  %vm1896_vm6 = vcmask (!%p291_p9), 515072  }
  0x10   : > { %5826 = vmatprep.mubr.msk.f32.mxu0 (!%p291_p9), %vm386_vm0, %v331_v7  ;;  %v779_v17 = vld [vmem:[%s9702_s2 + $0x18] sm:$0xff] (!%p291_p9)  ;;  %v1060_v21 = vld [vmem:[%s9703_s3 + $0x20] sm:$0xff] (!%p291_p9)  ;;  %v781_v27 = vld [vmem:[%s9702_s2 + $0x28] sm:$0xff] (!%p291_p9)  ;;  %s323_s22 = sand.u32 (!%p291_p9), 1, %s7396_s10  }
  0x11   : > { %v780_v22 = vld [vmem:[%s9702_s2 + $0x20] sm:$0xff] (!%p291_p9)  ;;  %v783_v31 = vld [vmem:[%s9702_s2 + $0x38] sm:$0xff] (!%p291_p9)  ;;  %v782_v32 = vld [vmem:[%s9702_s2 + $0x30] sm:$0xff] (!%p291_p9)  ;;  %s5203_s23 = sshll.u32 (!%p291_p9), %s323_s22, 3  ;;  %s5127_s17 = scalar_lea.sflag (!%p291_p9), [#allocation3], %s323_s22 }
  0x12   : > { %v1063_v36 = vld [vmem:[%s9703_s3 + $0x38] sm:$0xff] (!%p291_p9)  ;;  %v1062_v37 = vld [vmem:[%s9703_s3 + $0x30] sm:$0xff] (!%p291_p9)  ;;  %v785_v39 = vld [vmem:[%s9702_s2 + $0x48] sm:$0xff] (!%p291_p9)  ;;  %s325_s28 = scalar_lea.vmem (!%p291_p9), [#allocation2], %s5203_s23 }
  0x13   : > { %1103 = vperm.xlu1 (!%p291_p9), %7259, %v1057_v3   ;;  %1098 = vperm.xlu0 (!%p291_p9), %7258, %v1056_v4   ;;  %v784_v40 = vld [vmem:[%s9702_s2 + $0x40] sm:$0xff] (!%p291_p9)  ;;  %v1065_v42 = vld [vmem:[%s9703_s3 + $0x48] sm:$0xff] (!%p291_p9)  ;;  %v787_v45 = vld [vmem:[%s9702_s2 + $0x58] sm:$0xff] (!%p291_p9) }
  0x14   : > { %v1064_v43 = vld [vmem:[%s9703_s3 + $0x40] sm:$0xff] (!%p291_p9)  ;;  %v332_v44 = vld [vmem:[%s9701_s1 + $0x8] sm:$0xff] (!%p291_p9)  ;;  %v786_v46 = vld [vmem:[%s9702_s2 + $0x50] sm:$0xff] (!%p291_p9) }
  0x15   : > { %s327_s25 = scalar_select %p326_p10, %s7483_s13, 1  ;;  %v333_v47 = vld [vmem:[%s9701_s1 + $0x10] sm:$0xff]  ;;  %v334_v48 = vld [vmem:[%s9701_s1 + $0x18] sm:$0xff]  ;;  %v335_v51 = vld [vmem:[%s9701_s1 + $0x20] sm:$0xff] }
  0x16   : > { %v1067_v49 = vld [vmem:[%s9703_s3 + $0x58] sm:$0xff]  ;;  %v1066_v50 = vld [vmem:[%s9703_s3 + $0x50] sm:$0xff]  ;;  %v336_v52 = vld [vmem:[%s9701_s1 + $0x28] sm:$0xff] }
  0x17   : > { %s7213_s14 = smul.u32 120, %s327_s25  ;;  %1108 = vperm.xlu1 %7259, %v1058_v5   ;;  %828 = vperm.xlu0 %7258, %v778_v6   ;;  %v789_v53 = vld [vmem:[%s9702_s2 + $0x68] sm:$0xff]  ;;  %v788_v54 = vld [vmem:[%s9702_s2 + $0x60] sm:$0xff]  ;;  %v337_v55 = vld [vmem:[%s9701_s1 + $0x30] sm:$0xff]  ;;  %s5140_s25 = sshll.u32 %s325_s28, 4  ;;  %s9659_s25 = int_to_ptr.vmem [resolvable:$true] %s5140_s25 }
  0x18   : > { %v338_v56 = vld [vmem:[%s9701_s1 + $0x38] sm:$0xff]  ;;  %v1069_v57 = vld [vmem:[%s9703_s3 + $0x68] sm:$0xff]  ;;  %v1068_v58 = vld [vmem:[%s9703_s3 + $0x60] sm:$0xff]  ;;  %s7342_s21 = scalar_lea.vmem %s9659_s25, 128 }
  0x19   : > { %s7533_s26 = scalar_lea.vmem %s9700_s0, %s7213_s14  ;;  %v339_v59 = vld [vmem:[%s9701_s1 + $0x40] sm:$0xff]  ;;  %v340_v60 = vld [vmem:[%s9701_s1 + $0x48] sm:$0xff]  ;;  %v791_v61 = vld [vmem:[%s9702_s2 + $0x78] sm:$0xff]  ;;  %p7343_p11 = scmp.ne.s32.totalorder %s9659_s25, %s7342_s21 }
  0x1a   : > { %v371_v8 = vld [vmem:[%s7533_s26] sm:$0xff]  ;;  %v372_v9 = vld [vmem:[%s7533_s26 + $0x8] sm:$0xff]  ;;  %v373_v10 = vld [vmem:[%s7533_s26 + $0x10] sm:$0xff] }
  0x1b   : > { %v6659_v11 = vpack.c.bf16 %v372_v9, %v371_v8  ;;  %v374_v12 = vld [vmem:[%s7533_s26 + $0x18] sm:$0xff]  ;;  %v375_v14 = vld [vmem:[%s7533_s26 + $0x20] sm:$0xff]  ;;  %v376_v15 = vld [vmem:[%s7533_s26 + $0x28] sm:$0xff]  ;;  %1113 = vperm.xlu1 %7259, %v1059_v16   ;;  %833 = vperm.xlu0 %7258, %v779_v17   ;;  %p7344_p12 = pnand %p7343_p11, %p7500_p5 }
  0x1c   : > { %v6663_v13 = vpack.c.bf16 %v374_v12, %v373_v10  ;;  %v6667_v18 = vpack.c.bf16 %v376_v15, %v375_v14  ;;  %v377_v19 = vld [vmem:[%s7533_s26 + $0x30] sm:$0xff]  ;;  %v378_v20 = vld [vmem:[%s7533_s26 + $0x38] sm:$0xff]  ;;  %v379_v24 = vld [vmem:[%s7533_s26 + $0x40] sm:$0xff] }
  0x1d   : > { %6660 = vmatprep.subr.bf16.mxu0 %v6659_v11  ;;  %v6671_v23 = vpack.c.bf16 %v378_v20, %v377_v19  ;;  %v380_v25 = vld [vmem:[%s7533_s26 + $0x48] sm:$0xff]  ;;  %v381_v29 = vld [vmem:[%s7533_s26 + $0x50] sm:$0xff]  ;;  %v382_v30 = vld [vmem:[%s7533_s26 + $0x58] sm:$0xff]  ;;  %p7345_p13 = pneg %p7344_p12 }
  0x1e   : > { %6662 = vmatpush3.bf16.msra.mxu0 %v6659_v11  ;;  %v6675_v28 = vpack.c.bf16 %v380_v25, %v379_v24  ;;  %v6679_v33 = vpack.c.bf16 %v382_v30, %v381_v29  ;;  %v383_v34 = vld [vmem:[%s7533_s26 + $0x60] sm:$0xff]  ;;  %v384_v35 = vld [vmem:[%s7533_s26 + $0x68] sm:$0xff]  ;;  %v385_v41 = vld [vmem:[%s7533_s26 + $0x70] sm:$0x3]  ;;  %s5372_s26 = sshll.u32 %s7483_s13, 7  ;;  %s7411_s13 = smov [#allocation2]  }
  0x1f   : > { %6664 = vmatprep.subr.bf16.mxu0 %v6663_v13  ;;  %1118 = vperm.xlu1 %7259, %v1060_v21   ;;  %v6683_v38 = vpack.c.bf16 %v384_v35, %v383_v34  ;;  %v790_v62 = vld [vmem:[%s9702_s2 + $0x70] sm:$0xff]  ;;  %v342_v0 = vld [vmem:[%s9701_s1 + $0x58] sm:$0xff]  ;;  %v343_v3 = vld [vmem:[%s9701_s1 + $0x60] sm:$0xff]  ;;  %s9657_s16 = scalar_lea.hbm %s9709_s9, %s5372_s26  ;;  %s7346_s23 = sshll.u32 %s7411_s13, 4  ;;  %s7347_s23 = int_to_ptr.vmem [resolvable:$false] %s7346_s23 }
  0x20   : > { %838 = vperm.xlu0 %7258, %v780_v22   ;;  %v341_v63 = vld [vmem:[%s9701_s1 + $0x50] sm:$0xff]  ;;  %v1071_v1 = vld [vmem:[%s9703_s3 + $0x78] sm:$0xff]  ;;  %v344_v4 = vld [vmem:[%s9701_s1 + $0x68] sm:$0xff]  ;;  %s7348_s24 = scalar_lea.vmem %s7347_s23, 256  ;;  %p7349_p0 = scmp.lt.s32.totalorder %s9659_s25, %s7347_s23 }
  0x21   : > { %v1070_v2 = vld [vmem:[%s9703_s3 + $0x70] sm:$0xff]  ;;  %v793_v5 = vld [vmem:[%s9702_s2 + $0x88] sm:$0xff]  ;;  %v792_v6 = vld [vmem:[%s9702_s2 + $0x80] sm:$0xff]  ;;  %p7350_p1 = scmp.lt.s32.totalorder %s7348_s24, %s7342_s21 }
  0x22   : > { %6666 = vmatpush3.bf16.msra.mxu0 %v6663_v13  ;;  %v345_v7 = vld [vmem:[%s9701_s1 + $0x70] sm:$0xff]  ;;  %v346_v8 = vld [vmem:[%s9701_s1 + $0x78] sm:$0xff]  ;;  %v1073_v9 = vld [vmem:[%s9703_s3 + $0x88] sm:$0xff] }
  0x23   : > { %6668 = vmatprep.subr.bf16.mxu0 %v6667_v18  ;;  %1123 = vperm.xlu1 %7259, %v1061_v26   ;;  %v1072_v10 = vld [vmem:[%s9703_s3 + $0x80] sm:$0xff]  ;;  %v348_v12 = vld [vmem:[%s9701_s1 + $0x88] sm:$0xff]  ;;  %v795_v13 = vld [vmem:[%s9702_s2 + $0x98] sm:$0xff]  ;;  %p7351_p2 = por %p7350_p1, %p7349_p0 }
  0x24   : > { %843 = vperm.xlu0 %7258, %v781_v27   ;;  %v347_v11 = vld [vmem:[%s9701_s1 + $0x80] sm:$0xff]  ;;  %v794_v14 = vld [vmem:[%s9702_s2 + $0x90] sm:$0xff]  ;;  %v350_v16 = vld [vmem:[%s9701_s1 + $0x98] sm:$0xff] }
  0x25   : > { %v349_v15 = vld [vmem:[%s9701_s1 + $0x90] sm:$0xff]  ;;  %v1075_v17 = vld [vmem:[%s9703_s3 + $0x98] sm:$0xff]  ;;  %v351_v19 = vld [vmem:[%s9701_s1 + $0xa0] sm:$0xff]  ;;  %p7352_p3 = pnand %p7351_p2, %p7345_p13 }
  0x26   : > { %6670 = vmatpush3.bf16.msra.mxu0 %v6667_v18  ;;  %v1074_v18 = vld [vmem:[%s9703_s3 + $0x90] sm:$0xff]  ;;  %v352_v20 = vld [vmem:[%s9701_s1 + $0xa8] sm:$0xff]  ;;  %v796_v22 = vld [vmem:[%s9702_s2 + $0xa0] sm:$0xff] }
  0x27   : > { %6672 = vmatprep.subr.bf16.mxu0 %v6671_v23  ;;  %853 = vperm.xlu1 %7259, %v783_v31   ;;  %v797_v21 = vld [vmem:[%s9702_s2 + $0xa8] sm:$0xff]  ;;  %v354_v24 = vld [vmem:[%s9701_s1 + $0xb8] sm:$0xff]  ;;  %v1076_v26 = vld [vmem:[%s9703_s3 + $0xa0] sm:$0xff] }
  0x28   : > { %848 = vperm.xlu0 %7258, %v782_v32   ;;  %v1077_v25 = vld [vmem:[%s9703_s3 + $0xa8] sm:$0xff]  ;;  %v355_v27 = vld [vmem:[%s9701_s1 + $0xc0] sm:$0xff]  ;;  %v799_v29 = vld [vmem:[%s9702_s2 + $0xb8] sm:$0xff] }
  0x29   : > { %v798_v30 = vld [vmem:[%s9702_s2 + $0xb0] sm:$0xff]  ;;  %v358_v32 = vld [vmem:[%s9701_s1 + $0xd8] sm:$0xff]  ;;  %v359_v35 = vld [vmem:[%s9701_s1 + $0xe0] sm:$0xff] }
  0x2a   : > { %6674 = vmatpush3.bf16.msra.mxu0 %v6671_v23  ;;  %v353_v23 = vld [vmem:[%s9701_s1 + $0xb0] sm:$0xff]  ;;  %vm7949_vm4 = vmpackc.low %vm1900_vm2, %vm7408_vm3 }
  0x2b   : > { %6676 = vmatprep.subr.bf16.mxu0 %v6675_v28  ;;  %1133 = vperm.xlu1 %7259, %v1063_v36   ;;  %v357_v31 = vld [vmem:[%s9701_s1 + $0xd0] sm:$0xff]  ;;  %v360_v36 = vld [vmem:[%s9701_s1 + $0xe8] sm:$0xff] }
  0x2c   : > { %1128 = vperm.xlu0 %7258, %v1062_v37   ;;  %v1078_v34 = vld [vmem:[%s9703_s3 + $0xb0] sm:$0xff]  ;;  %v801_v37 = vld [vmem:[%s9702_s2 + $0xc8] sm:$0xff] }
  0x2e   : > { %6678 = vmatpush3.bf16.msra.mxu0 %v6675_v28  ;;  %v356_v28 = vld [vmem:[%s9701_s1 + $0xc8] sm:$0xff] }
  0x2f   : > { %6680 = vmatprep.subr.bf16.mxu0 %v6679_v33  ;;  %863 = vperm.xlu1 %7259, %v785_v39   ;;  %v361_v39 = vld [vmem:[%s9701_s1 + $0xf0] sm:$0xff] }
  0x30   : > { %858 = vperm.xlu0 %7258, %v784_v40   ;;  %v362_v40 = vld [vmem:[%s9701_s1 + $0xf8] sm:$0xff] }
  0x32   : > { %6682 = vmatpush3.bf16.msra.mxu0 %v6679_v33  ;;  %v1079_v33 = vld [vmem:[%s9703_s3 + $0xb8] sm:$0xff] }
  0x33   : > { %6684 = vmatprep.subr.bf16.mxu0 %v6683_v38  ;;  %1143 = vperm.xlu1 %7259, %v1065_v42   ;;  %v1080_v42 = vld [vmem:[%s9703_s3 + $0xc0] sm:$0xff] }
  0x34   : > { %1138 = vperm.xlu0 %7258, %v1064_v43   ;;  %v363_v43 = vld [vmem:[%s9701_s1 + $0x100] sm:$0xff] }
  0x36   : > { %6686 = vmatpush3.bf16.msra.mxu0 %v6683_v38  ;;  %v800_v38 = vld [vmem:[%s9702_s2 + $0xc0] sm:$0xff] }
  0x37   : > { %5824 = vmatprep.subr.msk.mxu0 %vm507_vm1, %v385_v41  ;;  %873 = vperm.xlu1 %7259, %v787_v45   ;;  %v803_v45 = vld [vmem:[%s9702_s2 + $0xd8] sm:$0xff] }
  0x38   : > { %868 = vperm.xlu0 %7258, %v786_v46   ;;  %v802_v46 = vld [vmem:[%s9702_s2 + $0xd0] sm:$0xff] }
  0x3a   : > { %5825 = vmatpush3.msk.msra.mxu0 %vm507_vm1, %v385_v41  ;;  %v1081_v41 = vld [vmem:[%s9703_s3 + $0xc8] sm:$0xff] }
  0x3b   : > { %5827 = vmatmul.mubr.msk.f32.vlgmr.msra.gmra.mrb[0].mxu0 %vm386_vm0, %v332_v44  ;;  %1153 = vperm.xlu1 %7259, %v1067_v49   ;;  %v364_v44 = vld [vmem:[%s9701_s1 + $0x108] sm:$0xff]  ;;  %v1083_v49 = vld [vmem:[%s9703_s3 + $0xd8] sm:$0xff] }
  0x3c   : > { %5829 = vmatprep.mubr.msk.f32.mxu0 %vm386_vm0, %v333_v47  ;;  %1148 = vperm.xlu0 %7258, %v1066_v50   ;;  %v365_v47 = vld [vmem:[%s9701_s1 + $0x110] sm:$0xff] }
  0x3d   : > { %v1082_v50 = vld [vmem:[%s9703_s3 + $0xd0] sm:$0xff] }
  0x3f   : > { %5830 = vmatmul.mubr.msk.f32.gmra.mrb[2].mxu0 %vm386_vm0, %v334_v48  ;;  %883 = vperm.xlu1 %7259, %v789_v53   ;;  %v366_v48 = vld [vmem:[%s9701_s1 + $0x118] sm:$0xff]  ;;  %v805_v53 = vld [vmem:[%s9702_s2 + $0xe8] sm:$0xff] }
  0x40   : > { %5832 = vmatprep.mubr.msk.f32.mxu0 %vm386_vm0, %v335_v51  ;;  %878 = vperm.xlu0 %7258, %v788_v54   ;;  %v367_v51 = vld [vmem:[%s9701_s1 + $0x120] sm:$0xff] }
  0x41   : > { %v804_v54 = vld [vmem:[%s9702_s2 + $0xe0] sm:$0xff] }
  0x43   : > { %5833 = vmatmul.mubr.msk.f32.gmra.mrb[4].mxu0 %vm386_vm0, %v336_v52  ;;  %1163 = vperm.xlu1 %7259, %v1069_v57   ;;  %v368_v52 = vld [vmem:[%s9701_s1 + $0x128] sm:$0xff] }
  0x44   : > { %5835 = vmatprep.mubr.msk.f32.mxu0 %vm386_vm0, %v337_v55  ;;  %1158 = vperm.xlu0 %7258, %v1068_v58   ;;  %v369_v55 = vld [vmem:[%s9701_s1 + $0x130] sm:$0xff]  ;;  %v1085_v57 = vld [vmem:[%s9703_s3 + $0xe8] sm:$0xff]  ;;  %v1084_v58 = vld [vmem:[%s9703_s3 + $0xe0] sm:$0xff] }
  0x47   : > { %5836 = vmatmul.mubr.msk.f32.gmra.mrb[6].mxu0 %vm386_vm0, %v338_v56  ;;  %893 = vperm.xlu1 %7259, %v791_v61   ;;  %v370_v56 = vld [vmem:[%s9701_s1 + $0x138] sm:$0xff] }
  0x48   : > { %5838 = vmatprep.mubr.msk.f32.mxu0 %vm386_vm0, %v339_v59  ;;  %888 = vperm.xlu0 %7258, %v790_v62   ;;  %v807_v59 = vld [vmem:[%s9702_s2 + $0xf8] sm:$0xff]  ;;  %v1086_v62 = vld [vmem:[%s9703_s3 + $0xf0] sm:$0xff] }
  0x49   : > { %v1087_v61 = vld [vmem:[%s9703_s3 + $0xf8] sm:$0xff] }
  0x4b   : > { %5839 = vmatmul.mubr.msk.f32.gmra.mrb[8].mxu0 %vm386_vm0, %v340_v60  ;;  %1173 = vperm.xlu1 %7259, %v1071_v1   ;;  %v806_v60 = vld [vmem:[%s9702_s2 + $0xf0] sm:$0xff]  ;;  %v1576_v1 = vld [vmem:[%s9704_s4] sm:$0xff] }
  0x4c   : > { %5841 = vmatprep.mubr.msk.f32.mxu0 %vm386_vm0, %v341_v63  ;;  %1168 = vperm.xlu0 %7258, %v1070_v2   ;;  %v809_v63 = vld [vmem:[%s9702_s2 + $0x108] sm:$0xff] }
  0x4d   : > { %v1577_v2 = vld [vmem:[%s9704_s4 + $0x8] sm:$0xff] }
  0x4f   : > { %5842 = vmatmul.mubr.msk.f32.gmra.mrb[10].mxu0 %vm386_vm0, %v342_v0  ;;  %903 = vperm.xlu1 %7259, %v793_v5   ;;  %v808_v0 = vld [vmem:[%s9702_s2 + $0x100] sm:$0xff] }
  0x50   : > { %5844 = vmatprep.mubr.msk.f32.mxu0 %vm386_vm0, %v343_v3  ;;  %898 = vperm.xlu0 %7258, %v792_v6   ;;  %v6688_v3 = vpack.c.bf16 %v1577_v2, %v1576_v1  ;;  %v1088_v5 = vld [vmem:[%s9703_s3 + $0x100] sm:$0xff]  ;;  %v7407_v6 = vmov 0.0|0.0  }
  0x51   : > { %6687 = vmatprep.subr.bf16.mxu1 %v7407_v6  ;;  %6765 = vmatprep.subr.bf16.mxu0 %v7407_v6 }
  0x52   : > { %6689 = vmatpush3.bf16.msra.mxu1 %v6688_v3 }
  0x53   : > { %5845 = vmatmul.mubr.msk.f32.gmra.mrb[12].mxu0 %vm386_vm0, %v344_v4  ;;  %1183 = vperm.xlu1 %7259, %v1073_v9   ;;  %v1089_v4 = vld [vmem:[%s9703_s3 + $0x108] sm:$0xff] }
  0x54   : > { %5847 = vmatprep.mubr.msk.f32.mxu0 %vm386_vm0, %v345_v7  ;;  %1178 = vperm.xlu0 %7258, %v1072_v10   ;;  %v1578_v7 = vld [vmem:[%s9704_s4 + $0x10] sm:$0xff]  ;;  %v811_v10 = vld [vmem:[%s9702_s2 + $0x118] sm:$0xff] }
  0x55   : > { %6690 = vmatprep.subr.bf16.mxu1 %v7407_v6 }
  0x57   : > { %5848 = vmatmul.mubr.msk.f32.gmra.mrb[14].mxu0 %vm386_vm0, %v346_v8  ;;  %913 = vperm.xlu1 %7259, %v795_v13   ;;  %v1579_v8 = vld [vmem:[%s9704_s4 + $0x18] sm:$0xff]  ;;  %v1581_v13 = vld [vmem:[%s9704_s4 + $0x28] sm:$0xff] }
  0x58   : > { %5850 = vmatprep.mubr.msk.f32.mxu0 %vm386_vm0, %v347_v11  ;;  %908 = vperm.xlu0 %7258, %v794_v14   ;;  %v6691_v9 = vpack.c.bf16 %v1579_v8, %v1578_v7  ;;  %v810_v11 = vld [vmem:[%s9702_s2 + $0x110] sm:$0xff] }
  0x5a   : > { %6692 = vmatpush3.bf16.msra.mxu1 %v6691_v9 }
  0x5b   : > { %5851 = vmatmul.mubr.msk.f32.gmra.mrb[16].mxu0 %vm386_vm0, %v348_v12  ;;  %1193 = vperm.xlu1 %7259, %v1075_v17   ;;  %v1580_v12 = vld [vmem:[%s9704_s4 + $0x20] sm:$0xff]  ;;  %v1582_v17 = vld [vmem:[%s9704_s4 + $0x30] sm:$0xff] }
  0x5c   : > { %5853 = vmatprep.mubr.msk.f32.mxu0 %vm386_vm0, %v349_v15  ;;  %1188 = vperm.xlu0 %7258, %v1074_v18   ;;  %v6694_v14 = vpack.c.bf16 %v1581_v13, %v1580_v12  ;;  %v1091_v15 = vld [vmem:[%s9703_s3 + $0x118] sm:$0xff] }
  0x5d   : > { %6693 = vmatprep.subr.bf16.mxu1 %v7407_v6  ;;  %v1583_v18 = vld [vmem:[%s9704_s4 + $0x38] sm:$0x7f] }
  0x5e   : > { %6695 = vmatpush3.bf16.msra.mxu1 %v6694_v14 }
  0x5f   : > { %5854 = vmatmul.mubr.msk.f32.gmra.mrb[18].mxu0 %vm386_vm0, %v350_v16  ;;  %923 = vperm.xlu1 %7259, %v797_v21   ;;  %v1090_v16 = vld [vmem:[%s9703_s3 + $0x110] sm:$0xff]  ;;  %v1625_v21 = vld [vmem:[%s9704_s4 + $0x188] sm:$0xff] }
  0x60   : > { %5856 = vmatprep.mubr.msk.f32.mxu0 %vm386_vm0, %v351_v19  ;;  %918 = vperm.xlu0 %7258, %v796_v22   ;;  %v1624_v19 = vld [vmem:[%s9704_s4 + $0x180] sm:$0xff]  ;;  %v813_v22 = vld [vmem:[%s9702_s2 + $0x128] sm:$0xff] }
  0x61   : > { %6696 = vmatprep.subr.bf16.mxu1 %v7407_v6 }
  0x63   : > { %5857 = vmatmul.mubr.msk.f32.gmra.mrb[20].mxu0 %vm386_vm0, %v352_v20  ;;  %1203 = vperm.xlu1 %7259, %v1077_v25   ;;  %v6697_v20 = vpack.c.bf16 %v1583_v18, %v1582_v17  ;;  %v6766_v25 = vpack.c.bf16 %v1625_v21, %v1624_v19  ;;  %v1584_v18 = vld [vmem:[%s9704_s4 + $0x40] sm:$0xff]  ;;  %v1585_v19 = vld [vmem:[%s9704_s4 + $0x48] sm:$0xff] }
  0x64   : > { %5859 = vmatprep.mubr.msk.f32.mxu0 %vm386_vm0, %v353_v23  ;;  %1198 = vperm.xlu0 %7258, %v1076_v26   ;;  %v812_v23 = vld [vmem:[%s9702_s2 + $0x120] sm:$0xff]  ;;  %v1093_v26 = vld [vmem:[%s9703_s3 + $0x128] sm:$0xff] }
  0x65   : > { %6699 = vmatpush3.bf16.msk.msra.mxu1 %vm7949_vm4, %v6697_v20  ;;  %6767 = vmatpush3.bf16.msra.mxu0 %v6766_v25 }
  0x66   : > { %6700 = vmatprep.subr.bf16.mxu1 %v7407_v6  ;;  %6768 = vmatprep.subr.bf16.mxu0 %v7407_v6 }
  0x67   : > { %5860 = vmatmul.mubr.msk.f32.gmra.mrb[22].mxu0 %vm386_vm0, %v354_v24  ;;  %933 = vperm.xlu1 %7259, %v799_v29   ;;  %v1626_v29 = vld [vmem:[%s9704_s4 + $0x190] sm:$0xff] }
  0x68   : > { %5862 = vmatprep.mubr.msk.f32.mxu0 %vm386_vm0, %v355_v27  ;;  %928 = vperm.xlu0 %7258, %v798_v30   ;;  %v1092_v27 = vld [vmem:[%s9703_s3 + $0x120] sm:$0xff]  ;;  %v1627_v30 = vld [vmem:[%s9704_s4 + $0x198] sm:$0xff] }
  0x6b   : > { %5863 = vmatmul.mubr.msk.f32.gmra.mrb[24].mxu0 %vm386_vm0, %v356_v28  ;;  %1213 = vperm.xlu1 %7259, %v1079_v33   ;;  %v7410_v28 = vmov 0.0   ;;  %v814_v33 = vld [vmem:[%s9702_s2 + $0x130] sm:$0xff] }
  0x6c   : > { %5865 = vmatprep.mubr.msk.f32.mxu0 %vm386_vm0, %v357_v31  ;;  %1208 = vperm.xlu0 %7258, %v1078_v34   ;;  %v6769_v31 = vpack.c.bf16 %v1627_v30, %v1626_v29  ;;  %v1628_v34 = vld [vmem:[%s9704_s4 + $0x1a0] sm:$0xff]  ;;  %v1587_v29 = vld [vmem:[%s9704_s4 + $0x58] sm:$0xff] }
  0x6d   : > { %5902 = vmatprep.mubr.msk.f32.mxu1 %vm7409_vm5, %v7410_v28 }
  0x6e   : > { %6770 = vmatpush3.bf16.msra.mxu0 %v6769_v31 }
  0x6f   : > { %5866 = vmatmul.mubr.msk.f32.gmra.mrb[26].mxu0 %vm386_vm0, %v358_v32  ;;  %943 = vperm.xlu1 %7259, %v801_v37   ;;  %v815_v32 = vld [vmem:[%s9702_s2 + $0x138] sm:$0xff]  ;;  %v1094_v37 = vld [vmem:[%s9703_s3 + $0x130] sm:$0xff] }
  0x70   : > { %5868 = vmatprep.mubr.msk.f32.mxu0 %vm386_vm0, %v359_v35  ;;  %938 = vperm.xlu0 %7258, %v800_v38   ;;  %v1629_v35 = vld [vmem:[%s9704_s4 + $0x1a8] sm:$0xff] }
  0x71   : > { %6771 = vmatprep.subr.bf16.mxu0 %v7407_v6  ;;  %v6772_v38 = vpack.c.bf16 %v1629_v35, %v1628_v34 }
  0x73   : > { %5869 = vmatmul.mubr.msk.f32.gmra.mrb[28].mxu0 %vm386_vm0, %v360_v36  ;;  %1223 = vperm.xlu1 %7259, %v1081_v41   ;;  %v1095_v36 = vld [vmem:[%s9703_s3 + $0x138] sm:$0xff] }
  0x74   : > { %5871 = vmatprep.mubr.msk.f32.mxu0 %vm386_vm0, %v361_v39  ;;  %1218 = vperm.xlu0 %7258, %v1080_v42   ;;  %v1630_v39 = vld [vmem:[%s9704_s4 + $0x1b0] sm:$0xff] }
  0x75   : > { %6773 = vmatpush3.bf16.msra.mxu0 %v6772_v38  ;;  %v1589_v38 = vld [vmem:[%s9704_s4 + $0x68] sm:$0xff] }
  0x76   : > { %6774 = vmatprep.subr.bf16.mxu0 %v7407_v6 }
  0x77   : > { %5872 = vmatmul.mubr.msk.f32.gmra.mrb[30].mxu0 %vm386_vm0, %v362_v40  ;;  %953 = vperm.xlu1 %7259, %v803_v45   ;;  %v1631_v40 = vld [vmem:[%s9704_s4 + $0x1b8] sm:$0x7f] }
  0x78   : > { %5874 = vmatprep.mubr.msk.f32.mxu0 %vm386_vm0, %v363_v43  ;;  %948 = vperm.xlu0 %7258, %v802_v46   ;;  %v6775_v41 = vpack.c.bf16 %v1631_v40, %v1630_v39  ;;  %v1640_v40 = vld [vmem:[%s9704_s4 + $0x200] sm:$0xff] }
  0x7a   : > { %6777 = vmatpush3.bf16.msk.msra.mxu0 %vm7949_vm4, %v6775_v41  ;;  %v1641_v41 = vld [vmem:[%s9704_s4 + $0x208] sm:$0xff] }
  0x7b   : > { %5875 = vmatmul.mubr.msk.f32.gmra.mrb[32].mxu0 %vm386_vm0, %v364_v44  ;;  %1233 = vperm.xlu1 %7259, %v1083_v49  }
  0x7c   : > { %5877 = vmatprep.mubr.msk.f32.mxu0 %vm386_vm0, %v365_v47  ;;  %1228 = vperm.xlu0 %7258, %v1082_v50  }
  0x7d   : > { %6791 = vmatprep.subr.bf16.mxu0 %v7407_v6 }
  0x7f   : > { %5878 = vmatmul.mubr.msk.f32.gmra.mrb[34].mxu0 %vm386_vm0, %v366_v48  ;;  %963 = vperm.xlu1 %7259, %v805_v53  }
  0x80   : > { %5880 = vmatprep.mubr.msk.f32.mxu0 %vm386_vm0, %v367_v51  ;;  %958 = vperm.xlu0 %7258, %v804_v54  }
  0x83   : > { %5881 = vmatmul.mubr.msk.f32.gmra.mrb[36].mxu0 %vm386_vm0, %v368_v52  ;;  %1243 = vperm.xlu1 %7259, %v1085_v57  }
  0x84   : > { %5883 = vmatprep.mubr.msk.f32.mxu0 %vm386_vm0, %v369_v55  ;;  %1238 = vperm.xlu0 %7258, %v1084_v58  }
  0x87   : > { %5884 = vmatmul.mubr.msk.f32.gmra.mrb[38].mxu0 %vm386_vm0, %v370_v56  ;;  %973 = vperm.xlu1 %7259, %v807_v59  }
  0x88   : > { %968 = vperm.xlu0 %7258, %v806_v60   ;;  %6016 = vmatprep.mubr.msk.f32.mxu0 %vm7409_vm5, %v7410_v28 }
  0x8b   : > { %1253 = vperm.xlu1 %7259, %v1087_v61  }
  0x8c   : > { %1248 = vperm.xlu0 %7258, %v1086_v62  }
  0x8e   : > { %v819_v42 = vpop.permute.xlu0 %818  ;;  %v824_v55 = vpop.permute.xlu1 %823 }
  0x8f   : > { %983 = vperm.xlu1 %7259, %v809_v63  }
  0x90   : > { %978 = vperm.xlu0 %7258, %v808_v0  }
  0x92   : > { %v1099_v43 = vpop.permute.xlu0 %1098  ;;  %v1104_v63 = vpop.permute.xlu1 %1103 }
  0x93   : > { %1263 = vperm.xlu1 %7259, %v1089_v4  }
  0x94   : > { %1258 = vperm.xlu0 %7258, %v1088_v5  }
  0x96   : > { %v829_v44 = vpop.permute.xlu0 %828 }
  0x97   : > { %993 = vperm.xlu1 %7259, %v811_v10  }
  0x98   : > { %988 = vperm.xlu0 %7258, %v810_v11  }
  0x9a   : > { %v8002_v45 = vpop.permute.xlu0 %833 }
  0x9b   : > { %1273 = vperm.xlu1 %7259, %v1091_v15  }
  0x9c   : > { %1268 = vperm.xlu0 %7258, %v1090_v16  }
  0x9f   : > { %1003 = vperm.xlu1 %7259, %v813_v22   ;;  %v839_v46 = vpop.permute.xlu0 %838 }
  0xa0   : > { %998 = vperm.xlu0 %7258, %v812_v23   ;;  %v6701_v23 = vpack.c.bf16 %v1585_v19, %v1584_v18  ;;  %v1594_v19 = vld [vmem:[%s9704_s4 + $0x90] sm:$0xff] }
  0xa3   : > { %1283 = vperm.xlu1 %7259, %v1093_v26   ;;  %v8004_v47 = vpop.permute.xlu0 %843 }
  0xa4   : > { %1278 = vperm.xlu0 %7258, %v1092_v27   ;;  %v1586_v27 = vld [vmem:[%s9704_s4 + $0x50] sm:$0xff] }
  0xa5   : > { %v6704_v34 = vpack.c.bf16 %v1587_v29, %v1586_v27 }
  0xa7   : > { %1013 = vperm.xlu1 %7259, %v815_v32   ;;  %v849_v51 = vpop.permute.xlu0 %848  ;;  %v1109_v32 = vpop.permute.xlu1 %1108 }
  0xa8   : > { %1008 = vperm.xlu0 %7258, %v814_v33  }
  0xab   : > { %1293 = vperm.xlu1 %7259, %v1095_v36   ;;  %v1129_v59 = vpop.permute.xlu0 %1128 }
  0xac   : > { %1288 = vperm.xlu0 %7258, %v1094_v37   ;;  %v1588_v37 = vld [vmem:[%s9704_s4 + $0x60] sm:$0xff] }
  0xaf   : > { %v859_v4 = vpop.permute.xlu0 %858 }
  0xb3   : > { %v1139_v15 = vpop.permute.xlu0 %1138 }
 0x10e   : > { %v5828_v48 = vpop.f32.mrb[0].mxu0 }
 0x10f   : > { %v577_v49 = vpop.f32.mrb[1].mxu0  ;;  %v1017_v60 = vmul.f32 %v5828_v48, %v824_v55 }
 0x110   : > { %v1016_v50 = vmul.f32 %v819_v42, %v577_v49  ;;  %v869_v42 = vpop.permute.xlu0 %868 }
 0x111   : > { %v8014_v1 = vadd.f32 %v1104_v63, %v1017_v60 }
 0x112   : > { %v1296_v52 = vadd.f32 %v1099_v43, %v1016_v50  ;;  %v8006_v53 = vpop.f32.mrb[2].mxu0 }
 0x113   : > { %v587_v54 = vpop.f32.mrb[3].mxu0  ;;  %v1377_v8 = vmin.f32 %v8014_v1, 0.0  ;;  %vm1337_vm9 = vcmp.gt.f32.partialorder %v8014_v1, 0.0 }
 0x114   : > { %v1376_v56 = vmin.f32 %v1296_v52, 0.0  ;;  %v1018_v25 = vmul.f32 %v829_v44, %v587_v54  ;;  %vm1336_vm7 = vcmp.gt.f32.partialorder %v1296_v52, 0.0  ;;  %v6792_v54 = vpack.c.bf16 %v1641_v41, %v1640_v40  ;;  %v1656_v41 = vld [vmem:[%s9704_s4 + $0x280] sm:$0xff] }
 0x115   : > { %v1418_v16 = vmul.f32 1.442695, %v1377_v8  ;;  %v1592_v8 = vld [vmem:[%s9704_s4 + $0x80] sm:$0xff] }
 0x116   : > { %v1416_v57 = vmul.f32 1.442695, %v1376_v56  ;;  %v8008_v58 = vpop.f32.mrb[4].mxu0  ;;  %v8045_v35 = vadd.f32 %v1109_v32, %v1018_v25  ;;  %v1642_v56 = vld [vmem:[%s9704_s4 + $0x210] sm:$0xff] }
 0x117   : > { %v597_v61 = vpop.f32.mrb[5].mxu0 }
 0x118   : > { %7260 = vpow2.f32 %v1416_v57  ;;  %v8010_v62 = vmul.f32 %v839_v46, %v597_v61  ;;  %v6707_v46 = vpack.c.bf16 %v1589_v38, %v1588_v37  ;;  %v1378_v48 = vmin.f32 %v8045_v35, 0.0  ;;  %v1643_v57 = vld [vmem:[%s9704_s4 + $0x218] sm:$0xff]  ;;  %v1596_v37 = vld [vmem:[%s9704_s4 + $0xa0] sm:$0xff]  ;;  %v1597_v38 = vld [vmem:[%s9704_s4 + $0xa8] sm:$0xff] }
 0x119   : > { %vm1338_vm11 = vcmp.gt.f32.partialorder %v8045_v35, 0.0 }
 0x11a   : > { %v8012_v0 = vpop.f32.mrb[6].mxu0 }
 0x11b   : > { %v607_v2 = vpop.f32.mrb[7].mxu0 }
 0x11c   : > { %v1022_v3 = vmul.f32 %v849_v51, %v607_v2  ;;  %v1590_v51 = vld [vmem:[%s9704_s4 + $0x70] sm:$0xff]  ;;  %v1149_v2 = vpop.permute.xlu0 %1148 }
 0x11e   : > { %v1302_v5 = vadd.f32 %v1129_v59, %v1022_v3  ;;  %v8016_v7 = vpop.f32.mrb[8].mxu0  ;;  %v1420_v3 = vmul.f32 1.442695, %v1378_v48 }
 0x11f   : > { %v617_v9 = vpop.f32.mrb[9].mxu0 }
 0x120   : > { %v1382_v10 = vmin.f32 %v1302_v5, 0.0  ;;  %v1024_v11 = vmul.f32 %v859_v4, %v617_v9  ;;  %vm1342_vm8 = vcmp.gt.f32.partialorder %v1302_v5, 0.0  ;;  %v6795_v9 = vpack.c.bf16 %v1643_v57, %v1642_v56 }
 0x122   : > { %v7261_v12 = vpop.eup %7260  ;;  %v1428_v13 = vmul.f32 1.442695, %v1382_v10  ;;  %v8019_v14 = vpop.f32.mrb[10].mxu0  ;;  %v8027_v20 = vadd.f32 %v1139_v15, %v1024_v11 }
 0x123   : > { %v627_v17 = vpop.f32.mrb[11].mxu0  ;;  %v5246_v21 = vadd.f32 -1.0, %v7261_v12  ;;  %v1644_v12 = vld [vmem:[%s9704_s4 + $0x220] sm:$0xff] }
 0x124   : > { %7262 = vpow2.f32 %v1428_v13  ;;  %v1384_v30 = vmin.f32 %v8027_v20, 0.0  ;;  %v1026_v55 = vmul.f32 %v869_v42, %v627_v17  ;;  %v1645_v13 = vld [vmem:[%s9704_s4 + $0x228] sm:$0xff]  ;;  %v1019_v17 = vmul.f32 %v8006_v53, %v8002_v45  ;;  %v1646_v45 = vld [vmem:[%s9704_s4 + $0x230] sm:$0xff]  ;;  %v1647_v53 = vld [vmem:[%s9704_s4 + $0x238] sm:$0x7f] }
 0x125   : > { %7264 = vpow2.f32 %v1418_v16  ;;  %v1536_v31 = vsel %vm1336_vm7, %v1296_v52, %v5246_v21  ;;  %v1591_v52 = vld [vmem:[%s9704_s4 + $0x78] sm:$0x7f]  ;;  %v1657_v42 = vld [vmem:[%s9704_s4 + $0x288] sm:$0xff]  ;;  %vm1344_vm10 = vcmp.gt.f32.partialorder %v8027_v20, 0.0 }
 0x126   : > { %v8029_v22 = vpop.f32.mrb[12].mxu0  ;;  %5903 = vmatmul.mubr.msk.f32.vlgmr.msra.gmra.mrb[0].mxu1 %vm1896_vm6, %v1536_v31  ;;  %v1432_v39 = vmul.f32 1.442695, %v1384_v30  ;;  %v6710_v63 = vpack.c.bf16 %v1591_v52, %v1590_v51  ;;  %v8092_v10 = vadd.f32 %v1149_v2, %v1026_v55  ;;  %v1595_v21 = vld [vmem:[%s9704_s4 + $0x98] sm:$0xff]  ;;  %v1114_v30 = vpop.permute.xlu1 %1113  ;;  %v6818_v56 = vpack.c.bf16 %v1657_v42, %v1656_v41 }
 0x127   : > { %v8031_v26 = vpop.f32.mrb[13].mxu0  ;;  %6702 = vmatpush3.bf16.msra.mxu1 %v6701_v23  ;;  %5921 = vmatprep.mubr.msk.f32.mxu1 %vm7409_vm5, %v7410_v28  ;;  %v6798_v23 = vpack.c.bf16 %v1645_v13, %v1644_v12  ;;  %v6717_v32 = vpack.c.bf16 %v1595_v21, %v1594_v19  ;;  %v1599_v55 = vld [vmem:[%s9704_s4 + $0xb8] sm:$0x7f]  ;;  %v1661_v19 = vld [vmem:[%s9704_s4 + $0x2a8] sm:$0xff] }
 0x128   : > { %6703 = vmatprep.subr.bf16.mxu1 %v7407_v6  ;;  %7266 = vpow2.f32 %v1432_v39  ;;  %v1386_v25 = vmin.f32 %v8092_v10, 0.0  ;;  %v6801_v39 = vpack.c.bf16 %v1647_v53, %v1646_v45  ;;  %v1603_v45 = vld [vmem:[%s9704_s4 + $0xd8] sm:$0xff]  ;;  %vm1346_vm12 = vcmp.gt.f32.partialorder %v8092_v10, 0.0 }
 0x129   : > { %7268 = vpow2.f32 %v1420_v3 }
 0x12a   : > { %v8041_v33 = vpop.f32.mrb[14].mxu0  ;;  %v1436_v40 = vmul.f32 1.442695, %v1386_v25 }
 0x12b   : > { %v8048_v36 = vpop.f32.mrb[15].mxu0  ;;  %6705 = vmatpush3.bf16.msra.mxu1 %v6704_v34 }
 0x12c   : > { %6706 = vmatprep.subr.bf16.mxu1 %v7407_v6  ;;  %7270 = vpow2.f32 %v1436_v40 }
 0x12e   : > { %v7263_v43 = vpop.eup %7262  ;;  %v8062_v44 = vpop.f32.mrb[16].mxu0 }
 0x12f   : > { %v5252_v49 = vadd.f32 -1.0, %v7263_v43  ;;  %v8066_v50 = vpop.f32.mrb[17].mxu0  ;;  %v7265_v59 = vpop.eup %7264  ;;  %6708 = vmatpush3.bf16.msra.mxu1 %v6707_v46 }
 0x130   : > { %6709 = vmatprep.subr.bf16.mxu1 %v7407_v6  ;;  %v5247_v11 = vadd.f32 -1.0, %v7265_v59  ;;  %v879_v43 = vpop.permute.xlu0 %878  ;;  %v1658_v59 = vld [vmem:[%s9704_s4 + $0x290] sm:$0xff] }
 0x131   : > { %v1542_v60 = vsel %vm1342_vm8, %v1302_v5, %v5252_v49  ;;  %v1593_v5 = vld [vmem:[%s9704_s4 + $0x88] sm:$0xff]  ;;  %v6720_v49 = vpack.c.bf16 %v1597_v38, %v1596_v37  ;;  %v1028_v57 = vmul.f32 %v879_v43, %v8031_v26  ;;  %v1663_v37 = vld [vmem:[%s9704_s4 + $0x2b8] sm:$0x7f]  ;;  %v1604_v43 = vld [vmem:[%s9704_s4 + $0xe0] sm:$0xff] }
 0x132   : > { %v8080_v61 = vpop.f32.mrb[18].mxu0  ;;  %6017 = vmatmul.mubr.msk.f32.vlgmr.msra.gmra.mrb[40].mxu0 %vm1896_vm6, %v1542_v60  ;;  %v6714_v16 = vpack.c.bf16 %v1593_v5, %v1592_v8  ;;  %v1537_v27 = vsel %vm1337_vm9, %v8014_v1, %v5247_v11  ;;  %v7267_v29 = vpop.eup %7266  ;;  %v8133_v1 = vadd.f32 %v1114_v30, %v1019_v17  ;;  %v1659_v60 = vld [vmem:[%s9704_s4 + $0x298] sm:$0xff]  ;;  %v1600_v11 = vld [vmem:[%s9704_s4 + $0xc0] sm:$0xff] }
 0x133   : > { %6793 = vmatpush3.bf16.msra.mxu0 %v6792_v54  ;;  %v8084_v4 = vpop.f32.mrb[19].mxu0  ;;  %6054 = vmatprep.mubr.msk.f32.mxu0 %vm7409_vm5, %v7410_v28  ;;  %v5254_v46 = vadd.f32 -1.0, %v7267_v29  ;;  %v1598_v54 = vld [vmem:[%s9704_s4 + $0xb0] sm:$0xff]  ;;  %v6821_v12 = vpack.c.bf16 %v1659_v60, %v1658_v59  ;;  %v1660_v17 = vld [vmem:[%s9704_s4 + $0x2a0] sm:$0xff] }
 0x134   : > { %6794 = vmatprep.subr.bf16.mxu0 %v7407_v6  ;;  %6712 = vmatpush3.bf16.msk.msra.mxu1 %vm7949_vm4, %v6710_v63  ;;  %v1379_v51 = vmin.f32 %v8133_v1, 0.0  ;;  %v7269_v63 = vpop.eup %7268  ;;  %v6723_v8 = vpack.c.bf16 %v1599_v55, %v1598_v54  ;;  %v1159_v26 = vpop.permute.xlu0 %1158  ;;  %v6824_v53 = vpack.c.bf16 %v1661_v19, %v1660_v17  ;;  %v1673_v54 = vld [vmem:[%s9704_s4 + $0x308] sm:$0xff]  ;;  %vm1339_vm13 = vcmp.gt.f32.partialorder %v8133_v1, 0.0 }
 0x135   : > { %6713 = vmatprep.subr.bf16.mxu1 %v7407_v6  ;;  %v1544_v2 = vsel %vm1344_vm10, %v8027_v20, %v5254_v46  ;;  %v1601_v20 = vld [vmem:[%s9704_s4 + $0xc8] sm:$0xff]  ;;  %v8187_v13 = vadd.f32 %v1159_v26, %v1028_v57 }
 0x136   : > { %v8105_v15 = vpop.f32.mrb[20].mxu0  ;;  %v1422_v5 = vmul.f32 1.442695, %v1379_v51  ;;  %v7271_v38 = vpop.eup %7270  ;;  %v1605_v46 = vld [vmem:[%s9704_s4 + $0xe8] sm:$0xff] }
 0x137   : > { %6796 = vmatpush3.bf16.msra.mxu0 %v6795_v9  ;;  %v8111_v18 = vpop.f32.mrb[21].mxu0  ;;  %5922 = vmatmul.mubr.msk.f32.vlgmr.msra.gmra.mrb[2].mxu1 %vm1896_vm6, %v1537_v27  ;;  %v1602_v27 = vld [vmem:[%s9704_s4 + $0xd0] sm:$0xff]  ;;  %v1388_v29 = vmin.f32 %v8187_v13, 0.0  ;;  %v6733_v59 = vpack.c.bf16 %v1605_v46, %v1604_v43  ;;  %vm1348_vm14 = vcmp.gt.f32.partialorder %v8187_v13, 0.0 }
 0x138   : > { %6797 = vmatprep.subr.bf16.mxu0 %v7407_v6  ;;  %6715 = vmatpush3.bf16.msra.mxu1 %v6714_v16  ;;  %v5248_v16 = vadd.f32 -1.0, %v7269_v63  ;;  %7272 = vpow2.f32 %v1422_v5  ;;  %v6730_v41 = vpack.c.bf16 %v1603_v45, %v1602_v27  ;;  %v889_v55 = vpop.permute.xlu0 %888  ;;  %v1608_v45 = vld [vmem:[%s9704_s4 + $0x100] sm:$0xff]  ;;  %v1610_v46 = vld [vmem:[%s9704_s4 + $0x110] sm:$0xff] }
 0x139   : > { %5940 = vmatprep.mubr.msk.f32.mxu1 %vm7409_vm5, %v7410_v28  ;;  %6716 = vmatprep.subr.bf16.mxu1 %v7407_v6  ;;  %v1440_v51 = vmul.f32 1.442695, %v1388_v29  ;;  %v1030_v5 = vmul.f32 %v889_v55, %v8048_v36 }
 0x13a   : > { %v8129_v31 = vpop.f32.mrb[22].mxu0  ;;  %v1538_v30 = vsel %vm1338_vm11, %v8045_v35, %v5248_v16 }
 0x13b   : > { %6799 = vmatpush3.bf16.msra.mxu0 %v6798_v23  ;;  %v8136_v34 = vpop.f32.mrb[23].mxu0  ;;  %v6727_v23 = vpack.c.bf16 %v1601_v20, %v1600_v11  ;;  %7274 = vpow2.f32 %v1440_v51  ;;  %v1674_v11 = vld [vmem:[%s9704_s4 + $0x310] sm:$0xff]  ;;  %v1675_v20 = vld [vmem:[%s9704_s4 + $0x318] sm:$0xff] }
 0x13c   : > { %6800 = vmatprep.subr.bf16.mxu0 %v7407_v6  ;;  %6718 = vmatpush3.bf16.msra.mxu1 %v6717_v32  ;;  %v1662_v32 = vld [vmem:[%s9704_s4 + $0x2b0] sm:$0xff]  ;;  %v1169_v36 = vpop.permute.xlu0 %1168 }
 0x13d   : > { %6719 = vmatprep.subr.bf16.mxu1 %v7407_v6  ;;  %v8281_v29 = vadd.f32 %v1169_v36, %v1030_v5 }
 0x13e   : > { %v8151_v48 = vpop.f32.mrb[24].mxu0 }
 0x13f   : > { %6803 = vmatpush3.bf16.msk.msra.mxu0 %vm7949_vm4, %v6801_v39  ;;  %v8157_v52 = vpop.f32.mrb[25].mxu0  ;;  %v1119_v39 = vpop.permute.xlu1 %1118  ;;  %vm1350_vm0 = vcmp.gt.f32.partialorder %v8281_v29, 0.0 }
 0x140   : > { %6817 = vmatprep.subr.bf16.mxu0 %v7407_v6  ;;  %6721 = vmatpush3.bf16.msra.mxu1 %v6720_v49  ;;  %v8227_v35 = vadd.f32 %v1119_v39, %v8010_v62  ;;  %v6827_v49 = vpack.c.bf16 %v1663_v37, %v1662_v32  ;;  %v1672_v62 = vld [vmem:[%s9704_s4 + $0x300] sm:$0xff]  ;;  %v1677_v37 = vld [vmem:[%s9704_s4 + $0x328] sm:$0xff] }
 0x141   : > { %6722 = vmatprep.subr.bf16.mxu1 %v7407_v6  ;;  %v6844_v26 = vpack.c.bf16 %v1673_v54, %v1672_v62  ;;  %v1676_v32 = vld [vmem:[%s9704_s4 + $0x320] sm:$0xff]  ;;  %v1390_v62 = vmin.f32 %v8281_v29, 0.0 }
 0x142   : > { %6055 = vmatmul.mubr.msk.f32.vlgmr.msra.gmra.mrb[42].mxu0 %vm1896_vm6, %v1544_v2  ;;  %v8176_v3 = vpop.f32.mrb[26].mxu0  ;;  %v1380_v60 = vmin.f32 %v8227_v35, 0.0  ;;  %v1606_v2 = vld [vmem:[%s9704_s4 + $0xf0] sm:$0xff]  ;;  %v6850_v51 = vpack.c.bf16 %v1677_v37, %v1676_v32  ;;  %v1691_v37 = vld [vmem:[%s9704_s4 + $0x398] sm:$0xff]  ;;  %vm1340_vm15 = vcmp.gt.f32.partialorder %v8227_v35, 0.0 }
 0x143   : > { %6819 = vmatpush3.bf16.msra.mxu0 %v6818_v56  ;;  %v8179_v9 = vpop.f32.mrb[27].mxu0  ;;  %6092 = vmatprep.mubr.msk.f32.mxu0 %vm7409_vm5, %v7410_v28  ;;  %v5256_v56 = vadd.f32 -1.0, %v7271_v38  ;;  %v1690_v32 = vld [vmem:[%s9704_s4 + $0x390] sm:$0xff] }
 0x144   : > { %6820 = vmatprep.subr.bf16.mxu0 %v7407_v6  ;;  %6725 = vmatpush3.bf16.msk.msra.mxu1 %vm7949_vm4, %v6723_v8  ;;  %v1607_v8 = vld [vmem:[%s9704_s4 + $0xf8] sm:$0x7f] }
 0x145   : > { %6726 = vmatprep.subr.bf16.mxu1 %v7407_v6  ;;  %v1546_v16 = vsel %vm1346_vm12, %v8092_v10, %v5256_v56  ;;  %v6736_v19 = vpack.c.bf16 %v1607_v8, %v1606_v2  ;;  %v1609_v10 = vld [vmem:[%s9704_s4 + $0x108] sm:$0xff]  ;;  %v1124_v56 = vpop.permute.xlu1 %1123  ;;  %v1612_v8 = vld [vmem:[%s9704_s4 + $0x120] sm:$0xff] }
 0x146   : > { %v8200_v21 = vpop.f32.mrb[28].mxu0  ;;  %v6740_v39 = vpack.c.bf16 %v1609_v10, %v1608_v45  ;;  %v1614_v45 = vld [vmem:[%s9704_s4 + $0x130] sm:$0xff]  ;;  %v1615_v10 = vld [vmem:[%s9704_s4 + $0x138] sm:$0x7f] }
 0x147   : > { %6822 = vmatpush3.bf16.msra.mxu0 %v6821_v12  ;;  %v8204_v25 = vpop.f32.mrb[29].mxu0  ;;  %5941 = vmatmul.mubr.msk.f32.vlgmr.msra.gmra.mrb[4].mxu1 %vm1896_vm6, %v1538_v30  ;;  %v7273_v12 = vpop.eup %7272 }
 0x148   : > { %6823 = vmatprep.subr.bf16.mxu0 %v7407_v6  ;;  %6728 = vmatpush3.bf16.msra.mxu1 %v6727_v23  ;;  %v1424_v23 = vmul.f32 1.442695, %v1380_v60  ;;  %v5249_v30 = vadd.f32 -1.0, %v7273_v12  ;;  %v7275_v55 = vpop.eup %7274  ;;  %v1689_v12 = vld [vmem:[%s9704_s4 + $0x388] sm:$0xff] }
 0x149   : > { %5959 = vmatprep.mubr.msk.f32.mxu1 %vm7409_vm5, %v7410_v28  ;;  %6729 = vmatprep.subr.bf16.mxu1 %v7407_v6 }
 0x14a   : > { %v8222_v40 = vpop.f32.mrb[30].mxu0  ;;  %7276 = vpow2.f32 %v1424_v23  ;;  %v1539_v54 = vsel %vm1339_vm13, %v8133_v1, %v5249_v30 }
 0x14b   : > { %6825 = vmatpush3.bf16.msra.mxu0 %v6824_v53  ;;  %v8230_v42 = vpop.f32.mrb[31].mxu0  ;;  %v6847_v53 = vpack.c.bf16 %v1675_v20, %v1674_v11  ;;  %v1444_v11 = vmul.f32 1.442695, %v1390_v62  ;;  %v1688_v20 = vld [vmem:[%s9704_s4 + $0x380] sm:$0xff]  ;;  %v1617_v62 = vld [vmem:[%s9704_s4 + $0x148] sm:$0xff] }
 0x14c   : > { %6826 = vmatprep.subr.bf16.mxu0 %v7407_v6  ;;  %6731 = vmatpush3.bf16.msra.mxu1 %v6730_v41  ;;  %v1021_v41 = vmul.f32 %v8008_v58, %v8004_v47  ;;  %v1678_v47 = vld [vmem:[%s9704_s4 + $0x330] sm:$0xff]  ;;  %v1679_v58 = vld [vmem:[%s9704_s4 + $0x338] sm:$0x7f] }
 0x14d   : > { %6732 = vmatprep.subr.bf16.mxu1 %v7407_v6  ;;  %v6853_v5 = vpack.c.bf16 %v1679_v58, %v1678_v47  ;;  %7278 = vpow2.f32 %v1444_v11  ;;  %v854_v47 = vpop.permute.xlu1 %853 }
 0x14e   : > { %v8245_v57 = vpop.f32.mrb[32].mxu0  ;;  %v8322_v1 = vadd.f32 %v1124_v56, %v1021_v41  ;;  %v1693_v56 = vld [vmem:[%s9704_s4 + $0x3a8] sm:$0xff] }
 0x14f   : > { %6829 = vmatpush3.bf16.msk.msra.mxu0 %vm7949_vm4, %v6827_v49  ;;  %v8251_v63 = vpop.f32.mrb[33].mxu0  ;;  %v1611_v49 = vld [vmem:[%s9704_s4 + $0x118] sm:$0xff] }
 0x150   : > { %6843 = vmatprep.subr.bf16.mxu0 %v7407_v6  ;;  %6734 = vmatpush3.bf16.msra.mxu1 %v6733_v59  ;;  %v6743_v60 = vpack.c.bf16 %v1611_v49, %v1610_v46  ;;  %v1381_v23 = vmin.f32 %v8322_v1, 0.0  ;;  %v6749_v46 = vpack.c.bf16 %v1615_v10, %v1614_v45  ;;  %v1620_v45 = vld [vmem:[%s9704_s4 + $0x160] sm:$0xff]  ;;  %v1621_v10 = vld [vmem:[%s9704_s4 + $0x168] sm:$0xff]  ;;  %vm1341_vm1 = vcmp.gt.f32.partialorder %v8322_v1, 0.0 }
 0x151   : > { %6735 = vmatprep.subr.bf16.mxu1 %v7407_v6 }
 0x152   : > { %6093 = vmatmul.mubr.msk.f32.vlgmr.msra.gmra.mrb[44].mxu0 %vm1896_vm6, %v1546_v16  ;;  %v8270_v17 = vpop.f32.mrb[34].mxu0  ;;  %v899_v16 = vpop.permute.xlu0 %898 }
 0x153   : > { %6845 = vmatpush3.bf16.msra.mxu0 %v6844_v26  ;;  %v8273_v27 = vpop.f32.mrb[35].mxu0  ;;  %6130 = vmatprep.mubr.msk.f32.mxu0 %vm7409_vm5, %v7410_v28  ;;  %v1613_v26 = vld [vmem:[%s9704_s4 + $0x128] sm:$0xff]  ;;  %v1032_v30 = vmul.f32 %v899_v16, %v8066_v50  ;;  %v1616_v50 = vld [vmem:[%s9704_s4 + $0x140] sm:$0xff]  ;;  %v1695_v16 = vld [vmem:[%s9704_s4 + $0x3b8] sm:$0x7f] }
 0x154   : > { %6846 = vmatprep.subr.bf16.mxu0 %v7407_v6  ;;  %6738 = vmatpush3.bf16.msk.msra.mxu1 %vm7949_vm4, %v6736_v19  ;;  %v5258_v19 = vadd.f32 -1.0, %v7275_v55  ;;  %v6746_v36 = vpack.c.bf16 %v1613_v26, %v1612_v8  ;;  %v1692_v55 = vld [vmem:[%s9704_s4 + $0x3a0] sm:$0xff]  ;;  %v1023_v8 = vmul.f32 %v8012_v0, %v854_v47  ;;  %v1618_v26 = vld [vmem:[%s9704_s4 + $0x150] sm:$0xff] }
 0x155   : > { %6739 = vmatprep.subr.bf16.mxu1 %v7407_v6  ;;  %v6876_v11 = vpack.c.bf16 %v1693_v56, %v1692_v55  ;;  %v1694_v0 = vld [vmem:[%s9704_s4 + $0x3b0] sm:$0xff] }
 0x156   : > { %v8294_v38 = vpop.f32.mrb[36].mxu0  ;;  %v1548_v41 = vsel %vm1348_vm14, %v8187_v13, %v5258_v19  ;;  %v1179_v49 = vpop.permute.xlu0 %1178  ;;  %v1706_v47 = vld [vmem:[%s9704_s4 + $0x410] sm:$0xff] }
 0x157   : > { %6848 = vmatpush3.bf16.msra.mxu0 %v6847_v53  ;;  %v8300_v43 = vpop.f32.mrb[37].mxu0  ;;  %5960 = vmatmul.mubr.msk.f32.vlgmr.msra.gmra.mrb[6].mxu1 %vm1896_vm6, %v1539_v54  ;;  %v6870_v53 = vpack.c.bf16 %v1689_v12, %v1688_v20  ;;  %v6873_v54 = vpack.c.bf16 %v1691_v37, %v1690_v32  ;;  %v8368_v13 = vadd.f32 %v1179_v49, %v1032_v30  ;;  %v1704_v32 = vld [vmem:[%s9704_s4 + $0x400] sm:$0xff]  ;;  %v1705_v37 = vld [vmem:[%s9704_s4 + $0x408] sm:$0xff] }
 0x158   : > { %6849 = vmatprep.subr.bf16.mxu0 %v7407_v6  ;;  %6741 = vmatpush3.bf16.msra.mxu1 %v6740_v39  ;;  %v7277_v39 = vpop.eup %7276 }
 0x159   : > { %5978 = vmatprep.mubr.msk.f32.mxu1 %vm7409_vm5, %v7410_v28  ;;  %6742 = vmatprep.subr.bf16.mxu1 %v7407_v6  ;;  %v5250_v58 = vadd.f32 -1.0, %v7277_v39  ;;  %v1392_v20 = vmin.f32 %v8368_v13, 0.0  ;;  %v7279_v19 = vpop.eup %7278  ;;  %vm1352_vm2 = vcmp.gt.f32.partialorder %v8368_v13, 0.0 }
 0x15a   : > { %v8318_v59 = vpop.f32.mrb[38].mxu0  ;;  %v909_v39 = vpop.permute.xlu0 %908 }
 0x15b   : > { %6851 = vmatpush3.bf16.msra.mxu0 %v6850_v51  ;;  %v8325_v2 = vpop.f32.mrb[39].mxu0  ;;  %v1426_v51 = vmul.f32 1.442695, %v1381_v23  ;;  %v1540_v12 = vsel %vm1340_vm15, %v8227_v35, %v5250_v58  ;;  %v1448_v30 = vmul.f32 1.442695, %v1392_v20  ;;  %v1707_v58 = vld [vmem:[%s9704_s4 + $0x418] sm:$0xff] }
 0x15c   : > { %6852 = vmatprep.subr.bf16.mxu0 %v7407_v6  ;;  %6744 = vmatpush3.bf16.msra.mxu1 %v6743_v60  ;;  %v6753_v60 = vpack.c.bf16 %v1617_v62, %v1616_v50  ;;  %v1623_v50 = vld [vmem:[%s9704_s4 + $0x178] sm:$0x7f]  ;;  %v6896_v62 = vpack.c.bf16 %v1705_v37, %v1704_v32 }
 0x15d   : > { %6745 = vmatprep.subr.bf16.mxu1 %v7407_v6  ;;  %7280 = vpow2.f32 %v1426_v51  ;;  %v1622_v51 = vld [vmem:[%s9704_s4 + $0x170] sm:$0xff]  ;;  %v1711_v32 = vld [vmem:[%s9704_s4 + $0x438] sm:$0x7f] }
 0x15e   : > { %7282 = vpow2.f32 %v1448_v30 }
 0x15f   : > { %6855 = vmatpush3.bf16.msk.msra.mxu0 %vm7949_vm4, %v6853_v5  ;;  %v1619_v5 = vld [vmem:[%s9704_s4 + $0x158] sm:$0xff] }
 0x160   : > { %6869 = vmatprep.subr.bf16.mxu0 %v7407_v6  ;;  %6747 = vmatpush3.bf16.msra.mxu1 %v6746_v36  ;;  %v1134_v36 = vpop.permute.xlu1 %1133  ;;  %v6756_v23 = vpack.c.bf16 %v1619_v5, %v1618_v26  ;;  %v1633_v5 = vld [vmem:[%s9704_s4 + $0x1c8] sm:$0xff] }
 0x161   : > { %6748 = vmatprep.subr.bf16.mxu1 %v7407_v6  ;;  %v8402_v35 = vadd.f32 %v1134_v36, %v1023_v8  ;;  %v1189_v8 = vpop.permute.xlu0 %1188 }
 0x162   : > { %6131 = vmatmul.mubr.msk.f32.vlgmr.msra.gmra.mrb[46].mxu0 %vm1896_vm6, %v1548_v41  ;;  %v5260_v41 = vadd.f32 -1.0, %v7279_v19 }
 0x163   : > { %6871 = vmatpush3.bf16.msra.mxu0 %v6870_v53  ;;  %6168 = vmatprep.mubr.msk.f32.mxu0 %vm7409_vm5, %v7410_v28  ;;  %v6879_v53 = vpack.c.bf16 %v1695_v16, %v1694_v0  ;;  %v1383_v49 = vmin.f32 %v8402_v35, 0.0  ;;  %v1708_v0 = vld [vmem:[%s9704_s4 + $0x420] sm:$0xff]  ;;  %v1709_v16 = vld [vmem:[%s9704_s4 + $0x428] sm:$0xff]  ;;  %vm1343_vm3 = vcmp.gt.f32.partialorder %v8402_v35, 0.0 }
 0x164   : > { %6872 = vmatprep.subr.bf16.mxu0 %v7407_v6  ;;  %6751 = vmatpush3.bf16.msk.msra.mxu1 %vm7949_vm4, %v6749_v46  ;;  %v6759_v46 = vpack.c.bf16 %v1621_v10, %v1620_v45  ;;  %v1550_v56 = vsel %vm1350_vm0, %v8281_v29, %v5260_v41  ;;  %v864_v20 = vpop.permute.xlu1 %863  ;;  %v1635_v45 = vld [vmem:[%s9704_s4 + $0x1d8] sm:$0xff]  ;;  %v6902_v10 = vpack.c.bf16 %v1709_v16, %v1708_v0 }
 0x165   : > { %6752 = vmatprep.subr.bf16.mxu1 %v7407_v6  ;;  %v1430_v26 = vmul.f32 1.442695, %v1383_v49  ;;  %v1025_v36 = vmul.f32 %v8016_v7, %v864_v20  ;;  %v1710_v7 = vld [vmem:[%s9704_s4 + $0x430] sm:$0xff]  ;;  %v1637_v49 = vld [vmem:[%s9704_s4 + $0x1e8] sm:$0xff] }
 0x167   : > { %6874 = vmatpush3.bf16.msra.mxu0 %v6873_v54  ;;  %5979 = vmatmul.mubr.msk.f32.vlgmr.msra.gmra.mrb[8].mxu1 %vm1896_vm6, %v1540_v12  ;;  %v1034_v54 = vmul.f32 %v909_v39, %v8084_v4  ;;  %v7281_v55 = vpop.eup %7280  ;;  %v1632_v4 = vld [vmem:[%s9704_s4 + $0x1c0] sm:$0xff]  ;;  %7284 = vpow2.f32 %v1430_v26 }
 0x168   : > { %6875 = vmatprep.subr.bf16.mxu0 %v7407_v6  ;;  %6754 = vmatpush3.bf16.msra.mxu1 %v6753_v60  ;;  %v6762_v60 = vpack.c.bf16 %v1623_v50, %v1622_v51  ;;  %v5251_v12 = vadd.f32 -1.0, %v7281_v55  ;;  %v6779_v19 = vpack.c.bf16 %v1633_v5, %v1632_v4  ;;  %v7283_v37 = vpop.eup %7282  ;;  %v1144_v39 = vpop.permute.xlu1 %1143  ;;  %v6905_v51 = vpack.c.bf16 %v1711_v32, %v1710_v7  ;;  %v1722_v5 = vld [vmem:[%s9704_s4 + $0x490] sm:$0xff] }
 0x169   : > { %5997 = vmatprep.mubr.msk.f32.mxu1 %vm7409_vm5, %v7410_v28  ;;  %6755 = vmatprep.subr.bf16.mxu1 %v7407_v6  ;;  %v8446_v29 = vadd.f32 %v1189_v8, %v1034_v54  ;;  %v1721_v54 = vld [vmem:[%s9704_s4 + $0x488] sm:$0xff]  ;;  %v1639_v8 = vld [vmem:[%s9704_s4 + $0x1f8] sm:$0x7f] }
 0x16a   : > { %v1541_v30 = vsel %vm1341_vm1, %v8322_v1, %v5251_v12  ;;  %v8480_v1 = vadd.f32 %v1144_v39, %v1025_v36  ;;  %v1649_v36 = vld [vmem:[%s9704_s4 + $0x248] sm:$0xff]  ;;  %v1651_v39 = vld [vmem:[%s9704_s4 + $0x258] sm:$0xff] }
 0x16b   : > { %6877 = vmatpush3.bf16.msra.mxu0 %v6876_v11  ;;  %v6899_v11 = vpack.c.bf16 %v1707_v58, %v1706_v47  ;;  %v919_v47 = vpop.permute.xlu0 %918  ;;  %v5262_v58 = vadd.f32 -1.0, %v7283_v37  ;;  %v1650_v37 = vld [vmem:[%s9704_s4 + $0x250] sm:$0xff]  ;;  %vm1354_vm7 = vcmp.gt.f32.partialorder %v8446_v29, 0.0 }
 0x16c   : > { %6878 = vmatprep.subr.bf16.mxu0 %v7407_v6  ;;  %6757 = vmatpush3.bf16.msra.mxu1 %v6756_v23  ;;  %v1634_v23 = vld [vmem:[%s9704_s4 + $0x1d0] sm:$0xff]  ;;  %v1036_v4 = vmul.f32 %v919_v47, %v8111_v18  ;;  %v1648_v18 = vld [vmem:[%s9704_s4 + $0x240] sm:$0xff]  ;;  %vm1345_vm8 = vcmp.gt.f32.partialorder %v8480_v1, 0.0 }
 0x16d   : > { %6758 = vmatprep.subr.bf16.mxu1 %v7407_v6  ;;  %v6782_v41 = vpack.c.bf16 %v1635_v45, %v1634_v23  ;;  %v1552_v12 = vsel %vm1352_vm2, %v8368_v13, %v5262_v58  ;;  %v874_v45 = vpop.permute.xlu1 %873  ;;  %v6805_v7 = vpack.c.bf16 %v1649_v36, %v1648_v18  ;;  %v1652_v47 = vld [vmem:[%s9704_s4 + $0x260] sm:$0xff]  ;;  %v1653_v58 = vld [vmem:[%s9704_s4 + $0x268] sm:$0xff]  ;;  %v1739_v18 = vld [vmem:[%s9704_s4 + $0x518] sm:$0xff] }
 0x16e   : > { %v1027_v32 = vmul.f32 %v8019_v14, %v874_v45  ;;  %v1726_v14 = vld [vmem:[%s9704_s4 + $0x4b0] sm:$0xff] }
 0x16f   : > { %6881 = vmatpush3.bf16.msk.msra.mxu0 %vm7949_vm4, %v6879_v53  ;;  %v1394_v53 = vmin.f32 %v8446_v29, 0.0  ;;  %v1199_v16 = vpop.permute.xlu0 %1198 }
 0x170   : > { %6895 = vmatprep.subr.bf16.mxu0 %v7407_v6  ;;  %6760 = vmatpush3.bf16.msra.mxu1 %v6759_v46  ;;  %v1636_v46 = vld [vmem:[%s9704_s4 + $0x1e0] sm:$0xff]  ;;  %v8524_v13 = vadd.f32 %v1199_v16, %v1036_v4 }
 0x171   : > { %6761 = vmatprep.subr.bf16.mxu1 %v7407_v6  ;;  %v1452_v50 = vmul.f32 1.442695, %v1394_v53  ;;  %v6785_v55 = vpack.c.bf16 %v1637_v49, %v1636_v46  ;;  %v7285_v20 = vpop.eup %7284  ;;  %v1724_v53 = vld [vmem:[%s9704_s4 + $0x4a0] sm:$0xff] }
 0x172   : > { %6169 = vmatmul.mubr.msk.f32.vlgmr.msra.gmra.mrb[48].mxu0 %vm1896_vm6, %v1550_v56  ;;  %v1385_v56 = vmin.f32 %v8480_v1, 0.0  ;;  %v1396_v46 = vmin.f32 %v8524_v13, 0.0  ;;  %vm1356_vm9 = vcmp.gt.f32.partialorder %v8524_v13, 0.0 }
 0x173   : > { %6897 = vmatpush3.bf16.msra.mxu0 %v6896_v62  ;;  %6206 = vmatprep.mubr.msk.f32.mxu0 %vm7409_vm5, %v7410_v28  ;;  %v1720_v62 = vld [vmem:[%s9704_s4 + $0x480] sm:$0xff]  ;;  %7286 = vpow2.f32 %v1452_v50 }
 0x174   : > { %6898 = vmatprep.subr.bf16.mxu0 %v7407_v6  ;;  %6764 = vmatpush3.bf16.msk.msra.mxu1 %vm7949_vm4, %v6762_v60  ;;  %v1638_v60 = vld [vmem:[%s9704_s4 + $0x1f0] sm:$0xff]  ;;  %v6922_v26 = vpack.c.bf16 %v1721_v54, %v1720_v62  ;;  %v1154_v62 = vpop.permute.xlu1 %1153  ;;  %v6808_v54 = vpack.c.bf16 %v1651_v39, %v1650_v37  ;;  %v1740_v39 = vld [vmem:[%s9704_s4 + $0x520] sm:$0xff] }
 0x175   : > { %6778 = vmatprep.subr.bf16.mxu1 %v7407_v6  ;;  %v6788_v0 = vpack.c.bf16 %v1639_v8, %v1638_v60  ;;  %v1736_v60 = vld [vmem:[%s9704_s4 + $0x500] sm:$0xff]  ;;  %v1737_v8 = vld [vmem:[%s9704_s4 + $0x508] sm:$0xff] }
 0x177   : > { %6900 = vmatpush3.bf16.msra.mxu0 %v6899_v11  ;;  %5998 = vmatmul.mubr.msk.f32.vlgmr.msra.gmra.mrb[10].mxu1 %vm1896_vm6, %v1541_v30  ;;  %v1723_v11 = vld [vmem:[%s9704_s4 + $0x498] sm:$0xff]  ;;  %v1725_v30 = vld [vmem:[%s9704_s4 + $0x4a8] sm:$0xff] }
 0x178   : > { %6901 = vmatprep.subr.bf16.mxu0 %v7407_v6  ;;  %6780 = vmatpush3.bf16.msra.mxu1 %v6779_v19  ;;  %v1434_v19 = vmul.f32 1.442695, %v1385_v56  ;;  %v6925_v23 = vpack.c.bf16 %v1723_v11, %v1722_v5  ;;  %v1456_v56 = vmul.f32 1.442695, %v1396_v46  ;;  %v6811_v5 = vpack.c.bf16 %v1653_v58, %v1652_v47  ;;  %v1743_v47 = vld [vmem:[%s9704_s4 + $0x538] sm:$0x7f] }
 0x179   : > { %6035 = vmatprep.mubr.msk.f32.mxu1 %vm7409_vm5, %v7410_v28  ;;  %6781 = vmatprep.subr.bf16.mxu1 %v7407_v6 }
 0x17a   : > { %7288 = vpow2.f32 %v1434_v19  ;;  %v1738_v19 = vld [vmem:[%s9704_s4 + $0x510] sm:$0xff] }
 0x17b   : > { %6903 = vmatpush3.bf16.msra.mxu0 %v6902_v10  ;;  %v5253_v10 = vadd.f32 -1.0, %v7285_v20  ;;  %v1654_v20 = vld [vmem:[%s9704_s4 + $0x270] sm:$0xff]  ;;  %7290 = vpow2.f32 %v1456_v56 }
 0x17c   : > { %6904 = vmatprep.subr.bf16.mxu0 %v7407_v6  ;;  %6783 = vmatpush3.bf16.msra.mxu1 %v6782_v41  ;;  %v6928_v41 = vpack.c.bf16 %v1725_v30, %v1724_v53  ;;  %v1665_v30 = vld [vmem:[%s9704_s4 + $0x2c8] sm:$0xff] }
 0x17d   : > { %6784 = vmatprep.subr.bf16.mxu1 %v7407_v6  ;;  %v1543_v49 = vsel %vm1343_vm3, %v8402_v35, %v5253_v10  ;;  %v7287_v50 = vpop.eup %7286  ;;  %v8558_v35 = vadd.f32 %v1154_v62, %v1027_v32  ;;  %v884_v32 = vpop.permute.xlu1 %883 }
 0x17e   : > { %v5264_v4 = vadd.f32 -1.0, %v7287_v50 }
 0x17f   : > { %6907 = vmatpush3.bf16.msk.msra.mxu0 %vm7949_vm4, %v6905_v51  ;;  %v1727_v51 = vld [vmem:[%s9704_s4 + $0x4b8] sm:$0x7f]  ;;  %v1387_v11 = vmin.f32 %v8558_v35, 0.0  ;;  %vm1347_vm10 = vcmp.gt.f32.partialorder %v8558_v35, 0.0 }
 0x180   : > { %6921 = vmatprep.subr.bf16.mxu0 %v7407_v6  ;;  %6786 = vmatpush3.bf16.msra.mxu1 %v6785_v55  ;;  %v6931_v55 = vpack.c.bf16 %v1727_v51, %v1726_v14  ;;  %v1666_v14 = vld [vmem:[%s9704_s4 + $0x2d0] sm:$0xff]  ;;  %v1667_v51 = vld [vmem:[%s9704_s4 + $0x2d8] sm:$0xff] }
 0x181   : > { %6787 = vmatprep.subr.bf16.mxu1 %v7407_v6  ;;  %v1438_v53 = vmul.f32 1.442695, %v1387_v11  ;;  %v6834_v56 = vpack.c.bf16 %v1667_v51, %v1666_v14  ;;  %v1753_v11 = vld [vmem:[%s9704_s4 + $0x588] sm:$0xff] }
 0x182   : > { %6207 = vmatmul.mubr.msk.f32.vlgmr.msra.gmra.mrb[50].mxu0 %vm1896_vm6, %v1552_v12  ;;  %v1655_v12 = vld [vmem:[%s9704_s4 + $0x278] sm:$0x7f]  ;;  %v1757_v14 = vld [vmem:[%s9704_s4 + $0x5a8] sm:$0xff] }
 0x183   : > { %6923 = vmatpush3.bf16.msra.mxu0 %v6922_v26  ;;  %6244 = vmatprep.mubr.msk.f32.mxu0 %vm7409_vm5, %v7410_v28  ;;  %v929_v26 = vpop.permute.xlu0 %928  ;;  %v6814_v45 = vpack.c.bf16 %v1655_v12, %v1654_v20  ;;  %7292 = vpow2.f32 %v1438_v53 }
 0x184   : > { %6924 = vmatprep.subr.bf16.mxu0 %v7407_v6  ;;  %6790 = vmatpush3.bf16.msk.msra.mxu1 %vm7949_vm4, %v6788_v0  ;;  %v6948_v0 = vpack.c.bf16 %v1737_v8, %v1736_v60  ;;  %v1038_v16 = vmul.f32 %v929_v26, %v8136_v34  ;;  %v7289_v36 = vpop.eup %7288  ;;  %v1664_v34 = vld [vmem:[%s9704_s4 + $0x2c0] sm:$0xff]  ;;  %v1669_v8 = vld [vmem:[%s9704_s4 + $0x2e8] sm:$0xff] }
 0x185   : > { %6804 = vmatprep.subr.bf16.mxu1 %v7407_v6  ;;  %v5255_v37 = vadd.f32 -1.0, %v7289_v36  ;;  %v6831_v46 = vpack.c.bf16 %v1665_v30, %v1664_v34  ;;  %v7291_v58 = vpop.eup %7290  ;;  %v1668_v60 = vld [vmem:[%s9704_s4 + $0x2e0] sm:$0xff] }
 0x186   : > { %v5266_v12 = vadd.f32 -1.0, %v7291_v58 }
 0x187   : > { %6926 = vmatpush3.bf16.msra.mxu0 %v6925_v23  ;;  %6036 = vmatmul.mubr.msk.f32.vlgmr.msra.gmra.mrb[12].mxu1 %vm1896_vm6, %v1543_v49  ;;  %v1554_v23 = vsel %vm1354_vm7, %v8446_v29, %v5264_v4  ;;  %v1209_v10 = vpop.permute.xlu0 %1208  ;;  %v1029_v49 = vmul.f32 %v8029_v22, %v884_v32  ;;  %v1742_v22 = vld [vmem:[%s9704_s4 + $0x530] sm:$0xff] }
 0x188   : > { %6927 = vmatprep.subr.bf16.mxu0 %v7407_v6  ;;  %6806 = vmatpush3.bf16.msra.mxu1 %v6805_v7  ;;  %v6951_v7 = vpack.c.bf16 %v1739_v18, %v1738_v19  ;;  %v8602_v29 = vadd.f32 %v1209_v10, %v1038_v16  ;;  %v6957_v26 = vpack.c.bf16 %v1743_v47, %v1742_v22  ;;  %v1670_v19 = vld [vmem:[%s9704_s4 + $0x2f0] sm:$0xff]  ;;  %v1671_v18 = vld [vmem:[%s9704_s4 + $0x2f8] sm:$0x7f] }
 0x189   : > { %6073 = vmatprep.mubr.msk.f32.mxu1 %vm7409_vm5, %v7410_v28  ;;  %6807 = vmatprep.subr.bf16.mxu1 %v7407_v6  ;;  %v1755_v10 = vld [vmem:[%s9704_s4 + $0x598] sm:$0xff]  ;;  %v1556_v34 = vsel %vm1356_vm9, %v8524_v13, %v5266_v12  ;;  %v6840_v30 = vpack.c.bf16 %v1671_v18, %v1670_v19  ;;  %v1769_v12 = vld [vmem:[%s9704_s4 + $0x608] sm:$0xff] }
 0x18a   : > { %v1398_v62 = vmin.f32 %v8602_v29, 0.0  ;;  %vm1358_vm11 = vcmp.gt.f32.partialorder %v8602_v29, 0.0 }
 0x18b   : > { %6929 = vmatpush3.bf16.msra.mxu0 %v6928_v41  ;;  %v1741_v41 = vld [vmem:[%s9704_s4 + $0x528] sm:$0xff]  ;;  %v939_v20 = vpop.permute.xlu0 %938 }
 0x18c   : > { %6930 = vmatprep.subr.bf16.mxu0 %v7407_v6  ;;  %6809 = vmatpush3.bf16.msra.mxu1 %v6808_v54  ;;  %v6954_v50 = vpack.c.bf16 %v1741_v41, %v1740_v39  ;;  %v1545_v54 = vsel %vm1345_vm8, %v8480_v1, %v5255_v37  ;;  %v1460_v4 = vmul.f32 1.442695, %v1398_v62  ;;  %v1681_v37 = vld [vmem:[%s9704_s4 + $0x348] sm:$0xff]  ;;  %v1682_v62 = vld [vmem:[%s9704_s4 + $0x350] sm:$0xff] }
 0x18d   : > { %6810 = vmatprep.subr.bf16.mxu1 %v7407_v6  ;;  %v7293_v53 = vpop.eup %7292 }
 0x18e   : > { %7294 = vpow2.f32 %v1460_v4  ;;  %v1685_v4 = vld [vmem:[%s9704_s4 + $0x368] sm:$0xff] }
 0x18f   : > { %6933 = vmatpush3.bf16.msk.msra.mxu0 %vm7949_vm4, %v6931_v55  ;;  %v1164_v55 = vpop.permute.xlu1 %1163 }
 0x190   : > { %6947 = vmatprep.subr.bf16.mxu0 %v7407_v6  ;;  %6812 = vmatpush3.bf16.msra.mxu1 %v6811_v5  ;;  %v8636_v1 = vadd.f32 %v1164_v55, %v1029_v49  ;;  %v1752_v5 = vld [vmem:[%s9704_s4 + $0x580] sm:$0xff]  ;;  %v1759_v55 = vld [vmem:[%s9704_s4 + $0x5b8] sm:$0x7f] }
 0x191   : > { %6813 = vmatprep.subr.bf16.mxu1 %v7407_v6  ;;  %v6974_v36 = vpack.c.bf16 %v1753_v11, %v1752_v5  ;;  %v1756_v49 = vld [vmem:[%s9704_s4 + $0x5a0] sm:$0xff] }
 0x192   : > { %6245 = vmatmul.mubr.msk.f32.vlgmr.msra.gmra.mrb[52].mxu0 %vm1896_vm6, %v1554_v23  ;;  %v1389_v16 = vmin.f32 %v8636_v1, 0.0  ;;  %v1040_v23 = vmul.f32 %v939_v20, %v8157_v52  ;;  %v1680_v52 = vld [vmem:[%s9704_s4 + $0x340] sm:$0xff]  ;;  %v6980_v22 = vpack.c.bf16 %v1757_v14, %v1756_v49  ;;  %vm1349_vm12 = vcmp.gt.f32.partialorder %v8636_v1, 0.0 }
 0x193   : > { %6949 = vmatpush3.bf16.msra.mxu0 %v6948_v0  ;;  %6282 = vmatprep.mubr.msk.f32.mxu0 %vm7409_vm5, %v7410_v28  ;;  %v6837_v0 = vpack.c.bf16 %v1669_v8, %v1668_v60  ;;  %v894_v41 = vpop.permute.xlu1 %893  ;;  %v6857_v51 = vpack.c.bf16 %v1681_v37, %v1680_v52  ;;  %v1768_v20 = vld [vmem:[%s9704_s4 + $0x600] sm:$0xff] }
 0x194   : > { %6950 = vmatprep.subr.bf16.mxu0 %v7407_v6  ;;  %6816 = vmatpush3.bf16.msk.msra.mxu1 %vm7949_vm4, %v6814_v45  ;;  %v1754_v45 = vld [vmem:[%s9704_s4 + $0x590] sm:$0xff]  ;;  %v1442_v32 = vmul.f32 1.442695, %v1389_v16  ;;  %v1772_v14 = vld [vmem:[%s9704_s4 + $0x620] sm:$0xff] }
 0x195   : > { %6830 = vmatprep.subr.bf16.mxu1 %v7407_v6  ;;  %v6977_v39 = vpack.c.bf16 %v1755_v10, %v1754_v45  ;;  %v7000_v45 = vpack.c.bf16 %v1769_v12, %v1768_v20  ;;  %v1784_v20 = vld [vmem:[%s9704_s4 + $0x680] sm:$0xff]  ;;  %v1785_v12 = vld [vmem:[%s9704_s4 + $0x688] sm:$0xff] }
 0x196   : > { %7296 = vpow2.f32 %v1442_v32 }
 0x197   : > { %6952 = vmatpush3.bf16.msra.mxu0 %v6951_v7  ;;  %6074 = vmatmul.mubr.msk.f32.vlgmr.msra.gmra.mrb[14].mxu1 %vm1896_vm6, %v1545_v54  ;;  %v1219_v7 = vpop.permute.xlu0 %1218  ;;  %v1683_v54 = vld [vmem:[%s9704_s4 + $0x358] sm:$0xff]  ;;  %v1174_v60 = vpop.permute.xlu1 %1173 }
 0x198   : > { %6953 = vmatprep.subr.bf16.mxu0 %v7407_v6  ;;  %6832 = vmatpush3.bf16.msra.mxu1 %v6831_v46  ;;  %v8680_v13 = vadd.f32 %v1219_v7, %v1040_v23  ;;  %v5257_v46 = vadd.f32 -1.0, %v7293_v53  ;;  %v6860_v8 = vpack.c.bf16 %v1683_v54, %v1682_v62  ;;  %v1687_v23 = vld [vmem:[%s9704_s4 + $0x378] sm:$0x7f]  ;;  %v1770_v53 = vld [vmem:[%s9704_s4 + $0x610] sm:$0xff] }
 0x199   : > { %6111 = vmatprep.mubr.msk.f32.mxu1 %vm7409_vm5, %v7410_v28  ;;  %6833 = vmatprep.subr.bf16.mxu1 %v7407_v6  ;;  %v1698_v54 = vld [vmem:[%s9704_s4 + $0x3d0] sm:$0xff] }
 0x19a   : > { %v1400_v47 = vmin.f32 %v8680_v13, 0.0  ;;  %v1547_v58 = vsel %vm1347_vm10, %v8558_v35, %v5257_v46  ;;  %vm1360_vm13 = vcmp.gt.f32.partialorder %v8680_v13, 0.0  ;;  %vm4938_vm10 = vcmask 326656  }
 0x19b   : > { %6955 = vmatpush3.bf16.msra.mxu0 %v6954_v50  ;;  %v1031_v50 = vmul.f32 %v8041_v33, %v894_v41  ;;  %v1758_v33 = vld [vmem:[%s9704_s4 + $0x5b0] sm:$0xff]  ;;  %v904_v46 = vpop.permute.xlu1 %903 }
 0x19c   : > { %6956 = vmatprep.subr.bf16.mxu0 %v7407_v6  ;;  %6835 = vmatpush3.bf16.msra.mxu1 %v6834_v56  ;;  %v7295_v56 = vpop.eup %7294  ;;  %v6983_v5 = vpack.c.bf16 %v1759_v55, %v1758_v33  ;;  %v1464_v11 = vmul.f32 1.442695, %v1400_v47  ;;  %v1033_v62 = vmul.f32 %v8062_v44, %v904_v46  ;;  %v1774_v44 = vld [vmem:[%s9704_s4 + $0x630] sm:$0xff]  ;;  %v1775_v55 = vld [vmem:[%s9704_s4 + $0x638] sm:$0x7f] }
 0x19d   : > { %6836 = vmatprep.subr.bf16.mxu1 %v7407_v6  ;;  %v8714_v35 = vadd.f32 %v1174_v60, %v1031_v50  ;;  %v5268_v16 = vadd.f32 -1.0, %v7295_v56 }
 0x19e   : > { %7298 = vpow2.f32 %v1464_v11 }
 0x19f   : > { %6959 = vmatpush3.bf16.msk.msra.mxu0 %vm7949_vm4, %v6957_v26  ;;  %v1684_v26 = vld [vmem:[%s9704_s4 + $0x360] sm:$0xff]  ;;  %v1391_v18 = vmin.f32 %v8714_v35, 0.0  ;;  %v1558_v7 = vsel %vm1358_vm11, %v8602_v29, %v5268_v16  ;;  %v1184_v60 = vpop.permute.xlu1 %1183  ;;  %vm1351_vm14 = vcmp.gt.f32.partialorder %v8714_v35, 0.0 }
 0x1a0   : > { %6973 = vmatprep.subr.bf16.mxu0 %v7407_v6  ;;  %6838 = vmatpush3.bf16.msra.mxu1 %v6837_v0  ;;  %v949_v0 = vpop.permute.xlu0 %948  ;;  %v6863_v19 = vpack.c.bf16 %v1685_v4, %v1684_v26  ;;  %v1700_v26 = vld [vmem:[%s9704_s4 + $0x3e0] sm:$0xff]  ;;  %v1701_v4 = vld [vmem:[%s9704_s4 + $0x3e8] sm:$0xff] }
 0x1a1   : > { %6839 = vmatprep.subr.bf16.mxu1 %v7407_v6  ;;  %v1042_v10 = vmul.f32 %v949_v0, %v8179_v9  ;;  %v1446_v37 = vmul.f32 1.442695, %v1391_v18  ;;  %v1696_v9 = vld [vmem:[%s9704_s4 + $0x3c0] sm:$0xff] }
 0x1a2   : > { %6283 = vmatmul.mubr.msk.f32.vlgmr.msra.gmra.mrb[54].mxu0 %vm1896_vm6, %v1556_v34  ;;  %v1771_v34 = vld [vmem:[%s9704_s4 + $0x618] sm:$0xff] }
 0x1a3   : > { %6975 = vmatpush3.bf16.msra.mxu0 %v6974_v36  ;;  %6320 = vmatprep.mubr.msk.f32.mxu0 %vm7409_vm5, %v7410_v28  ;;  %v1686_v36 = vld [vmem:[%s9704_s4 + $0x370] sm:$0xff]  ;;  %v7003_v41 = vpack.c.bf16 %v1771_v34, %v1770_v53  ;;  %7300 = vpow2.f32 %v1446_v37  ;;  %v1787_v34 = vld [vmem:[%s9704_s4 + $0x698] sm:$0xff] }
 0x1a4   : > { %6976 = vmatprep.subr.bf16.mxu0 %v7407_v6  ;;  %6842 = vmatpush3.bf16.msk.msra.mxu1 %vm7949_vm4, %v6840_v30  ;;  %v7297_v30 = vpop.eup %7296  ;;  %v6866_v32 = vpack.c.bf16 %v1687_v23, %v1686_v36  ;;  %v1229_v52 = vpop.permute.xlu0 %1228  ;;  %v1702_v36 = vld [vmem:[%s9704_s4 + $0x3f0] sm:$0xff]  ;;  %v1703_v23 = vld [vmem:[%s9704_s4 + $0x3f8] sm:$0x7f] }
 0x1a5   : > { %6856 = vmatprep.subr.bf16.mxu1 %v7407_v6  ;;  %v8758_v29 = vadd.f32 %v1229_v52, %v1042_v10  ;;  %v5259_v49 = vadd.f32 -1.0, %v7297_v30  ;;  %v1786_v53 = vld [vmem:[%s9704_s4 + $0x690] sm:$0xff] }
 0x1a7   : > { %6978 = vmatpush3.bf16.msra.mxu0 %v6977_v39  ;;  %6112 = vmatmul.mubr.msk.f32.vlgmr.msra.gmra.mrb[16].mxu1 %vm1896_vm6, %v1547_v58  ;;  %v1697_v39 = vld [vmem:[%s9704_s4 + $0x3c8] sm:$0xff]  ;;  %v1402_v58 = vmin.f32 %v8758_v29, 0.0  ;;  %v1549_v33 = vsel %vm1349_vm12, %v8636_v1, %v5259_v49  ;;  %v8792_v1 = vadd.f32 %v1184_v60, %v1033_v62  ;;  %v1788_v49 = vld [vmem:[%s9704_s4 + $0x6a0] sm:$0xff]  ;;  %v1714_v62 = vld [vmem:[%s9704_s4 + $0x450] sm:$0xff]  ;;  %vm1362_vm15 = vcmp.gt.f32.partialorder %v8758_v29, 0.0 }
 0x1a8   : > { %6979 = vmatprep.subr.bf16.mxu0 %v7407_v6  ;;  %6858 = vmatpush3.bf16.msra.mxu1 %v6857_v51  ;;  %v1773_v51 = vld [vmem:[%s9704_s4 + $0x628] sm:$0xff]  ;;  %v6883_v50 = vpack.c.bf16 %v1697_v39, %v1696_v9  ;;  %v7299_v56 = vpop.eup %7298  ;;  %v959_v0 = vpop.permute.xlu0 %958  ;;  %v7029_v39 = vpack.c.bf16 %v1787_v34, %v1786_v53  ;;  %v1716_v60 = vld [vmem:[%s9704_s4 + $0x460] sm:$0xff] }
 0x1a9   : > { %6149 = vmatprep.mubr.msk.f32.mxu1 %vm7409_vm5, %v7410_v28  ;;  %6859 = vmatprep.subr.bf16.mxu1 %v7407_v6  ;;  %v7006_v47 = vpack.c.bf16 %v1773_v51, %v1772_v14  ;;  %v1468_v11 = vmul.f32 1.442695, %v1402_v58  ;;  %v5270_v16 = vadd.f32 -1.0, %v7299_v56  ;;  %v1393_v18 = vmin.f32 %v8792_v1, 0.0  ;;  %v1713_v9 = vld [vmem:[%s9704_s4 + $0x448] sm:$0xff] }
 0x1aa   : > { %v1044_v10 = vmul.f32 %v959_v0, %v8204_v25  ;;  %v1712_v25 = vld [vmem:[%s9704_s4 + $0x440] sm:$0xff]  ;;  %v1789_v14 = vld [vmem:[%s9704_s4 + $0x6a8] sm:$0xff]  ;;  %vm1353_vm0 = vcmp.gt.f32.partialorder %v8792_v1, 0.0 }
 0x1ab   : > { %6981 = vmatpush3.bf16.msra.mxu0 %v6980_v22  ;;  %v1699_v22 = vld [vmem:[%s9704_s4 + $0x3d8] sm:$0xff]  ;;  %7302 = vpow2.f32 %v1468_v11  ;;  %v1450_v37 = vmul.f32 1.442695, %v1393_v18  ;;  %v6909_v51 = vpack.c.bf16 %v1713_v9, %v1712_v25  ;;  %v1801_v11 = vld [vmem:[%s9704_s4 + $0x708] sm:$0xff] }
 0x1ac   : > { %6982 = vmatprep.subr.bf16.mxu0 %v7407_v6  ;;  %6861 = vmatpush3.bf16.msra.mxu1 %v6860_v8  ;;  %v6886_v8 = vpack.c.bf16 %v1699_v22, %v1698_v54  ;;  %v1239_v52 = vpop.permute.xlu0 %1238  ;;  %v1715_v54 = vld [vmem:[%s9704_s4 + $0x458] sm:$0xff]  ;;  %v7032_v22 = vpack.c.bf16 %v1789_v14, %v1788_v49  ;;  %v1730_v14 = vld [vmem:[%s9704_s4 + $0x4d0] sm:$0xff] }
 0x1ad   : > { %6862 = vmatprep.subr.bf16.mxu1 %v7407_v6  ;;  %v7301_v30 = vpop.eup %7300  ;;  %7304 = vpow2.f32 %v1450_v37  ;;  %v6912_v56 = vpack.c.bf16 %v1715_v54, %v1714_v62  ;;  %v1719_v18 = vld [vmem:[%s9704_s4 + $0x478] sm:$0x7f] }
 0x1ae   : > { %v5261_v46 = vadd.f32 -1.0, %v7301_v30 }
 0x1af   : > { %6985 = vmatpush3.bf16.msk.msra.mxu0 %vm7949_vm4, %v6983_v5  ;;  %v7009_v5 = vpack.c.bf16 %v1775_v55, %v1774_v44 }
 0x1b0   : > { %6999 = vmatprep.subr.bf16.mxu0 %v7407_v6  ;;  %6864 = vmatpush3.bf16.msra.mxu1 %v6863_v19  ;;  %v6889_v19 = vpack.c.bf16 %v1701_v4, %v1700_v26  ;;  %v1551_v58 = vsel %vm1351_vm14, %v8714_v35, %v5261_v46 }
 0x1b1   : > { %6865 = vmatprep.subr.bf16.mxu1 %v7407_v6 }
 0x1b2   : > { %6321 = vmatmul.mubr.msk.f32.vlgmr.msra.gmra.mrb[56].mxu0 %vm1896_vm6, %v1558_v7  ;;  %v1560_v7 = vsel %vm1360_vm13, %v8680_v13, %v5270_v16  ;;  %v8836_v13 = vadd.f32 %v1239_v52, %v1044_v10  ;;  %v1803_v10 = vld [vmem:[%s9704_s4 + $0x718] sm:$0xff]  ;;  %v1729_v52 = vld [vmem:[%s9704_s4 + $0x4c8] sm:$0xff] }
 0x1b3   : > { %7001 = vmatpush3.bf16.msra.mxu0 %v7000_v45  ;;  %6358 = vmatprep.mubr.msk.f32.mxu0 %vm7409_vm5, %v7410_v28  ;;  %v7026_v45 = vpack.c.bf16 %v1785_v12, %v1784_v20  ;;  %v969_v20 = vpop.permute.xlu0 %968 }
 0x1b4   : > { %7002 = vmatprep.subr.bf16.mxu0 %v7407_v6  ;;  %6868 = vmatpush3.bf16.msk.msra.mxu1 %vm7949_vm4, %v6866_v32  ;;  %v6892_v32 = vpack.c.bf16 %v1703_v23, %v1702_v36  ;;  %v1046_v23 = vmul.f32 %v969_v20, %v8230_v42  ;;  %v1728_v42 = vld [vmem:[%s9704_s4 + $0x4c0] sm:$0xff]  ;;  %v1734_v20 = vld [vmem:[%s9704_s4 + $0x4f0] sm:$0xff]  ;;  %vm1364_vm1 = vcmp.gt.f32.partialorder %v8836_v13, 0.0 }
 0x1b5   : > { %6882 = vmatprep.subr.bf16.mxu1 %v7407_v6  ;;  %v7303_v44 = vpop.eup %7302  ;;  %v6935_v46 = vpack.c.bf16 %v1729_v52, %v1728_v42  ;;  %v1820_v42 = vld [vmem:[%s9704_s4 + $0x7a0] sm:$0xff]  ;;  %v1821_v52 = vld [vmem:[%s9704_s4 + $0x7a8] sm:$0xff] }
 0x1b6   : > { %v5272_v12 = vadd.f32 -1.0, %v7303_v44  ;;  %v1733_v44 = vld [vmem:[%s9704_s4 + $0x4e8] sm:$0xff] }
 0x1b7   : > { %7004 = vmatpush3.bf16.msra.mxu0 %v7003_v41  ;;  %6150 = vmatmul.mubr.msk.f32.vlgmr.msra.gmra.mrb[18].mxu1 %vm1896_vm6, %v1549_v33  ;;  %v914_v41 = vpop.permute.xlu1 %913  ;;  %v1791_v33 = vld [vmem:[%s9704_s4 + $0x6b8] sm:$0x7f]  ;;  %v7305_v53 = vpop.eup %7304 }
 0x1b8   : > { %7005 = vmatprep.subr.bf16.mxu0 %v7407_v6  ;;  %6884 = vmatpush3.bf16.msra.mxu1 %v6883_v50  ;;  %v1035_v50 = vmul.f32 %v8080_v61, %v914_v41  ;;  %v1790_v61 = vld [vmem:[%s9704_s4 + $0x6b0] sm:$0xff]  ;;  %v1562_v34 = vsel %vm1362_vm15, %v8758_v29, %v5272_v12  ;;  %v5263_v9 = vadd.f32 -1.0, %v7305_v53  ;;  %v1805_v41 = vld [vmem:[%s9704_s4 + $0x728] sm:$0xff]  ;;  %v1735_v12 = vld [vmem:[%s9704_s4 + $0x4f8] sm:$0x7f] }
 0x1b9   : > { %6187 = vmatprep.mubr.msk.f32.mxu1 %vm7409_vm5, %v7410_v28  ;;  %6885 = vmatprep.subr.bf16.mxu1 %v7407_v6  ;;  %v7035_v26 = vpack.c.bf16 %v1791_v33, %v1790_v61  ;;  %v1732_v33 = vld [vmem:[%s9704_s4 + $0x4e0] sm:$0xff] }
 0x1ba   : > { %v1553_v54 = vsel %vm1353_vm0, %v8792_v1, %v5263_v9  ;;  %v1746_v9 = vld [vmem:[%s9704_s4 + $0x550] sm:$0xff] }
 0x1bb   : > { %7007 = vmatpush3.bf16.msra.mxu0 %v7006_v47  ;;  %v1404_v47 = vmin.f32 %v8836_v13, 0.0  ;;  %v1194_v55 = vpop.permute.xlu1 %1193 }
 0x1bc   : > { %7008 = vmatprep.subr.bf16.mxu0 %v7407_v6  ;;  %6887 = vmatpush3.bf16.msra.mxu1 %v6886_v8  ;;  %v8870_v35 = vadd.f32 %v1194_v55, %v1035_v50  ;;  %v1717_v8 = vld [vmem:[%s9704_s4 + $0x468] sm:$0xff] }
 0x1bd   : > { %6888 = vmatprep.subr.bf16.mxu1 %v7407_v6  ;;  %v1472_v4 = vmul.f32 1.442695, %v1404_v47  ;;  %v6915_v0 = vpack.c.bf16 %v1717_v8, %v1716_v60  ;;  %v1816_v60 = vld [vmem:[%s9704_s4 + $0x780] sm:$0xff]  ;;  %v1817_v8 = vld [vmem:[%s9704_s4 + $0x788] sm:$0xff] }
 0x1be   : > { %v1395_v16 = vmin.f32 %v8870_v35, 0.0  ;;  %vm1355_vm2 = vcmp.gt.f32.partialorder %v8870_v35, 0.0 }
 0x1bf   : > { %7011 = vmatpush3.bf16.msk.msra.mxu0 %vm7949_vm4, %v7009_v5  ;;  %v1800_v5 = vld [vmem:[%s9704_s4 + $0x700] sm:$0xff]  ;;  %7306 = vpow2.f32 %v1472_v4  ;;  %v924_v25 = vpop.permute.xlu1 %923 }
 0x1c0   : > { %7025 = vmatprep.subr.bf16.mxu0 %v7407_v6  ;;  %6890 = vmatpush3.bf16.msra.mxu1 %v6889_v19  ;;  %v1718_v19 = vld [vmem:[%s9704_s4 + $0x470] sm:$0xff]  ;;  %v7052_v36 = vpack.c.bf16 %v1801_v11, %v1800_v5  ;;  %v1037_v49 = vmul.f32 %v8105_v15, %v924_v25  ;;  %v6941_v5 = vpack.c.bf16 %v1733_v44, %v1732_v33 }
 0x1c1   : > { %6891 = vmatprep.subr.bf16.mxu1 %v7407_v6  ;;  %v6918_v30 = vpack.c.bf16 %v1719_v18, %v1718_v19  ;;  %v1806_v15 = vld [vmem:[%s9704_s4 + $0x730] sm:$0xff]  ;;  %v1819_v18 = vld [vmem:[%s9704_s4 + $0x798] sm:$0xff] }
 0x1c2   : > { %6359 = vmatmul.mubr.msk.f32.vlgmr.msra.gmra.mrb[58].mxu0 %vm1896_vm6, %v1560_v7  ;;  %v1249_v7 = vpop.permute.xlu0 %1248  ;;  %v1818_v19 = vld [vmem:[%s9704_s4 + $0x790] sm:$0xff] }
 0x1c3   : > { %7027 = vmatpush3.bf16.msra.mxu0 %v7026_v45  ;;  %6396 = vmatprep.mubr.msk.f32.mxu0 %vm7409_vm5, %v7410_v28  ;;  %v1802_v45 = vld [vmem:[%s9704_s4 + $0x710] sm:$0xff]  ;;  %v8914_v29 = vadd.f32 %v1249_v7, %v1046_v23 }
 0x1c4   : > { %7028 = vmatprep.subr.bf16.mxu0 %v7407_v6  ;;  %6894 = vmatpush3.bf16.msk.msra.mxu1 %vm7949_vm4, %v6892_v32  ;;  %v1454_v32 = vmul.f32 1.442695, %v1395_v16  ;;  %v7055_v37 = vpack.c.bf16 %v1803_v10, %v1802_v45  ;;  %v6944_v45 = vpack.c.bf16 %v1735_v12, %v1734_v20 }
 0x1c5   : > { %6908 = vmatprep.subr.bf16.mxu1 %v7407_v6  ;;  %v1406_v62 = vmin.f32 %v8914_v29, 0.0  ;;  %vm1366_vm3 = vcmp.gt.f32.partialorder %v8914_v29, 0.0 }
 0x1c6   : > { %7308 = vpow2.f32 %v1454_v32 }
 0x1c7   : > { %7030 = vmatpush3.bf16.msra.mxu0 %v7029_v39  ;;  %6188 = vmatmul.mubr.msk.f32.vlgmr.msra.gmra.mrb[20].mxu1 %vm1896_vm6, %v1551_v58  ;;  %v1804_v39 = vld [vmem:[%s9704_s4 + $0x720] sm:$0xff]  ;;  %v1204_v58 = vpop.permute.xlu1 %1203 }
 0x1c8   : > { %7031 = vmatprep.subr.bf16.mxu0 %v7407_v6  ;;  %6910 = vmatpush3.bf16.msra.mxu1 %v6909_v51  ;;  %v1731_v51 = vld [vmem:[%s9704_s4 + $0x4d8] sm:$0xff]  ;;  %v7058_v50 = vpack.c.bf16 %v1805_v41, %v1804_v39  ;;  %v8948_v1 = vadd.f32 %v1204_v58, %v1037_v49  ;;  %v7084_v41 = vpack.c.bf16 %v1821_v52, %v1820_v42  ;;  %v1832_v58 = vld [vmem:[%s9704_s4 + $0x800] sm:$0xff] }
 0x1c9   : > { %6225 = vmatprep.mubr.msk.f32.mxu1 %vm7409_vm5, %v7410_v28  ;;  %6911 = vmatprep.subr.bf16.mxu1 %v7407_v6  ;;  %v7307_v47 = vpop.eup %7306  ;;  %v6938_v61 = vpack.c.bf16 %v1731_v51, %v1730_v14  ;;  %v1747_v39 = vld [vmem:[%s9704_s4 + $0x558] sm:$0xff] }
 0x1ca   : > { %v5274_v4 = vadd.f32 -1.0, %v7307_v47  ;;  %v1397_v11 = vmin.f32 %v8948_v1, 0.0  ;;  %v1823_v14 = vld [vmem:[%s9704_s4 + $0x7b8] sm:$0x7f]  ;;  %vm1357_vm7 = vcmp.gt.f32.partialorder %v8948_v1, 0.0 }
 0x1cb   : > { %7033 = vmatpush3.bf16.msra.mxu0 %v7032_v22  ;;  %v1807_v22 = vld [vmem:[%s9704_s4 + $0x738] sm:$0x7f]  ;;  %v934_v7 = vpop.permute.xlu1 %933 }
 0x1cc   : > { %7034 = vmatprep.subr.bf16.mxu0 %v7407_v6  ;;  %6913 = vmatpush3.bf16.msra.mxu1 %v6912_v56  ;;  %v7061_v55 = vpack.c.bf16 %v1807_v22, %v1806_v15  ;;  %v1476_v56 = vmul.f32 1.442695, %v1406_v62  ;;  %v1564_v23 = vsel %vm1364_vm1, %v8836_v13, %v5274_v4  ;;  %v1458_v53 = vmul.f32 1.442695, %v1397_v11  ;;  %v1749_v15 = vld [vmem:[%s9704_s4 + $0x568] sm:$0xff]  ;;  %v1835_v11 = vld [vmem:[%s9704_s4 + $0x818] sm:$0xff] }
 0x1cd   : > { %6914 = vmatprep.subr.bf16.mxu1 %v7407_v6  ;;  %v1039_v25 = vmul.f32 %v8129_v31, %v934_v7  ;;  %v1822_v31 = vld [vmem:[%s9704_s4 + $0x7b0] sm:$0xff]  ;;  %v6964_v62 = vpack.c.bf16 %v1747_v39, %v1746_v9  ;;  %v1763_v7 = vld [vmem:[%s9704_s4 + $0x5d8] sm:$0xff] }
 0x1ce   : > { %7310 = vpow2.f32 %v1476_v56  ;;  %v7087_v22 = vpack.c.bf16 %v1823_v14, %v1822_v31 }
 0x1cf   : > { %7037 = vmatpush3.bf16.msk.msra.mxu0 %vm7949_vm4, %v7035_v26  ;;  %v979_v26 = vpop.permute.xlu0 %978  ;;  %7312 = vpow2.f32 %v1458_v53  ;;  %v1837_v53 = vld [vmem:[%s9704_s4 + $0x828] sm:$0xff] }
 0x1d0   : > { %7051 = vmatprep.subr.bf16.mxu0 %v7407_v6  ;;  %6916 = vmatpush3.bf16.msra.mxu1 %v6915_v0  ;;  %v7078_v0 = vpack.c.bf16 %v1817_v8, %v1816_v60  ;;  %v1048_v16 = vmul.f32 %v979_v26, %v8251_v63  ;;  %v1744_v63 = vld [vmem:[%s9704_s4 + $0x540] sm:$0xff]  ;;  %v1750_v60 = vld [vmem:[%s9704_s4 + $0x570] sm:$0xff]  ;;  %v1751_v8 = vld [vmem:[%s9704_s4 + $0x578] sm:$0x7f] }
 0x1d1   : > { %6917 = vmatprep.subr.bf16.mxu1 %v7407_v6 }
 0x1d2   : > { %6397 = vmatmul.mubr.msk.f32.vlgmr.msra.gmra.mrb[60].mxu0 %vm1896_vm6, %v1562_v34  ;;  %v1745_v34 = vld [vmem:[%s9704_s4 + $0x548] sm:$0xff] }
 0x1d3   : > { %7053 = vmatpush3.bf16.msra.mxu0 %v7052_v36  ;;  %6434 = vmatprep.mubr.msk.f32.mxu0 %vm7409_vm5, %v7410_v28  ;;  %v7309_v36 = vpop.eup %7308  ;;  %v1259_v10 = vpop.permute.xlu0 %1258 }
 0x1d4   : > { %7054 = vmatprep.subr.bf16.mxu0 %v7407_v6  ;;  %6920 = vmatpush3.bf16.msk.msra.mxu1 %vm7949_vm4, %v6918_v30  ;;  %v7081_v30 = vpack.c.bf16 %v1819_v18, %v1818_v19  ;;  %v8992_v13 = vadd.f32 %v1259_v10, %v1048_v16  ;;  %v5265_v32 = vadd.f32 -1.0, %v7309_v36  ;;  %v1761_v18 = vld [vmem:[%s9704_s4 + $0x5c8] sm:$0xff]  ;;  %v1836_v10 = vld [vmem:[%s9704_s4 + $0x820] sm:$0xff] }
 0x1d5   : > { %6934 = vmatprep.subr.bf16.mxu1 %v7407_v6 }
 0x1d6   : > { %v1555_v49 = vsel %vm1355_vm2, %v8870_v35, %v5265_v32  ;;  %v7110_v32 = vpack.c.bf16 %v1837_v53, %v1836_v10  ;;  %vm1368_vm8 = vcmp.gt.f32.partialorder %v8992_v13, 0.0  ;;  %v1779_v10 = vld [vmem:[%s9704_s4 + $0x658] sm:$0xff] }
 0x1d7   : > { %7056 = vmatpush3.bf16.msra.mxu0 %v7055_v37  ;;  %6226 = vmatmul.mubr.msk.f32.vlgmr.msra.gmra.mrb[22].mxu1 %vm1896_vm6, %v1553_v54  ;;  %v6961_v37 = vpack.c.bf16 %v1745_v34, %v1744_v63  ;;  %v1748_v54 = vld [vmem:[%s9704_s4 + $0x560] sm:$0xff]  ;;  %v989_v33 = vpop.permute.xlu0 %988 }
 0x1d8   : > { %7057 = vmatprep.subr.bf16.mxu0 %v7407_v6  ;;  %6936 = vmatpush3.bf16.msra.mxu1 %v6935_v46  ;;  %v1408_v46 = vmin.f32 %v8992_v13, 0.0  ;;  %v7311_v51 = vpop.eup %7310  ;;  %v1050_v4 = vmul.f32 %v989_v33, %v8273_v27  ;;  %v1760_v27 = vld [vmem:[%s9704_s4 + $0x5c0] sm:$0xff] }
 0x1d9   : > { %6263 = vmatprep.mubr.msk.f32.mxu1 %vm7409_vm5, %v7410_v28  ;;  %6937 = vmatprep.subr.bf16.mxu1 %v7407_v6  ;;  %v5276_v44 = vadd.f32 -1.0, %v7311_v51  ;;  %v7313_v20 = vpop.eup %7312  ;;  %v6987_v63 = vpack.c.bf16 %v1761_v18, %v1760_v27  ;;  %v1848_v51 = vld [vmem:[%s9704_s4 + $0x880] sm:$0xff] }
 0x1da   : > { %v1480_v47 = vmul.f32 1.442695, %v1408_v46  ;;  %v1765_v46 = vld [vmem:[%s9704_s4 + $0x5e8] sm:$0xff] }
 0x1db   : > { %7059 = vmatpush3.bf16.msra.mxu0 %v7058_v50  ;;  %v1214_v50 = vpop.permute.xlu1 %1213  ;;  %v1566_v12 = vsel %vm1366_vm3, %v8914_v29, %v5276_v44  ;;  %v1269_v16 = vpop.permute.xlu0 %1268 }
 0x1dc   : > { %7060 = vmatprep.subr.bf16.mxu0 %v7407_v6  ;;  %6939 = vmatpush3.bf16.msra.mxu1 %v6938_v61  ;;  %v9026_v35 = vadd.f32 %v1214_v50, %v1039_v25  ;;  %v1833_v61 = vld [vmem:[%s9704_s4 + $0x808] sm:$0xff]  ;;  %7314 = vpow2.f32 %v1480_v47  ;;  %v9070_v29 = vadd.f32 %v1269_v16, %v1050_v4  ;;  %v1852_v16 = vld [vmem:[%s9704_s4 + $0x8a0] sm:$0xff] }
 0x1dd   : > { %6940 = vmatprep.subr.bf16.mxu1 %v7407_v6  ;;  %v7104_v26 = vpack.c.bf16 %v1833_v61, %v1832_v58  ;;  %v1849_v50 = vld [vmem:[%s9704_s4 + $0x888] sm:$0xff]  ;;  %v1766_v58 = vld [vmem:[%s9704_s4 + $0x5f0] sm:$0xff]  ;;  %v1767_v61 = vld [vmem:[%s9704_s4 + $0x5f8] sm:$0x7f] }
 0x1de   : > { %v1399_v56 = vmin.f32 %v9026_v35, 0.0  ;;  %v1410_v42 = vmin.f32 %v9070_v29, 0.0  ;;  %v7130_v33 = vpack.c.bf16 %v1849_v50, %v1848_v51  ;;  %vm1359_vm9 = vcmp.gt.f32.partialorder %v9026_v35, 0.0 }
 0x1df   : > { %7063 = vmatpush3.bf16.msk.msra.mxu0 %vm7949_vm4, %v7061_v55  ;;  %v6967_v55 = vpack.c.bf16 %v1749_v15, %v1748_v54  ;;  %vm1370_vm11 = vcmp.gt.f32.partialorder %v9070_v29, 0.0 }
 0x1e0   : > { %7077 = vmatprep.subr.bf16.mxu0 %v7407_v6  ;;  %6942 = vmatpush3.bf16.msra.mxu1 %v6941_v5  ;;  %v1834_v5 = vld [vmem:[%s9704_s4 + $0x810] sm:$0xff]  ;;  %v1462_v19 = vmul.f32 1.442695, %v1399_v56  ;;  %v1484_v31 = vmul.f32 1.442695, %v1410_v42  ;;  %v1851_v56 = vld [vmem:[%s9704_s4 + $0x898] sm:$0xff] }
 0x1e1   : > { %6943 = vmatprep.subr.bf16.mxu1 %v7407_v6  ;;  %v7107_v36 = vpack.c.bf16 %v1835_v11, %v1834_v5  ;;  %v1777_v11 = vld [vmem:[%s9704_s4 + $0x648] sm:$0xff] }
 0x1e2   : > { %6435 = vmatmul.mubr.msk.f32.vlgmr.msra.gmra.mrb[62].mxu0 %vm1896_vm6, %v1564_v23  ;;  %v944_v23 = vpop.permute.xlu1 %943  ;;  %7316 = vpow2.f32 %v1462_v19  ;;  %v1853_v19 = vld [vmem:[%s9704_s4 + $0x8a8] sm:$0xff] }
 0x1e3   : > { %7079 = vmatpush3.bf16.msra.mxu0 %v7078_v0  ;;  %6472 = vmatprep.mubr.msk.f32.mxu0 %vm7409_vm5, %v7410_v28  ;;  %v6970_v0 = vpack.c.bf16 %v1751_v8, %v1750_v60  ;;  %v1041_v34 = vmul.f32 %v8151_v48, %v944_v23  ;;  %v1838_v48 = vld [vmem:[%s9704_s4 + $0x830] sm:$0xff]  ;;  %7318 = vpow2.f32 %v1484_v31  ;;  %v7136_v53 = vpack.c.bf16 %v1853_v19, %v1852_v16 }
 0x1e4   : > { %7080 = vmatprep.subr.bf16.mxu0 %v7407_v6  ;;  %6946 = vmatpush3.bf16.msk.msra.mxu1 %vm7949_vm4, %v6944_v45  ;;  %v5267_v45 = vadd.f32 -1.0, %v7313_v20 }
 0x1e5   : > { %6960 = vmatprep.subr.bf16.mxu1 %v7407_v6 }
 0x1e6   : > { %v1557_v52 = vsel %vm1357_vm7, %v8948_v1, %v5267_v45  ;;  %v7315_v25 = vpop.eup %7314  ;;  %v1224_v9 = vpop.permute.xlu1 %1223  ;;  %v1778_v45 = vld [vmem:[%s9704_s4 + $0x650] sm:$0xff] }
 0x1e7   : > { %7082 = vmatpush3.bf16.msra.mxu0 %v7081_v30  ;;  %6264 = vmatmul.mubr.msk.f32.vlgmr.msra.gmra.mrb[24].mxu1 %vm1896_vm6, %v1555_v49  ;;  %v1762_v30 = vld [vmem:[%s9704_s4 + $0x5d0] sm:$0xff]  ;;  %v9104_v1 = vadd.f32 %v1224_v9, %v1041_v34  ;;  %v5278_v15 = vadd.f32 -1.0, %v7315_v25  ;;  %v7016_v42 = vpack.c.bf16 %v1779_v10, %v1778_v45 }
 0x1e8   : > { %7083 = vmatprep.subr.bf16.mxu0 %v7407_v6  ;;  %6962 = vmatpush3.bf16.msra.mxu1 %v6961_v37  ;;  %v1839_v37 = vld [vmem:[%s9704_s4 + $0x838] sm:$0x7f]  ;;  %v6990_v39 = vpack.c.bf16 %v1763_v7, %v1762_v30 }
 0x1e9   : > { %6301 = vmatprep.mubr.msk.f32.mxu1 %vm7409_vm5, %v7410_v28  ;;  %6963 = vmatprep.subr.bf16.mxu1 %v7407_v6  ;;  %v7113_v49 = vpack.c.bf16 %v1839_v37, %v1838_v48  ;;  %v1401_v47 = vmin.f32 %v9104_v1, 0.0  ;;  %v1568_v8 = vsel %vm1368_vm8, %v8992_v13, %v5278_v15  ;;  %v1855_v30 = vld [vmem:[%s9704_s4 + $0x8b8] sm:$0x7f]  ;;  %v1781_v48 = vld [vmem:[%s9704_s4 + $0x668] sm:$0xff]  ;;  %vm1361_vm12 = vcmp.gt.f32.partialorder %v9104_v1, 0.0 }
 0x1eb   : > { %7085 = vmatpush3.bf16.msra.mxu0 %v7084_v41  ;;  %v1764_v41 = vld [vmem:[%s9704_s4 + $0x5e0] sm:$0xff]  ;;  %v1466_v5 = vmul.f32 1.442695, %v1401_v47 }
 0x1ec   : > { %7086 = vmatprep.subr.bf16.mxu0 %v7407_v6  ;;  %6965 = vmatpush3.bf16.msra.mxu1 %v6964_v62  ;;  %v999_v62 = vpop.permute.xlu0 %998  ;;  %v7317_v60 = vpop.eup %7316 }
 0x1ed   : > { %6966 = vmatprep.subr.bf16.mxu1 %v7407_v6  ;;  %v1052_v44 = vmul.f32 %v999_v62, %v8300_v43  ;;  %v1776_v43 = vld [vmem:[%s9704_s4 + $0x640] sm:$0xff]  ;;  %7320 = vpow2.f32 %v1466_v5  ;;  %v7319_v7 = vpop.eup %7318 }
 0x1ee   : > { %v5280_v50 = vadd.f32 -1.0, %v7319_v7  ;;  %v1797_v7 = vld [vmem:[%s9704_s4 + $0x6e8] sm:$0xff] }
 0x1ef   : > { %7089 = vmatpush3.bf16.msk.msra.mxu0 %vm7949_vm4, %v7087_v22  ;;  %v6993_v22 = vpack.c.bf16 %v1765_v46, %v1764_v41  ;;  %v1865_v41 = vld [vmem:[%s9704_s4 + $0x908] sm:$0xff] }
 0x1f0   : > { %7103 = vmatprep.subr.bf16.mxu0 %v7407_v6  ;;  %6968 = vmatpush3.bf16.msra.mxu1 %v6967_v55  ;;  %v1850_v55 = vld [vmem:[%s9704_s4 + $0x890] sm:$0xff]  ;;  %v1279_v4 = vpop.permute.xlu0 %1278 }
 0x1f1   : > { %6969 = vmatprep.subr.bf16.mxu1 %v7407_v6  ;;  %v7133_v20 = vpack.c.bf16 %v1851_v56, %v1850_v55  ;;  %v9150_v13 = vadd.f32 %v1279_v4, %v1052_v44  ;;  %v1570_v55 = vsel %vm1370_vm11, %v9070_v29, %v5280_v50 }
 0x1f2   : > { %6473 = vmatmul.mubr.msk.f32.vlgmr.msra.gmra.mrb[64].mxu0 %vm1896_vm6, %v1566_v12  ;;  %v954_v12 = vpop.permute.xlu1 %953 }
 0x1f3   : > { %7105 = vmatpush3.bf16.msra.mxu0 %v7104_v26  ;;  %6510 = vmatprep.mubr.msk.f32.mxu0 %vm7409_vm5, %v7410_v28  ;;  %v6996_v26 = vpack.c.bf16 %v1767_v61, %v1766_v58  ;;  %v1043_v23 = vmul.f32 %v8176_v3, %v954_v12  ;;  %v1854_v3 = vld [vmem:[%s9704_s4 + $0x8b0] sm:$0xff]  ;;  %vm1372_vm13 = vcmp.gt.f32.partialorder %v9150_v13, 0.0 }
 0x1f4   : > { %7106 = vmatprep.subr.bf16.mxu0 %v7407_v6  ;;  %6972 = vmatpush3.bf16.msk.msra.mxu1 %vm7949_vm4, %v6970_v0  ;;  %v5269_v0 = vadd.f32 -1.0, %v7317_v60  ;;  %v7139_v37 = vpack.c.bf16 %v1855_v30, %v1854_v3  ;;  %v1009_v46 = vpop.permute.xlu0 %1008  ;;  %v1866_v61 = vld [vmem:[%s9704_s4 + $0x910] sm:$0xff]  ;;  %v1796_v30 = vld [vmem:[%s9704_s4 + $0x6e0] sm:$0xff] }
 0x1f5   : > { %6986 = vmatprep.subr.bf16.mxu1 %v7407_v6  ;;  %v1054_v58 = vmul.f32 %v1009_v46, %v8325_v2  ;;  %v1792_v2 = vld [vmem:[%s9704_s4 + $0x6c0] sm:$0xff]  ;;  %v7045_v46 = vpack.c.bf16 %v1797_v7, %v1796_v30  ;;  %v1814_v30 = vld [vmem:[%s9704_s4 + $0x770] sm:$0xff]  ;;  %v1815_v7 = vld [vmem:[%s9704_s4 + $0x778] sm:$0x7f] }
 0x1f6   : > { %v1559_v34 = vsel %vm1359_vm9, %v9026_v35, %v5269_v0 }
 0x1f7   : > { %7108 = vmatpush3.bf16.msra.mxu0 %v7107_v36  ;;  %6302 = vmatmul.mubr.msk.f32.vlgmr.msra.gmra.mrb[26].mxu1 %vm1896_vm6, %v1557_v52  ;;  %v7013_v36 = vpack.c.bf16 %v1777_v11, %v1776_v43  ;;  %v1780_v52 = vld [vmem:[%s9704_s4 + $0x660] sm:$0xff]  ;;  %v7321_v44 = vpop.eup %7320 }
 0x1f8   : > { %7109 = vmatprep.subr.bf16.mxu0 %v7407_v6  ;;  %6988 = vmatpush3.bf16.msra.mxu1 %v6987_v63  ;;  %v1412_v63 = vmin.f32 %v9150_v13, 0.0  ;;  %v1289_v60 = vpop.permute.xlu0 %1288  ;;  %v5271_v43 = vadd.f32 -1.0, %v7321_v44  ;;  %v1868_v11 = vld [vmem:[%s9704_s4 + $0x920] sm:$0xff] }
 0x1f9   : > { %6339 = vmatprep.mubr.msk.f32.mxu1 %vm7409_vm5, %v7410_v28  ;;  %6989 = vmatprep.subr.bf16.mxu1 %v7407_v6  ;;  %v9113_v14 = vpop.f32.mrb[0].mxu1  ;;  %v9235_v29 = vadd.f32 %v1289_v60, %v1054_v58  ;;  %v1808_v58 = vld [vmem:[%s9704_s4 + $0x740] sm:$0xff] }
 0x1fa   : > { %v5904_v54 = vpop.f32.mrb[1].mxu1  ;;  %v1488_v25 = vmul.f32 1.442695, %v1412_v63  ;;  %v1561_v10 = vsel %vm1361_vm12, %v9104_v1, %v5271_v43 }
 0x1fb   : > { %7111 = vmatpush3.bf16.msra.mxu0 %v7110_v32  ;;  %v1234_v32 = vpop.permute.xlu1 %1233  ;;  %v7019_v54 = vpack.c.bf16 %v1781_v48, %v1780_v52  ;;  %v1414_v45 = vmin.f32 %v9235_v29, 0.0  ;;  %v1880_v48 = vld [vmem:[%s9704_s4 + $0x980] sm:$0xff]  ;;  %vm1374_vm15 = vcmp.gt.f32.partialorder %v9235_v29, 0.0 }
 0x1fc   : > { %7112 = vmatprep.subr.bf16.mxu0 %v7407_v6  ;;  %6991 = vmatpush3.bf16.msra.mxu1 %v6990_v39  ;;  %v9186_v35 = vadd.f32 %v1234_v32, %v1043_v23  ;;  %v1864_v39 = vld [vmem:[%s9704_s4 + $0x900] sm:$0xff]  ;;  %7322 = vpow2.f32 %v1488_v25 }
 0x1fd   : > { %6992 = vmatprep.subr.bf16.mxu1 %v7407_v6  ;;  %v7156_v47 = vpack.c.bf16 %v1865_v41, %v1864_v39 }
 0x1fe   : > { %v1403_v15 = vmin.f32 %v9186_v35, 0.0  ;;  %vm1363_vm14 = vcmp.gt.f32.partialorder %v9186_v35, 0.0 }
 0x1ff   : > { %7115 = vmatpush3.bf16.msk.msra.mxu0 %vm7949_vm4, %v7113_v49  ;;  %v4939_v49 = vsel %vm4938_vm10, %v9113_v14, 0.0  ;;  %v1783_v14 = vld [vmem:[%s9704_s4 + $0x678] sm:$0x7f]  ;;  %v964_v5 = vpop.permute.xlu1 %963 }
 0x200   : > { %7129 = vmatprep.subr.bf16.mxu0 %v7407_v6  ;;  %6994 = vmatpush3.bf16.msra.mxu1 %v6993_v22  ;;  %v1782_v22 = vld [vmem:[%s9704_s4 + $0x670] sm:$0xff]  ;;  %v1045_v19 = vmul.f32 %v8200_v21, %v964_v5  ;;  %v1811_v5 = vld [vmem:[%s9704_s4 + $0x758] sm:$0xff] }
 0x201   : > { %6995 = vmatprep.subr.bf16.mxu1 %v7407_v6  ;;  %v7022_v56 = vpack.c.bf16 %v1783_v14, %v1782_v22  ;;  %v1870_v21 = vld [vmem:[%s9704_s4 + $0x930] sm:$0xff] }
 0x202   : > { %6511 = vmatmul.mubr.msk.f32.vlgmr.msra.gmra.mrb[66].mxu0 %vm1896_vm6, %v1568_v8  ;;  %v1470_v8 = vmul.f32 1.442695, %v1403_v15 }
 0x203   : > { %7131 = vmatpush3.bf16.msra.mxu0 %v7130_v33  ;;  %6548 = vmatprep.mubr.msk.f32.mxu0 %vm7409_vm5, %v7410_v28  ;;  %v1867_v33 = vld [vmem:[%s9704_s4 + $0x918] sm:$0xff] }
 0x204   : > { %7132 = vmatprep.subr.bf16.mxu0 %v7407_v6  ;;  %6998 = vmatpush3.bf16.msk.msra.mxu1 %vm7949_vm4, %v6996_v26  ;;  %v1793_v26 = vld [vmem:[%s9704_s4 + $0x6c8] sm:$0xff]  ;;  %v7159_v4 = vpack.c.bf16 %v1867_v33, %v1866_v61  ;;  %7324 = vpow2.f32 %v1470_v8 }
 0x205   : > { %v9161_v27 = vpop.f32.mrb[40].mxu0  ;;  %7012 = vmatprep.subr.bf16.mxu1 %v7407_v6  ;;  %v7039_v16 = vpack.c.bf16 %v1793_v26, %v1792_v2  ;;  %v1809_v61 = vld [vmem:[%s9704_s4 + $0x748] sm:$0xff] }
 0x206   : > { %v6018_v18 = vpop.f32.mrb[41].mxu0  ;;  %v7323_v63 = vpop.eup %7322  ;;  %v7065_v2 = vpack.c.bf16 %v1809_v61, %v1808_v58 }
 0x207   : > { %7134 = vmatpush3.bf16.msra.mxu0 %v7133_v20  ;;  %6340 = vmatmul.mubr.msk.f32.vlgmr.msra.gmra.mrb[28].mxu1 %vm1896_vm6, %v1559_v34  ;;  %v1869_v20 = vld [vmem:[%s9704_s4 + $0x928] sm:$0xff]  ;;  %v1794_v18 = vld [vmem:[%s9704_s4 + $0x6d0] sm:$0xff]  ;;  %v1244_v34 = vpop.permute.xlu1 %1243  ;;  %v5282_v39 = vadd.f32 -1.0, %v7323_v63 }
 0x208   : > { %7135 = vmatprep.subr.bf16.mxu0 %v7407_v6  ;;  %7014 = vmatpush3.bf16.msra.mxu1 %v7013_v36  ;;  %v1795_v36 = vld [vmem:[%s9704_s4 + $0x6d8] sm:$0xff]  ;;  %v7162_v23 = vpack.c.bf16 %v1869_v20, %v1868_v11  ;;  %v9271_v1 = vadd.f32 %v1244_v34, %v1045_v19 }
 0x209   : > { %6377 = vmatprep.mubr.msk.f32.mxu1 %vm7409_vm5, %v7410_v28  ;;  %7015 = vmatprep.subr.bf16.mxu1 %v7407_v6  ;;  %v7042_v3 = vpack.c.bf16 %v1795_v36, %v1794_v18  ;;  %v1572_v22 = vsel %vm1372_vm13, %v9150_v13, %v5282_v39  ;;  %v1884_v13 = vld [vmem:[%s9704_s4 + $0x9a0] sm:$0xff]  ;;  %v1887_v20 = vld [vmem:[%s9704_s4 + $0x9b8] sm:$0x7f]  ;;  %v1813_v36 = vld [vmem:[%s9704_s4 + $0x768] sm:$0xff] }
 0x20a   : > { %v2046_v9 = vpop.f32.mrb[2].mxu1  ;;  %v1812_v18 = vld [vmem:[%s9704_s4 + $0x760] sm:$0xff]  ;;  %vm1365_vm0 = vcmp.gt.f32.partialorder %v9271_v1, 0.0 }
 0x20b   : > { %7137 = vmatpush3.bf16.msra.mxu0 %v7136_v53  ;;  %v4940_v31 = vsel %vm4938_vm10, %v2046_v9, 0.0  ;;  %v5923_v51 = vpop.f32.mrb[3].mxu1  ;;  %v1871_v53 = vld [vmem:[%s9704_s4 + $0x938] sm:$0x7f]  ;;  %v974_v44 = vpop.permute.xlu1 %973  ;;  %v7071_v34 = vpack.c.bf16 %v1813_v36, %v1812_v18 }
 0x20c   : > { %7138 = vmatprep.subr.bf16.mxu0 %v7407_v6  ;;  %v9205_v62 = vadd.f32 %v4940_v31, %v4939_v49  ;;  %7017 = vmatpush3.bf16.msra.mxu1 %v7016_v42  ;;  %v7165_v32 = vpack.c.bf16 %v1871_v53, %v1870_v21  ;;  %v1492_v42 = vmul.f32 1.442695, %v1414_v45  ;;  %v1405_v49 = vmin.f32 %v9271_v1, 0.0  ;;  %v1798_v31 = vld [vmem:[%s9704_s4 + $0x6f0] sm:$0xff]  ;;  %v1799_v51 = vld [vmem:[%s9704_s4 + $0x6f8] sm:$0x7f] }
 0x20d   : > { %7018 = vmatprep.subr.bf16.mxu1 %v7407_v6  ;;  %v7048_v14 = vpack.c.bf16 %v1799_v51, %v1798_v31  ;;  %v1047_v26 = vmul.f32 %v8222_v40, %v974_v44  ;;  %v1886_v40 = vld [vmem:[%s9704_s4 + $0x9b0] sm:$0xff]  ;;  %v1827_v51 = vld [vmem:[%s9704_s4 + $0x7d8] sm:$0xff] }
 0x20e   : > { %7326 = vpow2.f32 %v1492_v42  ;;  %v7325_v15 = vpop.eup %7324  ;;  %v1826_v31 = vld [vmem:[%s9704_s4 + $0x7d0] sm:$0xff] }
 0x20f   : > { %7141 = vmatpush3.bf16.msk.msra.mxu0 %vm7949_vm4, %v7139_v37  ;;  %v1881_v37 = vld [vmem:[%s9704_s4 + $0x988] sm:$0xff]  ;;  %v1830_v44 = vld [vmem:[%s9704_s4 + $0x7f0] sm:$0xff] }
 0x210   : > { %7155 = vmatprep.subr.bf16.mxu0 %v7407_v6  ;;  %7020 = vmatpush3.bf16.msra.mxu1 %v7019_v54  ;;  %v7182_v50 = vpack.c.bf16 %v1881_v37, %v1880_v48  ;;  %v1883_v54 = vld [vmem:[%s9704_s4 + $0x998] sm:$0xff]  ;;  %v1824_v37 = vld [vmem:[%s9704_s4 + $0x7c0] sm:$0xff] }
 0x211   : > { %7021 = vmatprep.subr.bf16.mxu1 %v7407_v6 }
 0x212   : > { %6549 = vmatmul.mubr.msk.f32.vlgmr.msra.gmra.mrb[68].mxu0 %vm1896_vm6, %v1570_v55  ;;  %v5273_v55 = vadd.f32 -1.0, %v7325_v15  ;;  %v1828_v15 = vld [vmem:[%s9704_s4 + $0x7e0] sm:$0xff] }
 0x213   : > { %7157 = vmatpush3.bf16.msra.mxu0 %v7156_v47  ;;  %6586 = vmatprep.mubr.msk.f32.mxu0 %vm7409_vm5, %v7410_v28  ;;  %v1474_v47 = vmul.f32 1.442695, %v1405_v49 }
 0x214   : > { %7158 = vmatprep.subr.bf16.mxu0 %v7407_v6  ;;  %7024 = vmatpush3.bf16.msk.msra.mxu1 %vm7949_vm4, %v7022_v56  ;;  %v1885_v56 = vld [vmem:[%s9704_s4 + $0x9a8] sm:$0xff]  ;;  %v1563_v11 = vsel %vm1363_vm14, %v9186_v35, %v5273_v55  ;;  %v1831_v55 = vld [vmem:[%s9704_s4 + $0x7f8] sm:$0x7f] }
 0x215   : > { %v9246_v12 = vpop.f32.mrb[42].mxu0  ;;  %7038 = vmatprep.subr.bf16.mxu1 %v7407_v6  ;;  %7328 = vpow2.f32 %v1474_v47  ;;  %v7188_v43 = vpack.c.bf16 %v1885_v56, %v1884_v13  ;;  %v7100_v56 = vpack.c.bf16 %v1831_v55, %v1830_v44  ;;  %v1862_v44 = vld [vmem:[%s9704_s4 + $0x8f0] sm:$0xff]  ;;  %v1863_v55 = vld [vmem:[%s9704_s4 + $0x8f8] sm:$0x7f] }
 0x216   : > { %v6056_v0 = vpop.f32.mrb[43].mxu0 }
 0x217   : > { %7160 = vmatpush3.bf16.msra.mxu0 %v7159_v4  ;;  %6378 = vmatmul.mubr.msk.f32.vlgmr.msra.gmra.mrb[30].mxu1 %vm1896_vm6, %v1561_v10  ;;  %v1810_v4 = vld [vmem:[%s9704_s4 + $0x750] sm:$0xff] }
 0x218   : > { %7161 = vmatprep.subr.bf16.mxu0 %v7407_v6  ;;  %7040 = vmatpush3.bf16.msra.mxu1 %v7039_v16  ;;  %v7327_v0 = vpop.eup %7326  ;;  %v1254_v16 = vpop.permute.xlu1 %1253  ;;  %v7068_v19 = vpack.c.bf16 %v1811_v5, %v1810_v4 }
 0x219   : > { %6415 = vmatprep.mubr.msk.f32.mxu1 %vm7409_vm5, %v7410_v28  ;;  %7041 = vmatprep.subr.bf16.mxu1 %v7407_v6  ;;  %v9351_v35 = vadd.f32 %v1254_v16, %v1047_v26  ;;  %v5284_v53 = vadd.f32 -1.0, %v7327_v0  ;;  %v1841_v26 = vld [vmem:[%s9704_s4 + $0x848] sm:$0xff]  ;;  %v1842_v0 = vld [vmem:[%s9704_s4 + $0x850] sm:$0xff]  ;;  %v1843_v16 = vld [vmem:[%s9704_s4 + $0x858] sm:$0xff] }
 0x21a   : > { %v2122_v52 = vpop.f32.mrb[4].mxu1  ;;  %v7120_v36 = vpack.c.bf16 %v1843_v16, %v1842_v0  ;;  %v1874_v16 = vld [vmem:[%s9704_s4 + $0x950] sm:$0xff] }
 0x21b   : > { %7163 = vmatpush3.bf16.msra.mxu0 %v7162_v23  ;;  %v4942_v25 = vsel %vm4938_vm10, %v2122_v52, 0.0  ;;  %v5942_v9 = vpop.f32.mrb[5].mxu1  ;;  %v7191_v23 = vpack.c.bf16 %v1887_v20, %v1886_v40  ;;  %v1574_v42 = vsel %vm1374_vm15, %v9235_v29, %v5284_v53  ;;  %v7074_v52 = vpack.c.bf16 %v1815_v7, %v1814_v30  ;;  %v1846_v30 = vld [vmem:[%s9704_s4 + $0x870] sm:$0xff]  ;;  %v1847_v7 = vld [vmem:[%s9704_s4 + $0x878] sm:$0x7f] }
 0x21c   : > { %7164 = vmatprep.subr.bf16.mxu0 %v7407_v6  ;;  %v9289_v41 = vadd.f32 %v4942_v25, %v9205_v62  ;;  %7043 = vmatpush3.bf16.msra.mxu1 %v7042_v3  ;;  %v1882_v62 = vld [vmem:[%s9704_s4 + $0x990] sm:$0xff]  ;;  %v1407_v3 = vmin.f32 %v9351_v35, 0.0  ;;  %v1825_v25 = vld [vmem:[%s9704_s4 + $0x7c8] sm:$0xff]  ;;  %v984_v9 = vpop.permute.xlu1 %983  ;;  %vm1367_vm1 = vcmp.gt.f32.partialorder %v9351_v35, 0.0 }
 0x21d   : > { %7044 = vmatprep.subr.bf16.mxu1 %v7407_v6  ;;  %v7185_v33 = vpack.c.bf16 %v1883_v54, %v1882_v62  ;;  %v1049_v49 = vmul.f32 %v8245_v57, %v984_v9  ;;  %v7094_v54 = vpack.c.bf16 %v1827_v51, %v1826_v31  ;;  %v1858_v31 = vld [vmem:[%s9704_s4 + $0x8d0] sm:$0xff]  ;;  %v1859_v51 = vld [vmem:[%s9704_s4 + $0x8d8] sm:$0xff] }
 0x21e   : > { %v1478_v48 = vmul.f32 1.442695, %v1407_v3  ;;  %v4950_v3 = vsel %vm4938_vm10, %v9161_v27, 0.0  ;;  %v1856_v27 = vld [vmem:[%s9704_s4 + $0x8c0] sm:$0xff] }
 0x21f   : > { %7167 = vmatpush3.bf16.msk.msra.mxu0 %vm7949_vm4, %v7165_v32  ;;  %v7329_v32 = vpop.eup %7328 }
 0x220   : > { %7181 = vmatprep.subr.bf16.mxu0 %v7407_v6  ;;  %7046 = vmatpush3.bf16.msra.mxu1 %v7045_v46  ;;  %v5275_v29 = vadd.f32 -1.0, %v7329_v32  ;;  %v7091_v46 = vpack.c.bf16 %v1825_v25, %v1824_v37  ;;  %7330 = vpow2.f32 %v1478_v48  ;;  %v1264_v62 = vpop.permute.xlu1 %1263  ;;  %v1857_v37 = vld [vmem:[%s9704_s4 + $0x8c8] sm:$0xff] }
 0x221   : > { %7047 = vmatprep.subr.bf16.mxu1 %v7407_v6  ;;  %v9403_v57 = vadd.f32 %v1264_v62, %v1049_v49 }
 0x222   : > { %6587 = vmatmul.mubr.msk.f32.vlgmr.msra.gmra.mrb[70].mxu0 %vm1896_vm6, %v1572_v22 }
 0x223   : > { %7183 = vmatpush3.bf16.msra.mxu0 %v7182_v50  ;;  %6624 = vmatprep.mubr.msk.f32.mxu0 %vm7409_vm5, %v7410_v28  ;;  %v1565_v50 = vsel %vm1365_vm0, %v9271_v1, %v5275_v29  ;;  %v1829_v1 = vld [vmem:[%s9704_s4 + $0x7e8] sm:$0xff]  ;;  %vm1369_vm2 = vcmp.gt.f32.partialorder %v9403_v57, 0.0 }
 0x224   : > { %7184 = vmatprep.subr.bf16.mxu0 %v7407_v6  ;;  %7050 = vmatpush3.bf16.msk.msra.mxu1 %vm7949_vm4, %v7048_v14  ;;  %v7097_v61 = vpack.c.bf16 %v1829_v1, %v1828_v15  ;;  %v994_v4 = vpop.permute.xlu1 %993  ;;  %v1860_v15 = vld [vmem:[%s9704_s4 + $0x8e0] sm:$0xff] }
 0x225   : > { %v9327_v60 = vpop.f32.mrb[44].mxu0  ;;  %7064 = vmatprep.subr.bf16.mxu1 %v7407_v6  ;;  %v1051_v20 = vmul.f32 %v8270_v17, %v994_v4 }
 0x226   : > { %v6094_v8 = vpop.f32.mrb[45].mxu0 }
 0x227   : > { %7186 = vmatpush3.bf16.msra.mxu0 %v7185_v33  ;;  %6416 = vmatmul.mubr.msk.f32.vlgmr.msra.gmra.mrb[32].mxu1 %vm1896_vm6, %v1563_v11  ;;  %v1409_v33 = vmin.f32 %v9403_v57, 0.0 }
 0x228   : > { %7187 = vmatprep.subr.bf16.mxu0 %v7407_v6  ;;  %7066 = vmatpush3.bf16.msra.mxu1 %v7065_v2  ;;  %v1840_v2 = vld [vmem:[%s9704_s4 + $0x840] sm:$0xff]  ;;  %v1274_v18 = vpop.permute.xlu1 %1273 }
 0x229   : > { %6453 = vmatprep.mubr.msk.f32.mxu1 %vm7409_vm5, %v7410_v28  ;;  %7067 = vmatprep.subr.bf16.mxu1 %v7407_v6  ;;  %v1482_v8 = vmul.f32 1.442695, %v1409_v33  ;;  %v7117_v40 = vpack.c.bf16 %v1841_v26, %v1840_v2  ;;  %v9445_v17 = vadd.f32 %v1274_v18, %v1051_v20  ;;  %v4954_v33 = vsel %vm4938_vm10, %v9246_v12, 0.0  ;;  %v1872_v12 = vld [vmem:[%s9704_s4 + $0x940] sm:$0xff]  ;;  %v1873_v26 = vld [vmem:[%s9704_s4 + $0x948] sm:$0xff] }
 0x22a   : > { %v2198_v45 = vpop.f32.mrb[6].mxu1  ;;  %v7331_v13 = vpop.eup %7330  ;;  %v7169_v20 = vpack.c.bf16 %v1873_v26, %v1872_v12 }
 0x22b   : > { %7189 = vmatpush3.bf16.msra.mxu0 %v7188_v43  ;;  %v4944_v10 = vsel %vm4938_vm10, %v2198_v45, 0.0  ;;  %v5961_v21 = vpop.f32.mrb[7].mxu1  ;;  %v5277_v5 = vadd.f32 -1.0, %v7331_v13  ;;  %7332 = vpow2.f32 %v1482_v8  ;;  %v7152_v8 = vpack.c.bf16 %v1863_v55, %v1862_v44 }
 0x22c   : > { %7190 = vmatprep.subr.bf16.mxu0 %v7407_v6  ;;  %v4945_v63 = vadd.f32 %v4944_v10, %v9289_v41  ;;  %7069 = vmatpush3.bf16.msra.mxu1 %v7068_v19  ;;  %v1004_v25 = vpop.permute.xlu1 %1003  ;;  %vm1371_vm3 = vcmp.gt.f32.partialorder %v9445_v17, 0.0 }
 0x22d   : > { %7070 = vmatprep.subr.bf16.mxu1 %v7407_v6  ;;  %v1567_v19 = vsel %vm1367_vm1, %v9351_v35, %v5277_v5  ;;  %v1845_v35 = vld [vmem:[%s9704_s4 + $0x868] sm:$0xff]  ;;  %v1053_v49 = vmul.f32 %v8294_v38, %v1004_v25 }
 0x22f   : > { %7193 = vmatpush3.bf16.msk.msra.mxu0 %vm7949_vm4, %v7191_v23  ;;  %v1844_v23 = vld [vmem:[%s9704_s4 + $0x860] sm:$0xff] }
 0x230   : > { %7207 = vmatprep.subr.bf16.mxu0 %v7407_v6  ;;  %7072 = vmatpush3.bf16.msra.mxu1 %v7071_v34  ;;  %v1411_v34 = vmin.f32 %v9445_v17, 0.0  ;;  %v1284_v62 = vpop.permute.xlu1 %1283 }
 0x231   : > { %7073 = vmatprep.subr.bf16.mxu1 %v7407_v6  ;;  %v9489_v38 = vadd.f32 %v1284_v62, %v1053_v49  ;;  %v1891_v49 = vld [vmem:[%s9704_s4 + $0x9d8] sm:$0xff]  ;;  %v1893_v62 = vld [vmem:[%s9704_s4 + $0x9e8] sm:$0xff] }
 0x232   : > { %6625 = vmatmul.mubr.msk.f32.vlgmr.msra.gmra.mrb[72].mxu0 %vm1896_vm6, %v1574_v42  ;;  %v1486_v48 = vmul.f32 1.442695, %v1411_v34 }
 0x233   : > { %6656 = vmatprep.mubr.msk.f32.mxu0 %vm7409_vm5, %v7410_v28  ;;  %vm1373_vm7 = vcmp.gt.f32.partialorder %v9489_v38, 0.0 }
 0x234   : > { %7076 = vmatpush3.bf16.msk.msra.mxu1 %vm7949_vm4, %v7074_v52  ;;  %v7126_v52 = vpack.c.bf16 %v1847_v7, %v1846_v30  ;;  %7334 = vpow2.f32 %v1486_v48  ;;  %v1014_v4 = vpop.permute.xlu1 %1013  ;;  %v1878_v30 = vld [vmem:[%s9704_s4 + $0x970] sm:$0xff]  ;;  %v1879_v7 = vld [vmem:[%s9704_s4 + $0x978] sm:$0x7f] }
 0x235   : > { %v9386_v39 = vpop.f32.mrb[46].mxu0  ;;  %7090 = vmatprep.subr.bf16.mxu1 %v7407_v6  ;;  %v7333_v42 = vpop.eup %7332  ;;  %v1055_v0 = vmul.f32 %v8318_v59, %v1014_v4 }
 0x236   : > { %v6132_v41 = vpop.f32.mrb[47].mxu0  ;;  %v5279_v9 = vadd.f32 -1.0, %v7333_v42 }
 0x237   : > { %6454 = vmatmul.mubr.msk.f32.vlgmr.msra.gmra.mrb[34].mxu1 %vm1896_vm6, %v1565_v50 }
 0x238   : > { %7092 = vmatpush3.bf16.msra.mxu1 %v7091_v46  ;;  %6491 = vmatprep.mubr.msk.f32.mxu1 %vm7409_vm5, %v7410_v28  ;;  %v7143_v46 = vpack.c.bf16 %v1857_v37, %v1856_v27  ;;  %v1569_v50 = vsel %vm1369_vm2, %v9403_v57, %v5279_v9  ;;  %v1861_v57 = vld [vmem:[%s9704_s4 + $0x8e8] sm:$0xff] }
 0x239   : > { %7093 = vmatprep.subr.bf16.mxu1 %v7407_v6  ;;  %v1889_v27 = vld [vmem:[%s9704_s4 + $0x9c8] sm:$0xff] }
 0x23a   : > { %v2274_v22 = vpop.f32.mrb[8].mxu1 }
 0x23b   : > { %v4946_v14 = vsel %vm4938_vm10, %v2274_v22, 0.0  ;;  %v5980_v47 = vpop.f32.mrb[9].mxu1 }
 0x23c   : > { %v4947_v58 = vadd.f32 %v4946_v14, %v4945_v63  ;;  %7095 = vmatpush3.bf16.msra.mxu1 %v7094_v54  ;;  %v7123_v63 = vpack.c.bf16 %v1845_v35, %v1844_v23  ;;  %v7146_v54 = vpack.c.bf16 %v1859_v51, %v1858_v31  ;;  %v1876_v35 = vld [vmem:[%s9704_s4 + $0x960] sm:$0xff] }
 0x23d   : > { %7096 = vmatprep.subr.bf16.mxu1 %v7407_v6 }
 0x240   : > { %7098 = vmatpush3.bf16.msra.mxu1 %v7097_v61  ;;  %v1413_v61 = vmin.f32 %v9489_v38, 0.0 }
 0x241   : > { %7099 = vmatprep.subr.bf16.mxu1 %v7407_v6 }
 0x242   : > { %v1490_v2 = vmul.f32 1.442695, %v1413_v61 }
 0x244   : > { %7102 = vmatpush3.bf16.msk.msra.mxu1 %vm7949_vm4, %v7100_v56  ;;  %v7335_v56 = vpop.eup %7334  ;;  %7336 = vpow2.f32 %v1490_v2 }
 0x245   : > { %v9428_v43 = vpop.f32.mrb[48].mxu0  ;;  %7116 = vmatprep.subr.bf16.mxu1 %v7407_v6  ;;  %v5281_v5 = vadd.f32 -1.0, %v7335_v56 }
 0x246   : > { %v6170_v11 = vpop.f32.mrb[49].mxu0  ;;  %v4966_v26 = vsel %vm4938_vm10, %v9428_v43, 0.0 }
 0x247   : > { %6492 = vmatmul.mubr.msk.f32.vlgmr.msra.gmra.mrb[36].mxu1 %vm1896_vm6, %v1567_v19  ;;  %v1875_v19 = vld [vmem:[%s9704_s4 + $0x958] sm:$0xff]  ;;  %v1571_v18 = vsel %vm1371_vm3, %v9445_v17, %v5281_v5 }
 0x248   : > { %7118 = vmatpush3.bf16.msra.mxu1 %v7117_v40  ;;  %6529 = vmatprep.mubr.msk.f32.mxu1 %vm7409_vm5, %v7410_v28  ;;  %v7172_v23 = vpack.c.bf16 %v1875_v19, %v1874_v16 }
 0x249   : > { %7119 = vmatprep.subr.bf16.mxu1 %v7407_v6 }
 0x24a   : > { %v2350_v45 = vpop.f32.mrb[10].mxu1 }
 0x24b   : > { %v4948_v10 = vsel %vm4938_vm10, %v2350_v45, 0.0  ;;  %v5999_v21 = vpop.f32.mrb[11].mxu1  ;;  %v1877_v45 = vld [vmem:[%s9704_s4 + $0x968] sm:$0xff] }
 0x24c   : > { %v4949_v53 = vadd.f32 %v4948_v10, %v4947_v58  ;;  %7121 = vmatpush3.bf16.msra.mxu1 %v7120_v36  ;;  %v7149_v58 = vpack.c.bf16 %v1861_v57, %v1860_v15  ;;  %v1294_v36 = vpop.permute.xlu1 %1293 }
 0x24d   : > { %7122 = vmatprep.subr.bf16.mxu1 %v7407_v6  ;;  %v1335_v59 = vadd.f32 %v1294_v36, %v1055_v0 }
 0x24e   : > { %v4951_v32 = vadd.f32 %v4950_v3, %v4949_v53  ;;  %v4958_v3 = vsel %vm4938_vm10, %v9327_v60, 0.0  ;;  %v7337_v42 = vpop.eup %7336  ;;  %v1888_v60 = vld [vmem:[%s9704_s4 + $0x9c0] sm:$0xff] }
 0x24f   : > { %v1415_v34 = vmin.f32 %v1335_v59, 0.0  ;;  %v5283_v37 = vadd.f32 -1.0, %v7337_v42 }
 0x250   : > { %7124 = vmatpush3.bf16.msra.mxu1 %v7123_v63  ;;  %v7175_v63 = vpack.c.bf16 %v1877_v45, %v1876_v35 }
 0x251   : > { %7125 = vmatprep.subr.bf16.mxu1 %v7407_v6  ;;  %v1494_v48 = vmul.f32 1.442695, %v1415_v34  ;;  %v1573_v31 = vsel %vm1373_vm7, %v9489_v38, %v5283_v37 }
 0x253   : > { %7338 = vpow2.f32 %v1494_v48 }
 0x254   : > { %7128 = vmatpush3.bf16.msk.msra.mxu1 %vm7949_vm4, %v7126_v52  ;;  %v7178_v52 = vpack.c.bf16 %v1879_v7, %v1878_v30 }
 0x255   : > { %v9472_v29 = vpop.f32.mrb[50].mxu0  ;;  %7142 = vmatprep.subr.bf16.mxu1 %v7407_v6 }
 0x256   : > { %v6208_v41 = vpop.f32.mrb[51].mxu0  ;;  %v4970_v19 = vsel %vm4938_vm10, %v9472_v29, 0.0 }
 0x257   : > { %6530 = vmatmul.mubr.msk.f32.vlgmr.msra.gmra.mrb[38].mxu1 %vm1896_vm6, %v1569_v50  ;;  %v7195_v41 = vpack.c.bf16 %v1889_v27, %v1888_v60  ;;  %v1892_v50 = vld [vmem:[%s9704_s4 + $0x9e0] sm:$0xff] }
 0x258   : > { %7144 = vmatpush3.bf16.msra.mxu1 %v7143_v46  ;;  %6567 = vmatprep.mubr.msk.f32.mxu1 %vm7409_vm5, %v7410_v28  ;;  %v1890_v46 = vld [vmem:[%s9704_s4 + $0x9d0] sm:$0xff] }
 0x259   : > { %7145 = vmatprep.subr.bf16.mxu1 %v7407_v6  ;;  %v7198_v51 = vpack.c.bf16 %v1891_v49, %v1890_v46 }
 0x25a   : > { %v2502_v1 = vpop.f32.mrb[12].mxu1 }
 0x25b   : > { %v4952_v22 = vsel %vm4938_vm10, %v2502_v1, 0.0  ;;  %v6037_v14 = vpop.f32.mrb[13].mxu1  ;;  %v7201_v1 = vpack.c.bf16 %v1893_v62, %v1892_v50 }
 0x25c   : > { %v4953_v47 = vadd.f32 %v4952_v22, %v4951_v32  ;;  %7147 = vmatpush3.bf16.msra.mxu1 %v7146_v54  ;;  %v4962_v22 = vsel %vm4938_vm10, %v9386_v39, 0.0  ;;  %v1894_v14 = vld [vmem:[%s9704_s4 + $0x9f0] sm:$0xff] }
 0x25d   : > { %7148 = vmatprep.subr.bf16.mxu1 %v7407_v6  ;;  %v7339_v61 = vpop.eup %7338 }
 0x25e   : > { %v4955_v13 = vadd.f32 %v4954_v33, %v4953_v47  ;;  %v1895_v47 = vld [vmem:[%s9704_s4 + $0x9f8] sm:$0x7f]  ;;  %v5285_v44 = vadd.f32 -1.0, %v7339_v61 }
 0x25f   : > { %v7204_v33 = vpack.c.bf16 %v1895_v47, %v1894_v14 }
 0x260   : > { %7150 = vmatpush3.bf16.msra.mxu1 %v7149_v58 }
 0x261   : > { %7151 = vmatprep.subr.bf16.mxu1 %v7407_v6 }
 0x264   : > { %7154 = vmatpush3.bf16.msk.msra.mxu1 %vm7949_vm4, %v7152_v8 }
 0x265   : > { %v9516_v11 = vpop.f32.mrb[52].mxu0  ;;  %7168 = vmatprep.subr.bf16.mxu1 %v7407_v6 }
 0x266   : > { %v6246_v40 = vpop.f32.mrb[53].mxu0  ;;  %v4974_v43 = vsel %vm4938_vm10, %v9516_v11, 0.0 }
 0x267   : > { %6568 = vmatmul.mubr.msk.f32.vlgmr.msra.gmra.mrb[40].mxu1 %vm1896_vm6, %v1571_v18 }
 0x268   : > { %7170 = vmatpush3.bf16.msra.mxu1 %v7169_v20  ;;  %6605 = vmatprep.mubr.msk.f32.mxu1 %vm7409_vm5, %v7410_v28 }
 0x269   : > { %7171 = vmatprep.subr.bf16.mxu1 %v7407_v6 }
 0x26a   : > { %v2654_v17 = vpop.f32.mrb[14].mxu1 }
 0x26b   : > { %v4956_v10 = vsel %vm4938_vm10, %v2654_v17, 0.0  ;;  %v6075_v21 = vpop.f32.mrb[15].mxu1 }
 0x26c   : > { %v4957_v53 = vadd.f32 %v4956_v10, %v4955_v13  ;;  %7173 = vmatpush3.bf16.msra.mxu1 %v7172_v23 }
 0x26d   : > { %7174 = vmatprep.subr.bf16.mxu1 %v7407_v6 }
 0x26e   : > { %v4959_v32 = vadd.f32 %v4958_v3, %v4957_v53 }
 0x270   : > { %7176 = vmatpush3.bf16.msra.mxu1 %v7175_v63 }
 0x271   : > { %7177 = vmatprep.subr.bf16.mxu1 %v7407_v6 }
 0x274   : > { %7180 = vmatpush3.bf16.msk.msra.mxu1 %vm7949_vm4, %v7178_v52 }
 0x275   : > { %v9557_v25 = vpop.f32.mrb[54].mxu0  ;;  %7194 = vmatprep.subr.bf16.mxu1 %v7407_v6 }
 0x276   : > { %v6284_v9 = vpop.f32.mrb[55].mxu0  ;;  %v4978_v29 = vsel %vm4938_vm10, %v9557_v25, 0.0 }
 0x277   : > { %6606 = vmatmul.mubr.msk.f32.vlgmr.msra.gmra.mrb[42].mxu1 %vm1896_vm6, %v1573_v31 }
 0x278   : > { %7196 = vmatpush3.bf16.msra.mxu1 %v7195_v41  ;;  %6643 = vmatprep.mubr.msk.f32.mxu1 %vm7409_vm5, %v7410_v28  ;;  %vm1375_vm5 = vcmp.gt.f32.partialorder %v1335_v59, 0.0 }
 0x279   : > { %7197 = vmatprep.subr.bf16.mxu1 %v7407_v6  ;;  %v1575_v13 = vsel %vm1375_vm5, %v1335_v59, %v5285_v44 }
 0x27a   : > { %v2806_v54 = vpop.f32.mrb[16].mxu1 }
 0x27b   : > { %v4960_v38 = vsel %vm4938_vm10, %v2806_v54, 0.0  ;;  %v6113_v15 = vpop.f32.mrb[17].mxu1 }
 0x27c   : > { %v4961_v57 = vadd.f32 %v4960_v38, %v4959_v32  ;;  %7199 = vmatpush3.bf16.msra.mxu1 %v7198_v51  ;;  %v5040_v38 = vld [vmem:[%s9707_s7] sm:$0xff]  ;;  %v5041_v15 = vld [vmem:[%s9707_s7 + $0x8] sm:$0xff] }
 0x27d   : > { %7200 = vmatprep.subr.bf16.mxu1 %v7407_v6 }
 0x27e   : > { %v4963_v58 = vadd.f32 %v4962_v22, %v4961_v57  ;;  %v5042_v57 = vld [vmem:[%s9707_s7 + $0x10] sm:$0xff]  ;;  %v5043_v22 = vld [vmem:[%s9707_s7 + $0x18] sm:$0xff] }
 0x27f   : > { %v7211_v14 = vpack.c.bf16 %v5043_v22, %v5042_v57  ;;  %v5369_v57 = vld [vmem:[%s9708_s8] ss:$0 sm:$0xff] }
 0x280   : > { %7202 = vmatpush3.bf16.msra.mxu1 %v7201_v1  ;;  %v7208_v1 = vpack.c.bf16 %v5041_v15, %v5040_v38 }
 0x281   : > { %7203 = vmatprep.subr.bf16.mxu1 %v7407_v6 }
 0x282   : > { %7209 = vmatpush3.bf16.msra.mxu0 %v7208_v1 }
 0x283   : > { %7210 = vmatprep.subr.bf16.mxu0 %v7407_v6 }
 0x284   : > { %7206 = vmatpush3.bf16.msk.msra.mxu1 %vm7949_vm4, %v7204_v33 }
 0x285   : > { %v3642_v55 = vpop.f32.mrb[56].mxu0 }
 0x286   : > { %v6322_v39 = vpop.f32.mrb[57].mxu0  ;;  %v4982_v11 = vsel %vm4938_vm10, %v3642_v55, 0.0  ;;  %7212 = vmatpush3.bf16.msra.mxu0 %v7211_v14 }
 0x287   : > { %6644 = vmatmul.mubr.msk.f32.vlgmr.msra.gmra.mrb[44].mxu1 %vm1896_vm6, %v1575_v13  ;;  %6654 = vmatprep.subr.mxu0 %v7410_v28  ;;  %v5044_v39 = vld [vmem:[%s9707_s7 + $0x20] sm:$0xff] }
 0x28a   : > { %v2958_v56 = vpop.f32.mrb[18].mxu1  ;;  %6655 = vmatpush3.msra.mxu0 %v5044_v39 }
 0x28b   : > { %v4964_v8 = vsel %vm4938_vm10, %v2958_v56, 0.0  ;;  %v6151_v2 = vpop.f32.mrb[19].mxu1 }
 0x28c   : > { %v4965_v12 = vadd.f32 %v4964_v8, %v4963_v58 }
 0x28e   : > { %v4967_v4 = vadd.f32 %v4966_v26, %v4965_v12 }
 0x295   : > { %v3794_v5 = vpop.f32.mrb[58].mxu0 }
 0x296   : > { %v6360_v40 = vpop.f32.mrb[59].mxu0  ;;  %v4986_v25 = vsel %vm4938_vm10, %v3794_v5, 0.0 }
 0x29a   : > { %v3110_v20 = vpop.f32.mrb[20].mxu1 }
 0x29b   : > { %v4968_v24 = vsel %vm4938_vm10, %v3110_v20, 0.0  ;;  %v6189_v0 = vpop.f32.mrb[21].mxu1 }
 0x29c   : > { %v4969_v16 = vadd.f32 %v4968_v24, %v4967_v4 }
 0x29e   : > { %v4971_v18 = vadd.f32 %v4970_v19, %v4969_v16 }
 0x2a5   : > { %v3946_v36 = vpop.f32.mrb[60].mxu0 }
 0x2a6   : > { %v6398_v23 = vpop.f32.mrb[61].mxu0  ;;  %v4990_v44 = vsel %vm4938_vm10, %v3946_v36, 0.0 }
 0x2aa   : > { %v3262_v59 = vpop.f32.mrb[22].mxu1 }
 0x2ab   : > { %v4972_v35 = vsel %vm4938_vm10, %v3262_v59, 0.0  ;;  %v6227_v45 = vpop.f32.mrb[23].mxu1 }
 0x2ac   : > { %v4973_v17 = vadd.f32 %v4972_v35, %v4971_v18 }
 0x2ae   : > { %v4975_v10 = vadd.f32 %v4974_v43, %v4973_v17 }
 0x2b5   : > { %v4098_v21 = vpop.f32.mrb[62].mxu0 }
 0x2b6   : > { %v6436_v53 = vpop.f32.mrb[63].mxu0  ;;  %v4994_v26 = vsel %vm4938_vm10, %v4098_v21, 0.0 }
 0x2ba   : > { %v3414_v63 = vpop.f32.mrb[24].mxu1 }
 0x2bb   : > { %v4976_v34 = vsel %vm4938_vm10, %v3414_v63, 0.0  ;;  %v6265_v3 = vpop.f32.mrb[25].mxu1 }
 0x2bc   : > { %v4977_v30 = vadd.f32 %v4976_v34, %v4975_v10 }
 0x2be   : > { %v4979_v7 = vadd.f32 %v4978_v29, %v4977_v30 }
 0x2c5   : > { %v4250_v32 = vpop.f32.mrb[64].mxu0 }
 0x2c6   : > { %v6474_v42 = vpop.f32.mrb[65].mxu0  ;;  %v4998_v16 = vsel %vm4938_vm10, %v4250_v32, 0.0 }
 0x2ca   : > { %v3566_v52 = vpop.f32.mrb[26].mxu1 }
 0x2cb   : > { %v4980_v48 = vsel %vm4938_vm10, %v3566_v52, 0.0  ;;  %v6303_v60 = vpop.f32.mrb[27].mxu1 }
 0x2cc   : > { %v4981_v27 = vadd.f32 %v4980_v48, %v4979_v7 }
 0x2ce   : > { %v4983_v37 = vadd.f32 %v4982_v11, %v4981_v27 }
 0x2d5   : > { %v4402_v9 = vpop.f32.mrb[66].mxu0 }
 0x2d6   : > { %v6512_v41 = vpop.f32.mrb[67].mxu0  ;;  %v5002_v35 = vsel %vm4938_vm10, %v4402_v9, 0.0 }
 0x2d7   : > { %v5366_v41 = vld [vmem:[%s9705_s5] ss:$0 sm:$0xff] }
 0x2da   : > { %v3718_v46 = vpop.f32.mrb[28].mxu1 }
 0x2db   : > { %v4984_v49 = vsel %vm4938_vm10, %v3718_v46, 0.0  ;;  %v6341_v31 = vpop.f32.mrb[29].mxu1 }
 0x2dc   : > { %v4985_v51 = vadd.f32 %v4984_v49, %v4983_v37  ;;  %v5367_v31 = vld [vmem:[%s9706_s6] ss:$0 sm:$0xff] }
 0x2de   : > { %v4987_v50 = vadd.f32 %v4986_v25, %v4985_v51 }
 0x2e5   : > { %v4554_v62 = vpop.f32.mrb[68].mxu0 }
 0x2e6   : > { %v6550_v54 = vpop.f32.mrb[69].mxu0  ;;  %v5006_v53 = vsel %vm4938_vm10, %v4554_v62, 0.0 }
 0x2ea   : > { %v3870_v47 = vpop.f32.mrb[30].mxu1 }
 0x2eb   : > { %v4988_v58 = vsel %vm4938_vm10, %v3870_v47, 0.0  ;;  %v6379_v61 = vpop.f32.mrb[31].mxu1 }
 0x2ec   : > { %v4989_v33 = vadd.f32 %v4988_v58, %v4987_v50 }
 0x2ee   : > { %v4991_v55 = vadd.f32 %v4990_v44, %v4989_v33 }
 0x2f5   : > { %v4706_v13 = vpop.f32.mrb[70].mxu0 }
 0x2f6   : > { %v6588_v56 = vpop.f32.mrb[71].mxu0  ;;  %v5010_v7 = vsel %vm4938_vm10, %v4706_v13, 0.0 }
 0x2fa   : > { %v4022_v8 = vpop.f32.mrb[32].mxu1 }
 0x2fb   : > { %v4992_v6 = vsel %vm4938_vm10, %v4022_v8, 0.0  ;;  %v6417_v2 = vpop.f32.mrb[33].mxu1 }
 0x2fc   : > { %v4993_v12 = vadd.f32 %v4992_v6, %v4991_v55 }
 0x2fe   : > { %v4995_v4 = vadd.f32 %v4994_v26, %v4993_v12 }
 0x305   : > { %v4858_v5 = vpop.f32.mrb[72].mxu0 }
 0x306   : > { %v6626_v40 = vpop.f32.mrb[73].mxu0  ;;  %v5014_v27 = vsel %vm4938_vm10, %v4858_v5, 0.0 }
 0x30a   : > { %v4174_v20 = vpop.f32.mrb[34].mxu1 }
 0x30b   : > { %v4996_v28 = vsel %vm4938_vm10, %v4174_v20, 0.0  ;;  %v6455_v24 = vpop.f32.mrb[35].mxu1 }
 0x30c   : > { %v4997_v0 = vadd.f32 %v4996_v28, %v4995_v4 }
 0x30e   : > { %v4999_v19 = vadd.f32 %v4998_v16, %v4997_v0 }
 0x31a   : > { %v4326_v18 = vpop.f32.mrb[36].mxu1 }
 0x31b   : > { %v5000_v36 = vsel %vm4938_vm10, %v4326_v18, 0.0  ;;  %v6493_v23 = vpop.f32.mrb[37].mxu1 }
 0x31c   : > { %v5001_v59 = vadd.f32 %v5000_v36, %v4999_v19 }
 0x31e   : > { %v5003_v45 = vadd.f32 %v5002_v35, %v5001_v59 }
 0x32a   : > { %v4478_v17 = vpop.f32.mrb[38].mxu1 }
 0x32b   : > { %v5004_v43 = vsel %vm4938_vm10, %v4478_v17, 0.0  ;;  %v6531_v10 = vpop.f32.mrb[39].mxu1 }
 0x32c   : > { %v5005_v21 = vadd.f32 %v5004_v43, %v5003_v45 }
 0x32e   : > { %v5007_v63 = vadd.f32 %v5006_v53, %v5005_v21 }
 0x33a   : > { %v4630_v34 = vpop.f32.mrb[40].mxu1 }
 0x33b   : > { %v5008_v3 = vsel %vm4938_vm10, %v4630_v34, 0.0  ;;  %v6569_v30 = vpop.f32.mrb[41].mxu1 }
 0x33c   : > { %v5009_v29 = vadd.f32 %v5008_v3, %v5007_v63 }
 0x33e   : > { %v5011_v32 = vadd.f32 %v5010_v7, %v5009_v29 }
 0x34a   : > { %v4782_v42 = vpop.f32.mrb[42].mxu1 }
 0x34b   : > { %v5012_v52 = vsel %vm4938_vm10, %v4782_v42, 0.0  ;;  %v6607_v48 = vpop.f32.mrb[43].mxu1 }
 0x34c   : > { %v5013_v60 = vadd.f32 %v5012_v52, %v5011_v32 }
 0x34e   : > { %v5015_v11 = vadd.f32 %v5014_v27, %v5013_v60 }
 0x35a   : > { %v4934_v37 = vpop.f32.mrb[44].mxu1 }
 0x35b   : > { %v5016_v9 = vsel %vm4938_vm10, %v4934_v37, 0.0  ;;  %v6645_v46 = vpop.f32.mrb[45].mxu1 }
 0x35c   : > { %v5017_v49 = vadd.f32 %v5016_v9, %v5015_v11 }
 0x35e   : > { %v5025_v51 = vmul.f32 %v5366_v41, %v5017_v49 }
 0x360   : > { %v5033_v25 = vadd.f32 %v5367_v31, %v5025_v51 }
 0x362   : > { %v5035_v50 = vmin.f32 %v5033_v25, 0.0  ;;  %vm5034_vm4 = vcmp.gt.f32.partialorder %v5033_v25, 0.0 }
 0x364   : > { %v5036_v62 = vmul.f32 1.442695, %v5035_v50 }
 0x366   : > { %7340 = vpow2.f32 %v5036_v62 }
 0x370   : > { %v7341_v54 = vpop.eup %7340 }
 0x371   : > { %v5368_v38 = vadd.f32 -1.0, %v7341_v54 }
 0x373   : > { %v5039_v15 = vsel %vm5034_vm4, %v5033_v25, %v5368_v38 }
 0x374   : > { %6657 = vmatmul.mubr.msk.f32.vlgmr.msra.gmra.mrb[74].mxu0 %vm4938_vm10, %v5039_v15 }
 0x447   : > { %v5121_v1 = vpop.f32.mrb[74].mxu0 }
 0x448   : > { %v5122_v22 = vadd.f32 %v5369_v57, %v5121_v1  ;;  %v6658_v14 = vpop.f32.mrb[75].mxu0 }
 0x44a   : > { %5125 = vst.msk [vmem:[%s325_s28] sm:$0xff] %vm4938_vm10, %v5122_v22 }
 0x44b   : > { %7355 = shalt.err (!%p7352_p3)
}
 0x44c   : > { %s7356_s22 = scalar_lea.hbm %s9657_s16, 128  ;;  %s7360_s28 = scalar_lea.hbm %s9709_s9, 256 }
 0x44d   : > { %p7357_p4 = scmp.ne.s32.totalorder %s9657_s16, %s7356_s22  ;;  %p7361_p9 = scmp.lt.u32.totalorder %s9657_s16, %s9709_s9 }
 0x44e   : > { %p7362_p10 = scmp.lt.u32.totalorder %s7360_s28, %s7356_s22  ;;  %p7364_p12 = scmp.lt.u32.totalorder %s7356_s22, %s9657_s16 }
 0x44f   : > { %p7358_p7 = pnand %p7357_p4, %p7500_p5 }
 0x450   : > { %p7363_p11 = por %p7362_p10, %p7361_p9 }
 0x451   : > { %p7359_p8 = pneg %p7358_p7 }
 0x452   : > { %p7365_p13 = por %p7364_p12, %p7363_p11 }
 0x454   : > { %p7366_p0 = pnand %p7365_p13, %p7359_p8 }
 0x456   : > { %7369 = shalt.err (!%p7366_p0)
}
 0x457   : > { %7214 = dma.vmem_to_hbm [thread:$0]  (%p7500_p5), %s9659_s25, 128, %s9657_s16, %s5127_s17  }
 0x458 PF: > { %p7220_p1 = scmp.ge.s32.totalorder %s7404_s12, 2  ;;  %s5152_s21 = sand.u32 1, %s7392_s30  }
 0x459   : > { %s5153_s13 = scalar_lea.sflag [#allocation3], %s5152_s21 }
 0x45a   : > { %p7217_p2 = pnand %p7220_p1, %p7504_p6 }
 0x45c   : > { %7387 = dma.done.wait (!%p7217_p2), %s5153_s13, 128  }
 0x45d   : > { %7389 = vsyncadd (!%p7217_p2), %s5153_s13, 4294967168  ;;  %p19_p3 = scmp.ge.s32.totalorder %s7487_s15, 4   ;;  %s9714_s30 = smov %s7396_s10 }
 0x45e   : > { %s9715_s10 = smov %s7400_s11  ;;  %s9716_s11 = smov %s7498_s18 }
 0x45f   : > { %s9717_s12 = smov %s7487_s15  ;;  %21 = sbr.rel (!%p19_p3) target bundleno = 3 (0x3), region = 91 }
 0x466   :  { %5158 = vsyncpa [#allocation3], 1 }
 0x467   :  { %5160 = vsyncpa [#allocation3 + $0x1], 1 }

</bundles_post_ra>
